<compile_context>
chip_gen: v7x
topology: tpu7x:2x2x1
jax: 0.10.0
libtpu: 0.0.40
codegen_flags: <defaults>
</compile_context>

<pallas_src>
import functools

import jax
import jax.numpy as jnp
from jax import lax
from jax.experimental import pallas as pl
from jax.experimental.pallas import tpu as pltpu


def _basic_block_kernel(x_ref, w_ref, b_ref, out_ref, sa_ref, sb_ref, *,
                        row_chunk):
    """One group of NB batch images per grid step.  Layout (H, NB, W, C).

    x_ref   : (H, NB, W, C) f32      input block (identity re-read at epilogue)
    w_ref   : (2, 3, 3*C, C) bf16    [conv, dy, dx*C+ci, co], BN scale folded
    b_ref   : (2, C) f32             folded BN biases (conv1 row 0, conv2 row 1)
    out_ref : (H, NB, W, C) f32
    sa_ref  : (H+2, NB*W, 3*C) bf16  conv1 input: 3 dx-shifted copies on lanes
    sb_ref  : (H+2, NB*W, 3*C) bf16  conv2 input (built from conv1's output)
    """
    H, NB, W, C = x_ref.shape
    Hp = H + 2
    NBW = NB * W
    K3 = 3 * C

    # Re-zero only the halo rows each step (scratch persists across grid steps
    # and cores; the interiors are fully overwritten below).  The zero pad
    # columns of the dx=0 / dx=2 slots are folded into the interior writes.
    zrow = jnp.zeros((NBW, K3), sa_ref.dtype)
    sa_ref[0, :, :] = zrow
    sa_ref[Hp - 1, :, :] = zrow
    sb_ref[0, :, :] = zrow
    sb_ref[Hp - 1, :, :] = zrow

    def write_shifted(dst, row0, img, b):
        """img: (rh, W, C) activation rows of image b (already in dst dtype).

        Writes the three dx-shifted copies (lane slots 0:C, C:2C, 2C:3C) into
        dst rows [row0, row0+rh).  Stores start at sublane offset b*W with
        full width W (tile-aligned for W % 16 == 0); the required zero pad
        column is concatenated in, so no separate column store is needed.
        """
        rh = img.shape[0]
        zc = jnp.zeros((rh, 1, C), dst.dtype)
        c0 = b * W
        # dx = 0  -> P(y, x)   = [0, img[:, 0:W-1]]
        dst[row0:row0 + rh, c0:c0 + W, 0:C] = jnp.concatenate(
            [zc, img[:, :W - 1, :]], axis=1)
        # dx = 1  -> P(y, x+1) = img
        dst[row0:row0 + rh, c0:c0 + W, C:2 * C] = img
        # dx = 2  -> P(y, x+2) = [img[:, 1:W], 0]
        dst[row0:row0 + rh, c0:c0 + W, 2 * C:K3] = jnp.concatenate(
            [img[:, 1:, :], zc], axis=1)

    # ---- build conv1's shifted-activation buffer from x --------------------
    for b in range(NB):
        write_shifted(sa_ref, 1, x_ref[:, b, :, :].astype(sa_ref.dtype), b)

    def conv_chunk(src, conv_idx, cy, rh):
        """3x3 conv for output rows [cy, cy+rh): 3 matmuls (dy taps), K=3C.

        The dy shift is a free leading-dim slice of src; the MXU accumulates
        over K internally, leaving only 3 f32 partials to combine.
        """
        acc = None
        for dy in range(3):
            lhs = src[cy + dy:cy + dy + rh, :, :].reshape(rh * NBW, K3)
            part = jnp.dot(lhs, w_ref[conv_idx, dy, :, :],
                           preferred_element_type=jnp.float32)
            acc = part if acc is None else acc + part
        return acc                                   # (rh*NBW, C) f32

    # ---- conv1 + bn1 (scale folded) + ReLU  ->  conv2's input --------------
    # (dropout p=0.1 is identity in eval mode)
    for cy in range(0, H, row_chunk):
        rh = min(row_chunk, H - cy)
        h = jnp.maximum(conv_chunk(sa_ref, 0, cy, rh) + b_ref[0:1, :], 0.0)
        h4 = h.reshape(rh, NB, W, C).astype(sb_ref.dtype)
        for b in range(NB):
            write_shifted(sb_ref, cy + 1, h4[:, b, :, :], b)

    # ---- conv2 + bn2 + residual add + ReLU ----------------------------------
    for cy in range(0, H, row_chunk):
        rh = min(row_chunk, H - cy)
        y = conv_chunk(sb_ref, 1, cy, rh) + b_ref[1:2, :]
        identity = x_ref[cy:cy + rh, :, :, :].reshape(rh * NBW, C)   # f32
        y = jnp.maximum(y + identity, 0.0)
        out_ref[cy:cy + rh, :, :, :] = (
            y.reshape(rh, NB, W, C).astype(out_ref.dtype))


def resnet_basic_block(x_nchw, w1, w2, bn1, bn2, eps=1e-5, images_per_step=1):
    """Fused ResNet basic block (eval mode, stride=1, no downsample).

    x_nchw : (N, C, H, W) float32   (PyTorch layout)
    w1, w2 : (C, C, 3, 3) float32   (PyTorch OIHW conv weights, bias-free)
    bn1/2  : dicts with 'gamma', 'beta', 'mean', 'var' arrays of shape (C,)
    images_per_step : pack this many batch images side-by-side along the
        matmul M axis per grid step (2 is good on single-TC v6e/v5e; 1 keeps
        a batch-parallel grid for v7x megacore).
    """
    N, C, H, W = x_nchw.shape
    NB = images_per_step if (images_per_step >= 1
                             and N % images_per_step == 0) else 1
    NBW = NB * W
    # Keep per-matmul M around 128-256 rows so the f32 accumulator stays
    # register-resident and the epilogue fuses per chunk.
    row_chunk = max(1, min(8, 256 // max(NBW, 1)))

    # (N,C,H,W) -> (H, N, W, C): channels on lanes, batch*width on sublanes.
    x_hnwc = jnp.transpose(x_nchw, (2, 0, 3, 1))

    def fold(w, bn):
        # Fold eval-mode BN scale into the conv output channels; weights are
        # reshaped to [dy, dx*C+ci, co] to match the lane-concatenated dx slots.
        scale = bn['gamma'] / jnp.sqrt(bn['var'] + eps)              # (C,)
        bias = bn['beta'] - bn['mean'] * scale                       # (C,)
        w_s = w * scale[:, None, None, None]                         # (Co,Ci,3,3)
        w_mat = jnp.transpose(w_s, (2, 3, 1, 0)).reshape(3, 3 * C, C)
        return w_mat.astype(jnp.bfloat16), bias.astype(jnp.float32)

    w1_mat, b1 = fold(w1, bn1)
    w2_mat, b2 = fold(w2, bn2)
    w_all = jnp.stack([w1_mat, w2_mat], axis=0)                      # (2,3,3C,C)
    bias = jnp.stack([b1, b2], axis=0)                               # (2,C)

    kernel = functools.partial(_basic_block_kernel, row_chunk=row_chunk)

    def make_call(single_buffer_invariants):
        if single_buffer_invariants:
            # Invariant blocks: no need for double buffering (saves VMEM).
            w_spec = pl.BlockSpec((2, 3, 3 * C, C), lambda n: (0, 0, 0, 0),
                                  pipeline_mode=pl.Buffered(1))
            b_spec = pl.BlockSpec((2, C), lambda n: (0, 0),
                                  pipeline_mode=pl.Buffered(1))
        else:
            w_spec = pl.BlockSpec((2, 3, 3 * C, C), lambda n: (0, 0, 0, 0))
            b_spec = pl.BlockSpec((2, C), lambda n: (0, 0))
        return pl.pallas_call(
            kernel,
            out_shape=jax.ShapeDtypeStruct((H, N, W, C), x_nchw.dtype),
            grid_spec=pltpu.PrefetchScalarGridSpec(
                num_scalar_prefetch=0,
                grid=(N // NB,),
                in_specs=[
                    pl.BlockSpec((H, NB, W, C), lambda n: (0, n, 0, 0)),
                    w_spec,
                    b_spec,
                ],
                out_specs=pl.BlockSpec((H, NB, W, C), lambda n: (0, n, 0, 0)),
                scratch_shapes=[
                    pltpu.VMEM((H + 2, NBW, 3 * C), jnp.bfloat16),   # conv1 in
                    pltpu.VMEM((H + 2, NBW, 3 * C), jnp.bfloat16),   # conv2 in
                ],
            ),
            compiler_params=pltpu.CompilerParams(
                dimension_semantics=("parallel",),
                vmem_limit_bytes=32 * 1024 * 1024),
        )

    try:
        out_hnwc = make_call(True)(x_hnwc, w_all, bias)
    except Exception:
        # Fallback if this JAX build rejects pipeline_mode / Buffered(1).
        out_hnwc = make_call(False)(x_hnwc, w_all, bias)

    return jnp.transpose(out_hnwc, (1, 3, 0, 2))                     # (N,C,H,W)


# ----------------------------- test harness --------------------------------

def _reference(x_nchw, w1, w2, bn1, bn2, eps=1e-5):
    """Pure-JAX f32 reference (lax conv) for correctness checking."""
    def conv(x, w):
        return lax.conv_general_dilated(
            x, w, window_strides=(1, 1), padding=((1, 1), (1, 1)),
            dimension_numbers=('NCHW', 'OIHW', 'NCHW'))

    def bn(x, p):
        s = p['gamma'] / jnp.sqrt(p['var'] + eps)
        b = p['beta'] - p['mean'] * s
        return x * s[None, :, None, None] + b[None, :, None, None]

    out = jnp.maximum(bn(conv(x_nchw, w1), bn1), 0.0)
    out = bn(conv(out, w2), bn2) + x_nchw
    return jnp.maximum(out, 0.0)


def _xavier_uniform(key, shape):
    fan_in = shape[1] * shape[2] * shape[3]
    fan_out = shape[0] * shape[2] * shape[3]
    bound = jnp.sqrt(6.0 / (fan_in + fan_out))
    return jax.random.uniform(key, shape, jnp.float32, -bound, bound)


def _default_bn(C):
    # Module init: bn.weight=1, bn.bias=0; eval running stats mean=0, var=1.
    return dict(gamma=jnp.ones((C,), jnp.float32),
                beta=jnp.zeros((C,), jnp.float32),
                mean=jnp.zeros((C,), jnp.float32),
                var=jnp.ones((C,), jnp.float32))


def _random_bn(key, C):
    k1, k2, k3, k4 = jax.random.split(key, 4)
    return dict(gamma=jax.random.uniform(k1, (C,), jnp.float32, 0.5, 1.5),
                beta=jax.random.uniform(k2, (C,), jnp.float32, -0.1, 0.1),
                mean=jax.random.uniform(k3, (C,), jnp.float32, -0.2, 0.2),
                var=jax.random.uniform(k4, (C,), jnp.float32, 0.5, 1.5))


def _run_case(key, N, C, H, W, bn1, bn2, tol, images_per_step):
    k_x, k_w1, k_w2 = jax.random.split(key, 3)
    x = jax.random.normal(k_x, (N, C, H, W), jnp.float32)
    w1 = _xavier_uniform(k_w1, (C, C, 3, 3))
    w2 = _xavier_uniform(k_w2, (C, C, 3, 3))

    out = jax.block_until_ready(
        resnet_basic_block(x, w1, w2, bn1, bn2,
                           images_per_step=images_per_step))
    ref = _reference(x, w1, w2, bn1, bn2)
    assert out.shape == (N, C, H, W)
    err = float(jnp.max(jnp.abs(out - ref)))
    assert err < tol, (C, images_per_step, err, tol)


if __name__ == "__main__":
    keys = jax.random.split(jax.random.PRNGKey(0), 8)
    N, H, W = 2, 16, 16

    # 1) Spec toy size: C = 4, generic BN stats, one image per grid step.
    C = 4
    _run_case(keys[0], N, C, H, W,
              _random_bn(keys[1], C), _random_bn(keys[2], C), 1.5e-1, 1)

    # 2) Lane-dense config (C = 128), module-default init:
    #    bn2.weight = 0 -> block reduces exactly to relu(x).
    C = 128
    bn2_init = dict(_default_bn(C), gamma=jnp.zeros((C,), jnp.float32))
    _run_case(keys[3], N, C, H, W, _default_bn(C), bn2_init, 1e-4, 1)

    # 3) Lane-dense, generic BN stats, two images packed per grid step
    #    (M = 512 per matmul; bf16 operands vs f32 reference -> loose tol).
    _run_case(keys[4], N, C, H, W,
              _random_bn(keys[5], C), _random_bn(keys[6], C), 2e-1, 2)

    print("KERNEL_OK")
</pallas_src>

<mosaic_0001>
module attributes {stable_mosaic.version = 11 : i64} {
  func.func @_basic_block_kernel(%arg0: i32, %arg1: memref<16x1x16x4xf32, #tpu.memory_space<vmem>>, %arg2: memref<2x3x12x4xbf16, #tpu.memory_space<vmem>>, %arg3: memref<2x4xf32, #tpu.memory_space<vmem>>, %arg4: memref<16x1x16x4xf32, #tpu.memory_space<vmem>>, %arg5: memref<18x16x12xbf16, #tpu.memory_space<vmem>>, %arg6: memref<18x16x12xbf16, #tpu.memory_space<vmem>>) attributes {dimension_semantics = [#tpu.dimension_semantics<parallel>], iteration_bounds = array<i64: 2>, scalar_prefetch = 0 : i64, scratch_operands = 2 : i64, tpu.core_type = #tpu.core_type<tc>, window_params = [{transform_indices = @transform_0, window_bounds = array<i64: 16, 1, 16, 4>}, {pipeline_mode = #tpu.pipeline_mode<synchronous>, transform_indices = @transform_1, window_bounds = array<i64: 2, 3, 12, 4>}, {pipeline_mode = #tpu.pipeline_mode<synchronous>, transform_indices = @transform_2, window_bounds = array<i64: 2, 4>}, {transform_indices = @transform_3, window_bounds = array<i64: 16, 1, 16, 4>}]} {
    %cst = arith.constant 0.000000e+00 : bf16
    %0 = vector.broadcast %cst : bf16 to vector<16x12xbf16>
    %c0 = arith.constant 0 : index
    %c0_0 = arith.constant 0 : index
    %c0_1 = arith.constant 0 : index
    %1 = vector.load %arg5[%c0, %c0_0, %c0_1] : memref<18x16x12xbf16, #tpu.memory_space<vmem>>, vector<1x16x12xbf16>
    %2 = vector.shape_cast %1 : vector<1x16x12xbf16> to vector<16x12xbf16>
    %3 = vector.shape_cast %0 : vector<16x12xbf16> to vector<1x16x12xbf16>
    tpu.vector_store %arg5[%c0, %c0_0, %c0_1], %3 {strides = array<i32>} : memref<18x16x12xbf16, #tpu.memory_space<vmem>>, vector<1x16x12xbf16>,
    %c17 = arith.constant 17 : index
    %c0_2 = arith.constant 0 : index
    %c0_3 = arith.constant 0 : index
    %4 = vector.load %arg5[%c17, %c0_2, %c0_3] : memref<18x16x12xbf16, #tpu.memory_space<vmem>>, vector<1x16x12xbf16>
    %5 = vector.shape_cast %4 : vector<1x16x12xbf16> to vector<16x12xbf16>
    %6 = vector.shape_cast %0 : vector<16x12xbf16> to vector<1x16x12xbf16>
    tpu.vector_store %arg5[%c17, %c0_2, %c0_3], %6 {strides = array<i32>} : memref<18x16x12xbf16, #tpu.memory_space<vmem>>, vector<1x16x12xbf16>,
    %c0_4 = arith.constant 0 : index
    %c0_5 = arith.constant 0 : index
    %c0_6 = arith.constant 0 : index
    %7 = vector.load %arg6[%c0_4, %c0_5, %c0_6] : memref<18x16x12xbf16, #tpu.memory_space<vmem>>, vector<1x16x12xbf16>
    %8 = vector.shape_cast %7 : vector<1x16x12xbf16> to vector<16x12xbf16>
    %9 = vector.shape_cast %0 : vector<16x12xbf16> to vector<1x16x12xbf16>
    tpu.vector_store %arg6[%c0_4, %c0_5, %c0_6], %9 {strides = array<i32>} : memref<18x16x12xbf16, #tpu.memory_space<vmem>>, vector<1x16x12xbf16>,
    %c17_7 = arith.constant 17 : index
    %c0_8 = arith.constant 0 : index
    %c0_9 = arith.constant 0 : index
    %10 = vector.load %arg6[%c17_7, %c0_8, %c0_9] : memref<18x16x12xbf16, #tpu.memory_space<vmem>>, vector<1x16x12xbf16>
    %11 = vector.shape_cast %10 : vector<1x16x12xbf16> to vector<16x12xbf16>
    %12 = vector.shape_cast %0 : vector<16x12xbf16> to vector<1x16x12xbf16>
    tpu.vector_store %arg6[%c17_7, %c0_8, %c0_9], %12 {strides = array<i32>} : memref<18x16x12xbf16, #tpu.memory_space<vmem>>, vector<1x16x12xbf16>,
    %c0_10 = arith.constant 0 : index
    %c0_11 = arith.constant 0 : index
    %c0_12 = arith.constant 0 : index
    %c0_13 = arith.constant 0 : index
    %13 = vector.load %arg1[%c0_10, %c0_11, %c0_12, %c0_13] : memref<16x1x16x4xf32, #tpu.memory_space<vmem>>, vector<16x1x16x4xf32>
    %14 = vector.shape_cast %13 : vector<16x1x16x4xf32> to vector<16x16x4xf32>
    %15 = arith.truncf %14 : vector<16x16x4xf32> to vector<16x16x4xbf16>
    %cst_14 = arith.constant 0.000000e+00 : bf16
    %16 = vector.broadcast %cst_14 : bf16 to vector<16x1x4xbf16>
    %17 = vector.extract_strided_slice %15 {offsets = [0, 0, 0], sizes = [16, 15, 4], strides = [1, 1, 1]} : vector<16x16x4xbf16> to vector<16x15x4xbf16>
    %18 = tpu.concatenate %16, %17 in 1 : vector<16x1x4xbf16>, vector<16x15x4xbf16> -> vector<16x16x4xbf16>
    %c1 = arith.constant 1 : index
    %c0_15 = arith.constant 0 : index
    %c0_16 = arith.constant 0 : index
    %19 = vector.load %arg5[%c1, %c0_15, %c0_16] : memref<18x16x12xbf16, #tpu.memory_space<vmem>>, vector<16x16x4xbf16>
    tpu.vector_store %arg5[%c1, %c0_15, %c0_16], %18 {strides = array<i32>} : memref<18x16x12xbf16, #tpu.memory_space<vmem>>, vector<16x16x4xbf16>,
    %c1_17 = arith.constant 1 : index
    %c0_18 = arith.constant 0 : index
    %c4 = arith.constant 4 : index
    %20 = vector.load %arg5[%c1_17, %c0_18, %c4] : memref<18x16x12xbf16, #tpu.memory_space<vmem>>, vector<16x16x4xbf16>
    tpu.vector_store %arg5[%c1_17, %c0_18, %c4], %15 {strides = array<i32>} : memref<18x16x12xbf16, #tpu.memory_space<vmem>>, vector<16x16x4xbf16>,
    %21 = vector.extract_strided_slice %15 {offsets = [0, 1, 0], sizes = [16, 15, 4], strides = [1, 1, 1]} : vector<16x16x4xbf16> to vector<16x15x4xbf16>
    %22 = tpu.concatenate %21, %16 in 1 : vector<16x15x4xbf16>, vector<16x1x4xbf16> -> vector<16x16x4xbf16>
    %c1_19 = arith.constant 1 : index
    %c0_20 = arith.constant 0 : index
    %c8 = arith.constant 8 : index
    %23 = vector.load %arg5[%c1_19, %c0_20, %c8] : memref<18x16x12xbf16, #tpu.memory_space<vmem>>, vector<16x16x4xbf16>
    tpu.vector_store %arg5[%c1_19, %c0_20, %c8], %22 {strides = array<i32>} : memref<18x16x12xbf16, #tpu.memory_space<vmem>>, vector<16x16x4xbf16>,
    %c0_21 = arith.constant 0 : index
    %c0_22 = arith.constant 0 : index
    %c0_23 = arith.constant 0 : index
    %24 = vector.load %arg5[%c0_21, %c0_22, %c0_23] : memref<18x16x12xbf16, #tpu.memory_space<vmem>>, vector<8x16x12xbf16>
    %25 = vector.shape_cast %24 : vector<8x16x12xbf16> to vector<128x12xbf16>
    %c0_24 = arith.constant 0 : index
    %c0_25 = arith.constant 0 : index
    %c0_26 = arith.constant 0 : index
    %c0_27 = arith.constant 0 : index
    %26 = vector.load %arg2[%c0_24, %c0_25, %c0_26, %c0_27] : memref<2x3x12x4xbf16, #tpu.memory_space<vmem>>, vector<1x1x12x4xbf16>
    %27 = vector.shape_cast %26 : vector<1x1x12x4xbf16> to vector<12x4xbf16>
    %cst_28 = arith.constant dense<0.000000e+00> : vector<128x4xf32>
    %28 = tpu.matmul %25, %27, %cst_28 {dimension_numbers = #tpu.dot_dimension_numbers<[1], [0], [0], [1], [0, 0, 1, 1], [], []>} : vector<128x12xbf16>, vector<12x4xbf16>, vector<128x4xf32> -> vector<128x4xf32>
    %c1_29 = arith.constant 1 : index
    %c0_30 = arith.constant 0 : index
    %c0_31 = arith.constant 0 : index
    %29 = vector.load %arg5[%c1_29, %c0_30, %c0_31] : memref<18x16x12xbf16, #tpu.memory_space<vmem>>, vector<8x16x12xbf16>
    %30 = vector.shape_cast %29 : vector<8x16x12xbf16> to vector<128x12xbf16>
    %c0_32 = arith.constant 0 : index
    %c1_33 = arith.constant 1 : index
    %c0_34 = arith.constant 0 : index
    %c0_35 = arith.constant 0 : index
    %31 = vector.load %arg2[%c0_32, %c1_33, %c0_34, %c0_35] : memref<2x3x12x4xbf16, #tpu.memory_space<vmem>>, vector<1x1x12x4xbf16>
    %32 = vector.shape_cast %31 : vector<1x1x12x4xbf16> to vector<12x4xbf16>
    %cst_36 = arith.constant dense<0.000000e+00> : vector<128x4xf32>
    %33 = tpu.matmul %30, %32, %cst_36 {dimension_numbers = #tpu.dot_dimension_numbers<[1], [0], [0], [1], [0, 0, 1, 1], [], []>} : vector<128x12xbf16>, vector<12x4xbf16>, vector<128x4xf32> -> vector<128x4xf32>
    %34 = arith.addf %28, %33 : vector<128x4xf32>
    %c2 = arith.constant 2 : index
    %c0_37 = arith.constant 0 : index
    %c0_38 = arith.constant 0 : index
    %35 = vector.load %arg5[%c2, %c0_37, %c0_38] : memref<18x16x12xbf16, #tpu.memory_space<vmem>>, vector<8x16x12xbf16>
    %36 = vector.shape_cast %35 : vector<8x16x12xbf16> to vector<128x12xbf16>
    %c0_39 = arith.constant 0 : index
    %c2_40 = arith.constant 2 : index
    %c0_41 = arith.constant 0 : index
    %c0_42 = arith.constant 0 : index
    %37 = vector.load %arg2[%c0_39, %c2_40, %c0_41, %c0_42] : memref<2x3x12x4xbf16, #tpu.memory_space<vmem>>, vector<1x1x12x4xbf16>
    %38 = vector.shape_cast %37 : vector<1x1x12x4xbf16> to vector<12x4xbf16>
    %cst_43 = arith.constant dense<0.000000e+00> : vector<128x4xf32>
    %39 = tpu.matmul %36, %38, %cst_43 {dimension_numbers = #tpu.dot_dimension_numbers<[1], [0], [0], [1], [0, 0, 1, 1], [], []>} : vector<128x12xbf16>, vector<12x4xbf16>, vector<128x4xf32> -> vector<128x4xf32>
    %40 = arith.addf %34, %39 : vector<128x4xf32>
    %c0_44 = arith.constant 0 : index
    %c0_45 = arith.constant 0 : index
    %41 = vector.load %arg3[%c0_44, %c0_45] : memref<2x4xf32, #tpu.memory_space<vmem>>, vector<1x4xf32>
    %42 = vector.broadcast %41 : vector<1x4xf32> to vector<128x4xf32>
    %43 = arith.addf %40, %42 : vector<128x4xf32>
    %cst_46 = arith.constant 0.000000e+00 : f32
    %44 = vector.broadcast %cst_46 : f32 to vector<128x4xf32>
    %45 = arith.maximumf %43, %44 : vector<128x4xf32>
    %46 = vector.shape_cast %45 : vector<128x4xf32> to vector<8x1x16x4xf32>
    %47 = arith.truncf %46 : vector<8x1x16x4xf32> to vector<8x1x16x4xbf16>
    %48 = vector.shape_cast %47 : vector<8x1x16x4xbf16> to vector<8x16x4xbf16>
    %cst_47 = arith.constant 0.000000e+00 : bf16
    %49 = vector.broadcast %cst_47 : bf16 to vector<8x1x4xbf16>
    %50 = vector.extract_strided_slice %48 {offsets = [0, 0, 0], sizes = [8, 15, 4], strides = [1, 1, 1]} : vector<8x16x4xbf16> to vector<8x15x4xbf16>
    %51 = tpu.concatenate %49, %50 in 1 : vector<8x1x4xbf16>, vector<8x15x4xbf16> -> vector<8x16x4xbf16>
    %c1_48 = arith.constant 1 : index
    %c0_49 = arith.constant 0 : index
    %c0_50 = arith.constant 0 : index
    %52 = vector.load %arg6[%c1_48, %c0_49, %c0_50] : memref<18x16x12xbf16, #tpu.memory_space<vmem>>, vector<8x16x4xbf16>
    tpu.vector_store %arg6[%c1_48, %c0_49, %c0_50], %51 {strides = array<i32>} : memref<18x16x12xbf16, #tpu.memory_space<vmem>>, vector<8x16x4xbf16>,
    %c1_51 = arith.constant 1 : index
    %c0_52 = arith.constant 0 : index
    %c4_53 = arith.constant 4 : index
    %53 = vector.load %arg6[%c1_51, %c0_52, %c4_53] : memref<18x16x12xbf16, #tpu.memory_space<vmem>>, vector<8x16x4xbf16>
    tpu.vector_store %arg6[%c1_51, %c0_52, %c4_53], %48 {strides = array<i32>} : memref<18x16x12xbf16, #tpu.memory_space<vmem>>, vector<8x16x4xbf16>,
    %54 = vector.extract_strided_slice %48 {offsets = [0, 1, 0], sizes = [8, 15, 4], strides = [1, 1, 1]} : vector<8x16x4xbf16> to vector<8x15x4xbf16>
    %55 = tpu.concatenate %54, %49 in 1 : vector<8x15x4xbf16>, vector<8x1x4xbf16> -> vector<8x16x4xbf16>
    %c1_54 = arith.constant 1 : index
    %c0_55 = arith.constant 0 : index
    %c8_56 = arith.constant 8 : index
    %56 = vector.load %arg6[%c1_54, %c0_55, %c8_56] : memref<18x16x12xbf16, #tpu.memory_space<vmem>>, vector<8x16x4xbf16>
    tpu.vector_store %arg6[%c1_54, %c0_55, %c8_56], %55 {strides = array<i32>} : memref<18x16x12xbf16, #tpu.memory_space<vmem>>, vector<8x16x4xbf16>,
    %c8_57 = arith.constant 8 : index
    %c0_58 = arith.constant 0 : index
    %c0_59 = arith.constant 0 : index
    %57 = vector.load %arg5[%c8_57, %c0_58, %c0_59] : memref<18x16x12xbf16, #tpu.memory_space<vmem>>, vector<8x16x12xbf16>
    %58 = vector.shape_cast %57 : vector<8x16x12xbf16> to vector<128x12xbf16>
    %c0_60 = arith.constant 0 : index
    %c0_61 = arith.constant 0 : index
    %c0_62 = arith.constant 0 : index
    %c0_63 = arith.constant 0 : index
    %59 = vector.load %arg2[%c0_60, %c0_61, %c0_62, %c0_63] : memref<2x3x12x4xbf16, #tpu.memory_space<vmem>>, vector<1x1x12x4xbf16>
    %60 = vector.shape_cast %59 : vector<1x1x12x4xbf16> to vector<12x4xbf16>
    %cst_64 = arith.constant dense<0.000000e+00> : vector<128x4xf32>
    %61 = tpu.matmul %58, %60, %cst_64 {dimension_numbers = #tpu.dot_dimension_numbers<[1], [0], [0], [1], [0, 0, 1, 1], [], []>} : vector<128x12xbf16>, vector<12x4xbf16>, vector<128x4xf32> -> vector<128x4xf32>
    %c9 = arith.constant 9 : index
    %c0_65 = arith.constant 0 : index
    %c0_66 = arith.constant 0 : index
    %62 = vector.load %arg5[%c9, %c0_65, %c0_66] : memref<18x16x12xbf16, #tpu.memory_space<vmem>>, vector<8x16x12xbf16>
    %63 = vector.shape_cast %62 : vector<8x16x12xbf16> to vector<128x12xbf16>
    %c0_67 = arith.constant 0 : index
    %c1_68 = arith.constant 1 : index
    %c0_69 = arith.constant 0 : index
    %c0_70 = arith.constant 0 : index
    %64 = vector.load %arg2[%c0_67, %c1_68, %c0_69, %c0_70] : memref<2x3x12x4xbf16, #tpu.memory_space<vmem>>, vector<1x1x12x4xbf16>
    %65 = vector.shape_cast %64 : vector<1x1x12x4xbf16> to vector<12x4xbf16>
    %cst_71 = arith.constant dense<0.000000e+00> : vector<128x4xf32>
    %66 = tpu.matmul %63, %65, %cst_71 {dimension_numbers = #tpu.dot_dimension_numbers<[1], [0], [0], [1], [0, 0, 1, 1], [], []>} : vector<128x12xbf16>, vector<12x4xbf16>, vector<128x4xf32> -> vector<128x4xf32>
    %67 = arith.addf %61, %66 : vector<128x4xf32>
    %c10 = arith.constant 10 : index
    %c0_72 = arith.constant 0 : index
    %c0_73 = arith.constant 0 : index
    %68 = vector.load %arg5[%c10, %c0_72, %c0_73] : memref<18x16x12xbf16, #tpu.memory_space<vmem>>, vector<8x16x12xbf16>
    %69 = vector.shape_cast %68 : vector<8x16x12xbf16> to vector<128x12xbf16>
    %c0_74 = arith.constant 0 : index
    %c2_75 = arith.constant 2 : index
    %c0_76 = arith.constant 0 : index
    %c0_77 = arith.constant 0 : index
    %70 = vector.load %arg2[%c0_74, %c2_75, %c0_76, %c0_77] : memref<2x3x12x4xbf16, #tpu.memory_space<vmem>>, vector<1x1x12x4xbf16>
    %71 = vector.shape_cast %70 : vector<1x1x12x4xbf16> to vector<12x4xbf16>
    %cst_78 = arith.constant dense<0.000000e+00> : vector<128x4xf32>
    %72 = tpu.matmul %69, %71, %cst_78 {dimension_numbers = #tpu.dot_dimension_numbers<[1], [0], [0], [1], [0, 0, 1, 1], [], []>} : vector<128x12xbf16>, vector<12x4xbf16>, vector<128x4xf32> -> vector<128x4xf32>
    %73 = arith.addf %67, %72 : vector<128x4xf32>
    %c0_79 = arith.constant 0 : index
    %c0_80 = arith.constant 0 : index
    %74 = vector.load %arg3[%c0_79, %c0_80] : memref<2x4xf32, #tpu.memory_space<vmem>>, vector<1x4xf32>
    %75 = vector.broadcast %74 : vector<1x4xf32> to vector<128x4xf32>
    %76 = arith.addf %73, %75 : vector<128x4xf32>
    %cst_81 = arith.constant 0.000000e+00 : f32
    %77 = vector.broadcast %cst_81 : f32 to vector<128x4xf32>
    %78 = arith.maximumf %76, %77 : vector<128x4xf32>
    %79 = vector.shape_cast %78 : vector<128x4xf32> to vector<8x1x16x4xf32>
    %80 = arith.truncf %79 : vector<8x1x16x4xf32> to vector<8x1x16x4xbf16>
    %81 = vector.shape_cast %80 : vector<8x1x16x4xbf16> to vector<8x16x4xbf16>
    %cst_82 = arith.constant 0.000000e+00 : bf16
    %82 = vector.broadcast %cst_82 : bf16 to vector<8x1x4xbf16>
    %83 = vector.extract_strided_slice %81 {offsets = [0, 0, 0], sizes = [8, 15, 4], strides = [1, 1, 1]} : vector<8x16x4xbf16> to vector<8x15x4xbf16>
    %84 = tpu.concatenate %82, %83 in 1 : vector<8x1x4xbf16>, vector<8x15x4xbf16> -> vector<8x16x4xbf16>
    %c9_83 = arith.constant 9 : index
    %c0_84 = arith.constant 0 : index
    %c0_85 = arith.constant 0 : index
    %85 = vector.load %arg6[%c9_83, %c0_84, %c0_85] : memref<18x16x12xbf16, #tpu.memory_space<vmem>>, vector<8x16x4xbf16>
    tpu.vector_store %arg6[%c9_83, %c0_84, %c0_85], %84 {strides = array<i32>} : memref<18x16x12xbf16, #tpu.memory_space<vmem>>, vector<8x16x4xbf16>,
    %c9_86 = arith.constant 9 : index
    %c0_87 = arith.constant 0 : index
    %c4_88 = arith.constant 4 : index
    %86 = vector.load %arg6[%c9_86, %c0_87, %c4_88] : memref<18x16x12xbf16, #tpu.memory_space<vmem>>, vector<8x16x4xbf16>
    tpu.vector_store %arg6[%c9_86, %c0_87, %c4_88], %81 {strides = array<i32>} : memref<18x16x12xbf16, #tpu.memory_space<vmem>>, vector<8x16x4xbf16>,
    %87 = vector.extract_strided_slice %81 {offsets = [0, 1, 0], sizes = [8, 15, 4], strides = [1, 1, 1]} : vector<8x16x4xbf16> to vector<8x15x4xbf16>
    %88 = tpu.concatenate %87, %82 in 1 : vector<8x15x4xbf16>, vector<8x1x4xbf16> -> vector<8x16x4xbf16>
    %c9_89 = arith.constant 9 : index
    %c0_90 = arith.constant 0 : index
    %c8_91 = arith.constant 8 : index
    %89 = vector.load %arg6[%c9_89, %c0_90, %c8_91] : memref<18x16x12xbf16, #tpu.memory_space<vmem>>, vector<8x16x4xbf16>
    tpu.vector_store %arg6[%c9_89, %c0_90, %c8_91], %88 {strides = array<i32>} : memref<18x16x12xbf16, #tpu.memory_space<vmem>>, vector<8x16x4xbf16>,
    %c0_92 = arith.constant 0 : index
    %c0_93 = arith.constant 0 : index
    %c0_94 = arith.constant 0 : index
    %90 = vector.load %arg6[%c0_92, %c0_93, %c0_94] : memref<18x16x12xbf16, #tpu.memory_space<vmem>>, vector<8x16x12xbf16>
    %91 = vector.shape_cast %90 : vector<8x16x12xbf16> to vector<128x12xbf16>
    %c1_95 = arith.constant 1 : index
    %c0_96 = arith.constant 0 : index
    %c0_97 = arith.constant 0 : index
    %c0_98 = arith.constant 0 : index
    %92 = vector.load %arg2[%c1_95, %c0_96, %c0_97, %c0_98] : memref<2x3x12x4xbf16, #tpu.memory_space<vmem>>, vector<1x1x12x4xbf16>
    %93 = vector.shape_cast %92 : vector<1x1x12x4xbf16> to vector<12x4xbf16>
    %cst_99 = arith.constant dense<0.000000e+00> : vector<128x4xf32>
    %94 = tpu.matmul %91, %93, %cst_99 {dimension_numbers = #tpu.dot_dimension_numbers<[1], [0], [0], [1], [0, 0, 1, 1], [], []>} : vector<128x12xbf16>, vector<12x4xbf16>, vector<128x4xf32> -> vector<128x4xf32>
    %c1_100 = arith.constant 1 : index
    %c0_101 = arith.constant 0 : index
    %c0_102 = arith.constant 0 : index
    %95 = vector.load %arg6[%c1_100, %c0_101, %c0_102] : memref<18x16x12xbf16, #tpu.memory_space<vmem>>, vector<8x16x12xbf16>
    %96 = vector.shape_cast %95 : vector<8x16x12xbf16> to vector<128x12xbf16>
    %c1_103 = arith.constant 1 : index
    %c1_104 = arith.constant 1 : index
    %c0_105 = arith.constant 0 : index
    %c0_106 = arith.constant 0 : index
    %97 = vector.load %arg2[%c1_103, %c1_104, %c0_105, %c0_106] : memref<2x3x12x4xbf16, #tpu.memory_space<vmem>>, vector<1x1x12x4xbf16>
    %98 = vector.shape_cast %97 : vector<1x1x12x4xbf16> to vector<12x4xbf16>
    %cst_107 = arith.constant dense<0.000000e+00> : vector<128x4xf32>
    %99 = tpu.matmul %96, %98, %cst_107 {dimension_numbers = #tpu.dot_dimension_numbers<[1], [0], [0], [1], [0, 0, 1, 1], [], []>} : vector<128x12xbf16>, vector<12x4xbf16>, vector<128x4xf32> -> vector<128x4xf32>
    %100 = arith.addf %94, %99 : vector<128x4xf32>
    %c2_108 = arith.constant 2 : index
    %c0_109 = arith.constant 0 : index
    %c0_110 = arith.constant 0 : index
    %101 = vector.load %arg6[%c2_108, %c0_109, %c0_110] : memref<18x16x12xbf16, #tpu.memory_space<vmem>>, vector<8x16x12xbf16>
    %102 = vector.shape_cast %101 : vector<8x16x12xbf16> to vector<128x12xbf16>
    %c1_111 = arith.constant 1 : index
    %c2_112 = arith.constant 2 : index
    %c0_113 = arith.constant 0 : index
    %c0_114 = arith.constant 0 : index
    %103 = vector.load %arg2[%c1_111, %c2_112, %c0_113, %c0_114] : memref<2x3x12x4xbf16, #tpu.memory_space<vmem>>, vector<1x1x12x4xbf16>
    %104 = vector.shape_cast %103 : vector<1x1x12x4xbf16> to vector<12x4xbf16>
    %cst_115 = arith.constant dense<0.000000e+00> : vector<128x4xf32>
    %105 = tpu.matmul %102, %104, %cst_115 {dimension_numbers = #tpu.dot_dimension_numbers<[1], [0], [0], [1], [0, 0, 1, 1], [], []>} : vector<128x12xbf16>, vector<12x4xbf16>, vector<128x4xf32> -> vector<128x4xf32>
    %106 = arith.addf %100, %105 : vector<128x4xf32>
    %c1_116 = arith.constant 1 : index
    %c0_117 = arith.constant 0 : index
    %107 = vector.load %arg3[%c1_116, %c0_117] : memref<2x4xf32, #tpu.memory_space<vmem>>, vector<1x4xf32>
    %108 = vector.broadcast %107 : vector<1x4xf32> to vector<128x4xf32>
    %109 = arith.addf %106, %108 : vector<128x4xf32>
    %c0_118 = arith.constant 0 : index
    %c0_119 = arith.constant 0 : index
    %c0_120 = arith.constant 0 : index
    %c0_121 = arith.constant 0 : index
    %110 = vector.load %arg1[%c0_118, %c0_119, %c0_120, %c0_121] : memref<16x1x16x4xf32, #tpu.memory_space<vmem>>, vector<8x1x16x4xf32>
    %111 = vector.shape_cast %110 : vector<8x1x16x4xf32> to vector<128x4xf32>
    %112 = arith.addf %109, %111 : vector<128x4xf32>
    %cst_122 = arith.constant 0.000000e+00 : f32
    %113 = vector.broadcast %cst_122 : f32 to vector<128x4xf32>
    %114 = arith.maximumf %112, %113 : vector<128x4xf32>
    %115 = vector.shape_cast %114 : vector<128x4xf32> to vector<8x1x16x4xf32>
    %c0_123 = arith.constant 0 : index
    %c0_124 = arith.constant 0 : index
    %c0_125 = arith.constant 0 : index
    %c0_126 = arith.constant 0 : index
    %116 = vector.load %arg4[%c0_123, %c0_124, %c0_125, %c0_126] : memref<16x1x16x4xf32, #tpu.memory_space<vmem>>, vector<8x1x16x4xf32>
    tpu.vector_store %arg4[%c0_123, %c0_124, %c0_125, %c0_126], %115 {strides = array<i32>} : memref<16x1x16x4xf32, #tpu.memory_space<vmem>>, vector<8x1x16x4xf32>,
    %c8_127 = arith.constant 8 : index
    %c0_128 = arith.constant 0 : index
    %c0_129 = arith.constant 0 : index
    %117 = vector.load %arg6[%c8_127, %c0_128, %c0_129] : memref<18x16x12xbf16, #tpu.memory_space<vmem>>, vector<8x16x12xbf16>
    %118 = vector.shape_cast %117 : vector<8x16x12xbf16> to vector<128x12xbf16>
    %c1_130 = arith.constant 1 : index
    %c0_131 = arith.constant 0 : index
    %c0_132 = arith.constant 0 : index
    %c0_133 = arith.constant 0 : index
    %119 = vector.load %arg2[%c1_130, %c0_131, %c0_132, %c0_133] : memref<2x3x12x4xbf16, #tpu.memory_space<vmem>>, vector<1x1x12x4xbf16>
    %120 = vector.shape_cast %119 : vector<1x1x12x4xbf16> to vector<12x4xbf16>
    %cst_134 = arith.constant dense<0.000000e+00> : vector<128x4xf32>
    %121 = tpu.matmul %118, %120, %cst_134 {dimension_numbers = #tpu.dot_dimension_numbers<[1], [0], [0], [1], [0, 0, 1, 1], [], []>} : vector<128x12xbf16>, vector<12x4xbf16>, vector<128x4xf32> -> vector<128x4xf32>
    %c9_135 = arith.constant 9 : index
    %c0_136 = arith.constant 0 : index
    %c0_137 = arith.constant 0 : index
    %122 = vector.load %arg6[%c9_135, %c0_136, %c0_137] : memref<18x16x12xbf16, #tpu.memory_space<vmem>>, vector<8x16x12xbf16>
    %123 = vector.shape_cast %122 : vector<8x16x12xbf16> to vector<128x12xbf16>
    %c1_138 = arith.constant 1 : index
    %c1_139 = arith.constant 1 : index
    %c0_140 = arith.constant 0 : index
    %c0_141 = arith.constant 0 : index
    %124 = vector.load %arg2[%c1_138, %c1_139, %c0_140, %c0_141] : memref<2x3x12x4xbf16, #tpu.memory_space<vmem>>, vector<1x1x12x4xbf16>
    %125 = vector.shape_cast %124 : vector<1x1x12x4xbf16> to vector<12x4xbf16>
    %cst_142 = arith.constant dense<0.000000e+00> : vector<128x4xf32>
    %126 = tpu.matmul %123, %125, %cst_142 {dimension_numbers = #tpu.dot_dimension_numbers<[1], [0], [0], [1], [0, 0, 1, 1], [], []>} : vector<128x12xbf16>, vector<12x4xbf16>, vector<128x4xf32> -> vector<128x4xf32>
    %127 = arith.addf %121, %126 : vector<128x4xf32>
    %c10_143 = arith.constant 10 : index
    %c0_144 = arith.constant 0 : index
    %c0_145 = arith.constant 0 : index
    %128 = vector.load %arg6[%c10_143, %c0_144, %c0_145] : memref<18x16x12xbf16, #tpu.memory_space<vmem>>, vector<8x16x12xbf16>
    %129 = vector.shape_cast %128 : vector<8x16x12xbf16> to vector<128x12xbf16>
    %c1_146 = arith.constant 1 : index
    %c2_147 = arith.constant 2 : index
    %c0_148 = arith.constant 0 : index
    %c0_149 = arith.constant 0 : index
    %130 = vector.load %arg2[%c1_146, %c2_147, %c0_148, %c0_149] : memref<2x3x12x4xbf16, #tpu.memory_space<vmem>>, vector<1x1x12x4xbf16>
    %131 = vector.shape_cast %130 : vector<1x1x12x4xbf16> to vector<12x4xbf16>
    %cst_150 = arith.constant dense<0.000000e+00> : vector<128x4xf32>
    %132 = tpu.matmul %129, %131, %cst_150 {dimension_numbers = #tpu.dot_dimension_numbers<[1], [0], [0], [1], [0, 0, 1, 1], [], []>} : vector<128x12xbf16>, vector<12x4xbf16>, vector<128x4xf32> -> vector<128x4xf32>
    %133 = arith.addf %127, %132 : vector<128x4xf32>
    %c1_151 = arith.constant 1 : index
    %c0_152 = arith.constant 0 : index
    %134 = vector.load %arg3[%c1_151, %c0_152] : memref<2x4xf32, #tpu.memory_space<vmem>>, vector<1x4xf32>
    %135 = vector.broadcast %134 : vector<1x4xf32> to vector<128x4xf32>
    %136 = arith.addf %133, %135 : vector<128x4xf32>
    %c8_153 = arith.constant 8 : index
    %c0_154 = arith.constant 0 : index
    %c0_155 = arith.constant 0 : index
    %c0_156 = arith.constant 0 : index
    %137 = vector.load %arg1[%c8_153, %c0_154, %c0_155, %c0_156] : memref<16x1x16x4xf32, #tpu.memory_space<vmem>>, vector<8x1x16x4xf32>
    %138 = vector.shape_cast %137 : vector<8x1x16x4xf32> to vector<128x4xf32>
    %139 = arith.addf %136, %138 : vector<128x4xf32>
    %cst_157 = arith.constant 0.000000e+00 : f32
    %140 = vector.broadcast %cst_157 : f32 to vector<128x4xf32>
    %141 = arith.maximumf %139, %140 : vector<128x4xf32>
    %142 = vector.shape_cast %141 : vector<128x4xf32> to vector<8x1x16x4xf32>
    %c8_158 = arith.constant 8 : index
    %c0_159 = arith.constant 0 : index
    %c0_160 = arith.constant 0 : index
    %c0_161 = arith.constant 0 : index
    %143 = vector.load %arg4[%c8_158, %c0_159, %c0_160, %c0_161] : memref<16x1x16x4xf32, #tpu.memory_space<vmem>>, vector<8x1x16x4xf32>
    tpu.vector_store %arg4[%c8_158, %c0_159, %c0_160, %c0_161], %142 {strides = array<i32>} : memref<16x1x16x4xf32, #tpu.memory_space<vmem>>, vector<8x1x16x4xf32>,
    return
  }
  func.func @transform_0(%arg0: i32) -> (i32, i32, i32, i32) {
    %c0_i32 = arith.constant 0 : i32
    %c0_i32_0 = arith.constant 0 : i32
    %c0_i32_1 = arith.constant 0 : i32
    %c0_i32_2 = arith.constant 0 : i32
    return %c0_i32, %arg0, %c0_i32_0, %c0_i32_1 : i32, i32, i32, i32
  }
  func.func @transform_1(%arg0: i32) -> (i32, i32, i32, i32) {
    %c0_i32 = arith.constant 0 : i32
    %c0_i32_0 = arith.constant 0 : i32
    %c0_i32_1 = arith.constant 0 : i32
    %c0_i32_2 = arith.constant 0 : i32
    %c0_i32_3 = arith.constant 0 : i32
    return %c0_i32, %c0_i32_0, %c0_i32_1, %c0_i32_2 : i32, i32, i32, i32
  }
  func.func @transform_2(%arg0: i32) -> (i32, i32) {
    %c0_i32 = arith.constant 0 : i32
    %c0_i32_0 = arith.constant 0 : i32
    %c0_i32_1 = arith.constant 0 : i32
    return %c0_i32, %c0_i32_0 : i32, i32
  }
  func.func @transform_3(%arg0: i32) -> (i32, i32, i32, i32) {
    %c0_i32 = arith.constant 0 : i32
    %c0_i32_0 = arith.constant 0 : i32
    %c0_i32_1 = arith.constant 0 : i32
    %c0_i32_2 = arith.constant 0 : i32
    return %c0_i32, %arg0, %c0_i32_0, %c0_i32_1 : i32, i32, i32, i32
  }
}

module attributes {stable_mosaic.version = 11 : i64} {
  func.func @_basic_block_kernel(%arg0: i32, %arg1: memref<16x1x16x4xf32, #tpu.memory_space<vmem>>, %arg2: memref<2x3x12x4xbf16, #tpu.memory_space<vmem>>, %arg3: memref<2x4xf32, #tpu.memory_space<vmem>>, %arg4: memref<16x1x16x4xf32, #tpu.memory_space<vmem>>, %arg5: memref<18x16x12xbf16, #tpu.memory_space<vmem>>, %arg6: memref<18x16x12xbf16, #tpu.memory_space<vmem>>) attributes {dimension_semantics = [#tpu.dimension_semantics<parallel>], iteration_bounds = array<i64: 2>, scalar_prefetch = 0 : i64, scratch_operands = 2 : i64, tpu.core_type = #tpu.core_type<tc>, window_params = [{transform_indices = @transform_0, window_bounds = array<i64: 16, 1, 16, 4>}, {pipeline_mode = #tpu.pipeline_mode<synchronous>, transform_indices = @transform_1, window_bounds = array<i64: 2, 3, 12, 4>}, {pipeline_mode = #tpu.pipeline_mode<synchronous>, transform_indices = @transform_2, window_bounds = array<i64: 2, 4>}, {transform_indices = @transform_3, window_bounds = array<i64: 16, 1, 16, 4>}]} {
    %cst = arith.constant 0.000000e+00 : bf16
    %0 = vector.broadcast %cst : bf16 to vector<16x12xbf16>
    %c0 = arith.constant 0 : index
    %c0_0 = arith.constant 0 : index
    %c0_1 = arith.constant 0 : index
    %1 = vector.load %arg5[%c0, %c0_0, %c0_1] : memref<18x16x12xbf16, #tpu.memory_space<vmem>>, vector<1x16x12xbf16>
    %2 = vector.shape_cast %1 : vector<1x16x12xbf16> to vector<16x12xbf16>
    %3 = vector.shape_cast %0 : vector<16x12xbf16> to vector<1x16x12xbf16>
    tpu.vector_store %arg5[%c0, %c0_0, %c0_1], %3 {strides = array<i32>} : memref<18x16x12xbf16, #tpu.memory_space<vmem>>, vector<1x16x12xbf16>,
    %c17 = arith.constant 17 : index
    %c0_2 = arith.constant 0 : index
    %c0_3 = arith.constant 0 : index
    %4 = vector.load %arg5[%c17, %c0_2, %c0_3] : memref<18x16x12xbf16, #tpu.memory_space<vmem>>, vector<1x16x12xbf16>
    %5 = vector.shape_cast %4 : vector<1x16x12xbf16> to vector<16x12xbf16>
    %6 = vector.shape_cast %0 : vector<16x12xbf16> to vector<1x16x12xbf16>
    tpu.vector_store %arg5[%c17, %c0_2, %c0_3], %6 {strides = array<i32>} : memref<18x16x12xbf16, #tpu.memory_space<vmem>>, vector<1x16x12xbf16>,
    %c0_4 = arith.constant 0 : index
    %c0_5 = arith.constant 0 : index
    %c0_6 = arith.constant 0 : index
    %7 = vector.load %arg6[%c0_4, %c0_5, %c0_6] : memref<18x16x12xbf16, #tpu.memory_space<vmem>>, vector<1x16x12xbf16>
    %8 = vector.shape_cast %7 : vector<1x16x12xbf16> to vector<16x12xbf16>
    %9 = vector.shape_cast %0 : vector<16x12xbf16> to vector<1x16x12xbf16>
    tpu.vector_store %arg6[%c0_4, %c0_5, %c0_6], %9 {strides = array<i32>} : memref<18x16x12xbf16, #tpu.memory_space<vmem>>, vector<1x16x12xbf16>,
    %c17_7 = arith.constant 17 : index
    %c0_8 = arith.constant 0 : index
    %c0_9 = arith.constant 0 : index
    %10 = vector.load %arg6[%c17_7, %c0_8, %c0_9] : memref<18x16x12xbf16, #tpu.memory_space<vmem>>, vector<1x16x12xbf16>
    %11 = vector.shape_cast %10 : vector<1x16x12xbf16> to vector<16x12xbf16>
    %12 = vector.shape_cast %0 : vector<16x12xbf16> to vector<1x16x12xbf16>
    tpu.vector_store %arg6[%c17_7, %c0_8, %c0_9], %12 {strides = array<i32>} : memref<18x16x12xbf16, #tpu.memory_space<vmem>>, vector<1x16x12xbf16>,
    %c0_10 = arith.constant 0 : index
    %c0_11 = arith.constant 0 : index
    %c0_12 = arith.constant 0 : index
    %c0_13 = arith.constant 0 : index
    %13 = vector.load %arg1[%c0_10, %c0_11, %c0_12, %c0_13] : memref<16x1x16x4xf32, #tpu.memory_space<vmem>>, vector<16x1x16x4xf32>
    %14 = vector.shape_cast %13 : vector<16x1x16x4xf32> to vector<16x16x4xf32>
    %15 = arith.truncf %14 : vector<16x16x4xf32> to vector<16x16x4xbf16>
    %cst_14 = arith.constant 0.000000e+00 : bf16
    %16 = vector.broadcast %cst_14 : bf16 to vector<16x1x4xbf16>
    %17 = vector.extract_strided_slice %15 {offsets = [0, 0, 0], sizes = [16, 15, 4], strides = [1, 1, 1]} : vector<16x16x4xbf16> to vector<16x15x4xbf16>
    %18 = tpu.concatenate %16, %17 in 1 : vector<16x1x4xbf16>, vector<16x15x4xbf16> -> vector<16x16x4xbf16>
    %c1 = arith.constant 1 : index
    %c0_15 = arith.constant 0 : index
    %c0_16 = arith.constant 0 : index
    %19 = vector.load %arg5[%c1, %c0_15, %c0_16] : memref<18x16x12xbf16, #tpu.memory_space<vmem>>, vector<16x16x4xbf16>
    tpu.vector_store %arg5[%c1, %c0_15, %c0_16], %18 {strides = array<i32>} : memref<18x16x12xbf16, #tpu.memory_space<vmem>>, vector<16x16x4xbf16>,
    %c1_17 = arith.constant 1 : index
    %c0_18 = arith.constant 0 : index
    %c4 = arith.constant 4 : index
    %20 = vector.load %arg5[%c1_17, %c0_18, %c4] : memref<18x16x12xbf16, #tpu.memory_space<vmem>>, vector<16x16x4xbf16>
    tpu.vector_store %arg5[%c1_17, %c0_18, %c4], %15 {strides = array<i32>} : memref<18x16x12xbf16, #tpu.memory_space<vmem>>, vector<16x16x4xbf16>,
    %21 = vector.extract_strided_slice %15 {offsets = [0, 1, 0], sizes = [16, 15, 4], strides = [1, 1, 1]} : vector<16x16x4xbf16> to vector<16x15x4xbf16>
    %22 = tpu.concatenate %21, %16 in 1 : vector<16x15x4xbf16>, vector<16x1x4xbf16> -> vector<16x16x4xbf16>
    %c1_19 = arith.constant 1 : index
    %c0_20 = arith.constant 0 : index
    %c8 = arith.constant 8 : index
    %23 = vector.load %arg5[%c1_19, %c0_20, %c8] : memref<18x16x12xbf16, #tpu.memory_space<vmem>>, vector<16x16x4xbf16>
    tpu.vector_store %arg5[%c1_19, %c0_20, %c8], %22 {strides = array<i32>} : memref<18x16x12xbf16, #tpu.memory_space<vmem>>, vector<16x16x4xbf16>,
    %c0_21 = arith.constant 0 : index
    %c0_22 = arith.constant 0 : index
    %c0_23 = arith.constant 0 : index
    %24 = vector.load %arg5[%c0_21, %c0_22, %c0_23] : memref<18x16x12xbf16, #tpu.memory_space<vmem>>, vector<8x16x12xbf16>
    %25 = vector.shape_cast %24 : vector<8x16x12xbf16> to vector<128x12xbf16>
    %c0_24 = arith.constant 0 : index
    %c0_25 = arith.constant 0 : index
    %c0_26 = arith.constant 0 : index
    %c0_27 = arith.constant 0 : index
    %26 = vector.load %arg2[%c0_24, %c0_25, %c0_26, %c0_27] : memref<2x3x12x4xbf16, #tpu.memory_space<vmem>>, vector<1x1x12x4xbf16>
    %27 = vector.shape_cast %26 : vector<1x1x12x4xbf16> to vector<12x4xbf16>
    %cst_28 = arith.constant dense<0.000000e+00> : vector<128x4xf32>
    %28 = tpu.matmul %25, %27, %cst_28 {dimension_numbers = #tpu.dot_dimension_numbers<[1], [0], [0], [1], [0, 0, 1, 1], [], []>} : vector<128x12xbf16>, vector<12x4xbf16>, vector<128x4xf32> -> vector<128x4xf32>
    %c1_29 = arith.constant 1 : index
    %c0_30 = arith.constant 0 : index
    %c0_31 = arith.constant 0 : index
    %29 = vector.load %arg5[%c1_29, %c0_30, %c0_31] : memref<18x16x12xbf16, #tpu.memory_space<vmem>>, vector<8x16x12xbf16>
    %30 = vector.shape_cast %29 : vector<8x16x12xbf16> to vector<128x12xbf16>
    %c0_32 = arith.constant 0 : index
    %c1_33 = arith.constant 1 : index
    %c0_34 = arith.constant 0 : index
    %c0_35 = arith.constant 0 : index
    %31 = vector.load %arg2[%c0_32, %c1_33, %c0_34, %c0_35] : memref<2x3x12x4xbf16, #tpu.memory_space<vmem>>, vector<1x1x12x4xbf16>
    %32 = vector.shape_cast %31 : vector<1x1x12x4xbf16> to vector<12x4xbf16>
    %cst_36 = arith.constant dense<0.000000e+00> : vector<128x4xf32>
    %33 = tpu.matmul %30, %32, %cst_36 {dimension_numbers = #tpu.dot_dimension_numbers<[1], [0], [0], [1], [0, 0, 1, 1], [], []>} : vector<128x12xbf16>, vector<12x4xbf16>, vector<128x4xf32> -> vector<128x4xf32>
    %34 = arith.addf %28, %33 : vector<128x4xf32>
    %c2 = arith.constant 2 : index
    %c0_37 = arith.constant 0 : index
    %c0_38 = arith.constant 0 : index
    %35 = vector.load %arg5[%c2, %c0_37, %c0_38] : memref<18x16x12xbf16, #tpu.memory_space<vmem>>, vector<8x16x12xbf16>
    %36 = vector.shape_cast %35 : vector<8x16x12xbf16> to vector<128x12xbf16>
    %c0_39 = arith.constant 0 : index
    %c2_40 = arith.constant 2 : index
    %c0_41 = arith.constant 0 : index
    %c0_42 = arith.constant 0 : index
    %37 = vector.load %arg2[%c0_39, %c2_40, %c0_41, %c0_42] : memref<2x3x12x4xbf16, #tpu.memory_space<vmem>>, vector<1x1x12x4xbf16>
    %38 = vector.shape_cast %37 : vector<1x1x12x4xbf16> to vector<12x4xbf16>
    %cst_43 = arith.constant dense<0.000000e+00> : vector<128x4xf32>
    %39 = tpu.matmul %36, %38, %cst_43 {dimension_numbers = #tpu.dot_dimension_numbers<[1], [0], [0], [1], [0, 0, 1, 1], [], []>} : vector<128x12xbf16>, vector<12x4xbf16>, vector<128x4xf32> -> vector<128x4xf32>
    %40 = arith.addf %34, %39 : vector<128x4xf32>
    %c0_44 = arith.constant 0 : index
    %c0_45 = arith.constant 0 : index
    %41 = vector.load %arg3[%c0_44, %c0_45] : memref<2x4xf32, #tpu.memory_space<vmem>>, vector<1x4xf32>
    %42 = vector.broadcast %41 : vector<1x4xf32> to vector<128x4xf32>
    %43 = arith.addf %40, %42 : vector<128x4xf32>
    %cst_46 = arith.constant 0.000000e+00 : f32
    %44 = vector.broadcast %cst_46 : f32 to vector<128x4xf32>
    %45 = arith.maximumf %43, %44 : vector<128x4xf32>
    %46 = vector.shape_cast %45 : vector<128x4xf32> to vector<8x1x16x4xf32>
    %47 = arith.truncf %46 : vector<8x1x16x4xf32> to vector<8x1x16x4xbf16>
    %48 = vector.shape_cast %47 : vector<8x1x16x4xbf16> to vector<8x16x4xbf16>
    %cst_47 = arith.constant 0.000000e+00 : bf16
    %49 = vector.broadcast %cst_47 : bf16 to vector<8x1x4xbf16>
    %50 = vector.extract_strided_slice %48 {offsets = [0, 0, 0], sizes = [8, 15, 4], strides = [1, 1, 1]} : vector<8x16x4xbf16> to vector<8x15x4xbf16>
    %51 = tpu.concatenate %49, %50 in 1 : vector<8x1x4xbf16>, vector<8x15x4xbf16> -> vector<8x16x4xbf16>
    %c1_48 = arith.constant 1 : index
    %c0_49 = arith.constant 0 : index
    %c0_50 = arith.constant 0 : index
    %52 = vector.load %arg6[%c1_48, %c0_49, %c0_50] : memref<18x16x12xbf16, #tpu.memory_space<vmem>>, vector<8x16x4xbf16>
    tpu.vector_store %arg6[%c1_48, %c0_49, %c0_50], %51 {strides = array<i32>} : memref<18x16x12xbf16, #tpu.memory_space<vmem>>, vector<8x16x4xbf16>,
    %c1_51 = arith.constant 1 : index
    %c0_52 = arith.constant 0 : index
    %c4_53 = arith.constant 4 : index
    %53 = vector.load %arg6[%c1_51, %c0_52, %c4_53] : memref<18x16x12xbf16, #tpu.memory_space<vmem>>, vector<8x16x4xbf16>
    tpu.vector_store %arg6[%c1_51, %c0_52, %c4_53], %48 {strides = array<i32>} : memref<18x16x12xbf16, #tpu.memory_space<vmem>>, vector<8x16x4xbf16>,
    %54 = vector.extract_strided_slice %48 {offsets = [0, 1, 0], sizes = [8, 15, 4], strides = [1, 1, 1]} : vector<8x16x4xbf16> to vector<8x15x4xbf16>
    %55 = tpu.concatenate %54, %49 in 1 : vector<8x15x4xbf16>, vector<8x1x4xbf16> -> vector<8x16x4xbf16>
    %c1_54 = arith.constant 1 : index
    %c0_55 = arith.constant 0 : index
    %c8_56 = arith.constant 8 : index
    %56 = vector.load %arg6[%c1_54, %c0_55, %c8_56] : memref<18x16x12xbf16, #tpu.memory_space<vmem>>, vector<8x16x4xbf16>
    tpu.vector_store %arg6[%c1_54, %c0_55, %c8_56], %55 {strides = array<i32>} : memref<18x16x12xbf16, #tpu.memory_space<vmem>>, vector<8x16x4xbf16>,
    %c8_57 = arith.constant 8 : index
    %c0_58 = arith.constant 0 : index
    %c0_59 = arith.constant 0 : index
    %57 = vector.load %arg5[%c8_57, %c0_58, %c0_59] : memref<18x16x12xbf16, #tpu.memory_space<vmem>>, vector<8x16x12xbf16>
    %58 = vector.shape_cast %57 : vector<8x16x12xbf16> to vector<128x12xbf16>
    %c0_60 = arith.constant 0 : index
    %c0_61 = arith.constant 0 : index
    %c0_62 = arith.constant 0 : index
    %c0_63 = arith.constant 0 : index
    %59 = vector.load %arg2[%c0_60, %c0_61, %c0_62, %c0_63] : memref<2x3x12x4xbf16, #tpu.memory_space<vmem>>, vector<1x1x12x4xbf16>
    %60 = vector.shape_cast %59 : vector<1x1x12x4xbf16> to vector<12x4xbf16>
    %cst_64 = arith.constant dense<0.000000e+00> : vector<128x4xf32>
    %61 = tpu.matmul %58, %60, %cst_64 {dimension_numbers = #tpu.dot_dimension_numbers<[1], [0], [0], [1], [0, 0, 1, 1], [], []>} : vector<128x12xbf16>, vector<12x4xbf16>, vector<128x4xf32> -> vector<128x4xf32>
    %c9 = arith.constant 9 : index
    %c0_65 = arith.constant 0 : index
    %c0_66 = arith.constant 0 : index
    %62 = vector.load %arg5[%c9, %c0_65, %c0_66] : memref<18x16x12xbf16, #tpu.memory_space<vmem>>, vector<8x16x12xbf16>
    %63 = vector.shape_cast %62 : vector<8x16x12xbf16> to vector<128x12xbf16>
    %c0_67 = arith.constant 0 : index
    %c1_68 = arith.constant 1 : index
    %c0_69 = arith.constant 0 : index
    %c0_70 = arith.constant 0 : index
    %64 = vector.load %arg2[%c0_67, %c1_68, %c0_69, %c0_70] : memref<2x3x12x4xbf16, #tpu.memory_space<vmem>>, vector<1x1x12x4xbf16>
    %65 = vector.shape_cast %64 : vector<1x1x12x4xbf16> to vector<12x4xbf16>
    %cst_71 = arith.constant dense<0.000000e+00> : vector<128x4xf32>
    %66 = tpu.matmul %63, %65, %cst_71 {dimension_numbers = #tpu.dot_dimension_numbers<[1], [0], [0], [1], [0, 0, 1, 1], [], []>} : vector<128x12xbf16>, vector<12x4xbf16>, vector<128x4xf32> -> vector<128x4xf32>
    %67 = arith.addf %61, %66 : vector<128x4xf32>
    %c10 = arith.constant 10 : index
    %c0_72 = arith.constant 0 : index
    %c0_73 = arith.constant 0 : index
    %68 = vector.load %arg5[%c10, %c0_72, %c0_73] : memref<18x16x12xbf16, #tpu.memory_space<vmem>>, vector<8x16x12xbf16>
    %69 = vector.shape_cast %68 : vector<8x16x12xbf16> to vector<128x12xbf16>
    %c0_74 = arith.constant 0 : index
    %c2_75 = arith.constant 2 : index
    %c0_76 = arith.constant 0 : index
    %c0_77 = arith.constant 0 : index
    %70 = vector.load %arg2[%c0_74, %c2_75, %c0_76, %c0_77] : memref<2x3x12x4xbf16, #tpu.memory_space<vmem>>, vector<1x1x12x4xbf16>
    %71 = vector.shape_cast %70 : vector<1x1x12x4xbf16> to vector<12x4xbf16>
    %cst_78 = arith.constant dense<0.000000e+00> : vector<128x4xf32>
    %72 = tpu.matmul %69, %71, %cst_78 {dimension_numbers = #tpu.dot_dimension_numbers<[1], [0], [0], [1], [0, 0, 1, 1], [], []>} : vector<128x12xbf16>, vector<12x4xbf16>, vector<128x4xf32> -> vector<128x4xf32>
    %73 = arith.addf %67, %72 : vector<128x4xf32>
    %c0_79 = arith.constant 0 : index
    %c0_80 = arith.constant 0 : index
    %74 = vector.load %arg3[%c0_79, %c0_80] : memref<2x4xf32, #tpu.memory_space<vmem>>, vector<1x4xf32>
    %75 = vector.broadcast %74 : vector<1x4xf32> to vector<128x4xf32>
    %76 = arith.addf %73, %75 : vector<128x4xf32>
    %cst_81 = arith.constant 0.000000e+00 : f32
    %77 = vector.broadcast %cst_81 : f32 to vector<128x4xf32>
    %78 = arith.maximumf %76, %77 : vector<128x4xf32>
    %79 = vector.shape_cast %78 : vector<128x4xf32> to vector<8x1x16x4xf32>
    %80 = arith.truncf %79 : vector<8x1x16x4xf32> to vector<8x1x16x4xbf16>
    %81 = vector.shape_cast %80 : vector<8x1x16x4xbf16> to vector<8x16x4xbf16>
    %cst_82 = arith.constant 0.000000e+00 : bf16
    %82 = vector.broadcast %cst_82 : bf16 to vector<8x1x4xbf16>
    %83 = vector.extract_strided_slice %81 {offsets = [0, 0, 0], sizes = [8, 15, 4], strides = [1, 1, 1]} : vector<8x16x4xbf16> to vector<8x15x4xbf16>
    %84 = tpu.concatenate %82, %83 in 1 : vector<8x1x4xbf16>, vector<8x15x4xbf16> -> vector<8x16x4xbf16>
    %c9_83 = arith.constant 9 : index
    %c0_84 = arith.constant 0 : index
    %c0_85 = arith.constant 0 : index
    %85 = vector.load %arg6[%c9_83, %c0_84, %c0_85] : memref<18x16x12xbf16, #tpu.memory_space<vmem>>, vector<8x16x4xbf16>
    tpu.vector_store %arg6[%c9_83, %c0_84, %c0_85], %84 {strides = array<i32>} : memref<18x16x12xbf16, #tpu.memory_space<vmem>>, vector<8x16x4xbf16>,
    %c9_86 = arith.constant 9 : index
    %c0_87 = arith.constant 0 : index
    %c4_88 = arith.constant 4 : index
    %86 = vector.load %arg6[%c9_86, %c0_87, %c4_88] : memref<18x16x12xbf16, #tpu.memory_space<vmem>>, vector<8x16x4xbf16>
    tpu.vector_store %arg6[%c9_86, %c0_87, %c4_88], %81 {strides = array<i32>} : memref<18x16x12xbf16, #tpu.memory_space<vmem>>, vector<8x16x4xbf16>,
    %87 = vector.extract_strided_slice %81 {offsets = [0, 1, 0], sizes = [8, 15, 4], strides = [1, 1, 1]} : vector<8x16x4xbf16> to vector<8x15x4xbf16>
    %88 = tpu.concatenate %87, %82 in 1 : vector<8x15x4xbf16>, vector<8x1x4xbf16> -> vector<8x16x4xbf16>
    %c9_89 = arith.constant 9 : index
    %c0_90 = arith.constant 0 : index
    %c8_91 = arith.constant 8 : index
    %89 = vector.load %arg6[%c9_89, %c0_90, %c8_91] : memref<18x16x12xbf16, #tpu.memory_space<vmem>>, vector<8x16x4xbf16>
    tpu.vector_store %arg6[%c9_89, %c0_90, %c8_91], %88 {strides = array<i32>} : memref<18x16x12xbf16, #tpu.memory_space<vmem>>, vector<8x16x4xbf16>,
    %c0_92 = arith.constant 0 : index
    %c0_93 = arith.constant 0 : index
    %c0_94 = arith.constant 0 : index
    %90 = vector.load %arg6[%c0_92, %c0_93, %c0_94] : memref<18x16x12xbf16, #tpu.memory_space<vmem>>, vector<8x16x12xbf16>
    %91 = vector.shape_cast %90 : vector<8x16x12xbf16> to vector<128x12xbf16>
    %c1_95 = arith.constant 1 : index
    %c0_96 = arith.constant 0 : index
    %c0_97 = arith.constant 0 : index
    %c0_98 = arith.constant 0 : index
    %92 = vector.load %arg2[%c1_95, %c0_96, %c0_97, %c0_98] : memref<2x3x12x4xbf16, #tpu.memory_space<vmem>>, vector<1x1x12x4xbf16>
    %93 = vector.shape_cast %92 : vector<1x1x12x4xbf16> to vector<12x4xbf16>
    %cst_99 = arith.constant dense<0.000000e+00> : vector<128x4xf32>
    %94 = tpu.matmul %91, %93, %cst_99 {dimension_numbers = #tpu.dot_dimension_numbers<[1], [0], [0], [1], [0, 0, 1, 1], [], []>} : vector<128x12xbf16>, vector<12x4xbf16>, vector<128x4xf32> -> vector<128x4xf32>
    %c1_100 = arith.constant 1 : index
    %c0_101 = arith.constant 0 : index
    %c0_102 = arith.constant 0 : index
    %95 = vector.load %arg6[%c1_100, %c0_101, %c0_102] : memref<18x16x12xbf16, #tpu.memory_space<vmem>>, vector<8x16x12xbf16>
    %96 = vector.shape_cast %95 : vector<8x16x12xbf16> to vector<128x12xbf16>
    %c1_103 = arith.constant 1 : index
    %c1_104 = arith.constant 1 : index
    %c0_105 = arith.constant 0 : index
    %c0_106 = arith.constant 0 : index
    %97 = vector.load %arg2[%c1_103, %c1_104, %c0_105, %c0_106] : memref<2x3x12x4xbf16, #tpu.memory_space<vmem>>, vector<1x1x12x4xbf16>
    %98 = vector.shape_cast %97 : vector<1x1x12x4xbf16> to vector<12x4xbf16>
    %cst_107 = arith.constant dense<0.000000e+00> : vector<128x4xf32>
    %99 = tpu.matmul %96, %98, %cst_107 {dimension_numbers = #tpu.dot_dimension_numbers<[1], [0], [0], [1], [0, 0, 1, 1], [], []>} : vector<128x12xbf16>, vector<12x4xbf16>, vector<128x4xf32> -> vector<128x4xf32>
    %100 = arith.addf %94, %99 : vector<128x4xf32>
    %c2_108 = arith.constant 2 : index
    %c0_109 = arith.constant 0 : index
    %c0_110 = arith.constant 0 : index
    %101 = vector.load %arg6[%c2_108, %c0_109, %c0_110] : memref<18x16x12xbf16, #tpu.memory_space<vmem>>, vector<8x16x12xbf16>
    %102 = vector.shape_cast %101 : vector<8x16x12xbf16> to vector<128x12xbf16>
    %c1_111 = arith.constant 1 : index
    %c2_112 = arith.constant 2 : index
    %c0_113 = arith.constant 0 : index
    %c0_114 = arith.constant 0 : index
    %103 = vector.load %arg2[%c1_111, %c2_112, %c0_113, %c0_114] : memref<2x3x12x4xbf16, #tpu.memory_space<vmem>>, vector<1x1x12x4xbf16>
    %104 = vector.shape_cast %103 : vector<1x1x12x4xbf16> to vector<12x4xbf16>
    %cst_115 = arith.constant dense<0.000000e+00> : vector<128x4xf32>
    %105 = tpu.matmul %102, %104, %cst_115 {dimension_numbers = #tpu.dot_dimension_numbers<[1], [0], [0], [1], [0, 0, 1, 1], [], []>} : vector<128x12xbf16>, vector<12x4xbf16>, vector<128x4xf32> -> vector<128x4xf32>
    %106 = arith.addf %100, %105 : vector<128x4xf32>
    %c1_116 = arith.constant 1 : index
    %c0_117 = arith.constant 0 : index
    %107 = vector.load %arg3[%c1_116, %c0_117] : memref<2x4xf32, #tpu.memory_space<vmem>>, vector<1x4xf32>
    %108 = vector.broadcast %107 : vector<1x4xf32> to vector<128x4xf32>
    %109 = arith.addf %106, %108 : vector<128x4xf32>
    %c0_118 = arith.constant 0 : index
    %c0_119 = arith.constant 0 : index
    %c0_120 = arith.constant 0 : index
    %c0_121 = arith.constant 0 : index
    %110 = vector.load %arg1[%c0_118, %c0_119, %c0_120, %c0_121] : memref<16x1x16x4xf32, #tpu.memory_space<vmem>>, vector<8x1x16x4xf32>
    %111 = vector.shape_cast %110 : vector<8x1x16x4xf32> to vector<128x4xf32>
    %112 = arith.addf %109, %111 : vector<128x4xf32>
    %cst_122 = arith.constant 0.000000e+00 : f32
    %113 = vector.broadcast %cst_122 : f32 to vector<128x4xf32>
    %114 = arith.maximumf %112, %113 : vector<128x4xf32>
    %115 = vector.shape_cast %114 : vector<128x4xf32> to vector<8x1x16x4xf32>
    %c0_123 = arith.constant 0 : index
    %c0_124 = arith.constant 0 : index
    %c0_125 = arith.constant 0 : index
    %c0_126 = arith.constant 0 : index
    %116 = vector.load %arg4[%c0_123, %c0_124, %c0_125, %c0_126] : memref<16x1x16x4xf32, #tpu.memory_space<vmem>>, vector<8x1x16x4xf32>
    tpu.vector_store %arg4[%c0_123, %c0_124, %c0_125, %c0_126], %115 {strides = array<i32>} : memref<16x1x16x4xf32, #tpu.memory_space<vmem>>, vector<8x1x16x4xf32>,
    %c8_127 = arith.constant 8 : index
    %c0_128 = arith.constant 0 : index
    %c0_129 = arith.constant 0 : index
    %117 = vector.load %arg6[%c8_127, %c0_128, %c0_129] : memref<18x16x12xbf16, #tpu.memory_space<vmem>>, vector<8x16x12xbf16>
    %118 = vector.shape_cast %117 : vector<8x16x12xbf16> to vector<128x12xbf16>
    %c1_130 = arith.constant 1 : index
    %c0_131 = arith.constant 0 : index
    %c0_132 = arith.constant 0 : index
    %c0_133 = arith.constant 0 : index
    %119 = vector.load %arg2[%c1_130, %c0_131, %c0_132, %c0_133] : memref<2x3x12x4xbf16, #tpu.memory_space<vmem>>, vector<1x1x12x4xbf16>
    %120 = vector.shape_cast %119 : vector<1x1x12x4xbf16> to vector<12x4xbf16>
    %cst_134 = arith.constant dense<0.000000e+00> : vector<128x4xf32>
    %121 = tpu.matmul %118, %120, %cst_134 {dimension_numbers = #tpu.dot_dimension_numbers<[1], [0], [0], [1], [0, 0, 1, 1], [], []>} : vector<128x12xbf16>, vector<12x4xbf16>, vector<128x4xf32> -> vector<128x4xf32>
    %c9_135 = arith.constant 9 : index
    %c0_136 = arith.constant 0 : index
    %c0_137 = arith.constant 0 : index
    %122 = vector.load %arg6[%c9_135, %c0_136, %c0_137] : memref<18x16x12xbf16, #tpu.memory_space<vmem>>, vector<8x16x12xbf16>
    %123 = vector.shape_cast %122 : vector<8x16x12xbf16> to vector<128x12xbf16>
    %c1_138 = arith.constant 1 : index
    %c1_139 = arith.constant 1 : index
    %c0_140 = arith.constant 0 : index
    %c0_141 = arith.constant 0 : index
    %124 = vector.load %arg2[%c1_138, %c1_139, %c0_140, %c0_141] : memref<2x3x12x4xbf16, #tpu.memory_space<vmem>>, vector<1x1x12x4xbf16>
    %125 = vector.shape_cast %124 : vector<1x1x12x4xbf16> to vector<12x4xbf16>
    %cst_142 = arith.constant dense<0.000000e+00> : vector<128x4xf32>
    %126 = tpu.matmul %123, %125, %cst_142 {dimension_numbers = #tpu.dot_dimension_numbers<[1], [0], [0], [1], [0, 0, 1, 1], [], []>} : vector<128x12xbf16>, vector<12x4xbf16>, vector<128x4xf32> -> vector<128x4xf32>
    %127 = arith.addf %121, %126 : vector<128x4xf32>
    %c10_143 = arith.constant 10 : index
    %c0_144 = arith.constant 0 : index
    %c0_145 = arith.constant 0 : index
    %128 = vector.load %arg6[%c10_143, %c0_144, %c0_145] : memref<18x16x12xbf16, #tpu.memory_space<vmem>>, vector<8x16x12xbf16>
    %129 = vector.shape_cast %128 : vector<8x16x12xbf16> to vector<128x12xbf16>
    %c1_146 = arith.constant 1 : index
    %c2_147 = arith.constant 2 : index
    %c0_148 = arith.constant 0 : index
    %c0_149 = arith.constant 0 : index
    %130 = vector.load %arg2[%c1_146, %c2_147, %c0_148, %c0_149] : memref<2x3x12x4xbf16, #tpu.memory_space<vmem>>, vector<1x1x12x4xbf16>
    %131 = vector.shape_cast %130 : vector<1x1x12x4xbf16> to vector<12x4xbf16>
    %cst_150 = arith.constant dense<0.000000e+00> : vector<128x4xf32>
    %132 = tpu.matmul %129, %131, %cst_150 {dimension_numbers = #tpu.dot_dimension_numbers<[1], [0], [0], [1], [0, 0, 1, 1], [], []>} : vector<128x12xbf16>, vector<12x4xbf16>, vector<128x4xf32> -> vector<128x4xf32>
    %133 = arith.addf %127, %132 : vector<128x4xf32>
    %c1_151 = arith.constant 1 : index
    %c0_152 = arith.constant 0 : index
    %134 = vector.load %arg3[%c1_151, %c0_152] : memref<2x4xf32, #tpu.memory_space<vmem>>, vector<1x4xf32>
    %135 = vector.broadcast %134 : vector<1x4xf32> to vector<128x4xf32>
    %136 = arith.addf %133, %135 : vector<128x4xf32>
    %c8_153 = arith.constant 8 : index
    %c0_154 = arith.constant 0 : index
    %c0_155 = arith.constant 0 : index
    %c0_156 = arith.constant 0 : index
    %137 = vector.load %arg1[%c8_153, %c0_154, %c0_155, %c0_156] : memref<16x1x16x4xf32, #tpu.memory_space<vmem>>, vector<8x1x16x4xf32>
    %138 = vector.shape_cast %137 : vector<8x1x16x4xf32> to vector<128x4xf32>
    %139 = arith.addf %136, %138 : vector<128x4xf32>
    %cst_157 = arith.constant 0.000000e+00 : f32
    %140 = vector.broadcast %cst_157 : f32 to vector<128x4xf32>
    %141 = arith.maximumf %139, %140 : vector<128x4xf32>
    %142 = vector.shape_cast %141 : vector<128x4xf32> to vector<8x1x16x4xf32>
    %c8_158 = arith.constant 8 : index
    %c0_159 = arith.constant 0 : index
    %c0_160 = arith.constant 0 : index
    %c0_161 = arith.constant 0 : index
    %143 = vector.load %arg4[%c8_158, %c0_159, %c0_160, %c0_161] : memref<16x1x16x4xf32, #tpu.memory_space<vmem>>, vector<8x1x16x4xf32>
    tpu.vector_store %arg4[%c8_158, %c0_159, %c0_160, %c0_161], %142 {strides = array<i32>} : memref<16x1x16x4xf32, #tpu.memory_space<vmem>>, vector<8x1x16x4xf32>,
    return
  }
  func.func @transform_0(%arg0: i32) -> (i32, i32, i32, i32) {
    %c0_i32 = arith.constant 0 : i32
    %c0_i32_0 = arith.constant 0 : i32
    %c0_i32_1 = arith.constant 0 : i32
    %c0_i32_2 = arith.constant 0 : i32
    return %c0_i32, %arg0, %c0_i32_0, %c0_i32_1 : i32, i32, i32, i32
  }
  func.func @transform_1(%arg0: i32) -> (i32, i32, i32, i32) {
    %c0_i32 = arith.constant 0 : i32
    %c0_i32_0 = arith.constant 0 : i32
    %c0_i32_1 = arith.constant 0 : i32
    %c0_i32_2 = arith.constant 0 : i32
    %c0_i32_3 = arith.constant 0 : i32
    return %c0_i32, %c0_i32_0, %c0_i32_1, %c0_i32_2 : i32, i32, i32, i32
  }
  func.func @transform_2(%arg0: i32) -> (i32, i32) {
    %c0_i32 = arith.constant 0 : i32
    %c0_i32_0 = arith.constant 0 : i32
    %c0_i32_1 = arith.constant 0 : i32
    return %c0_i32, %c0_i32_0 : i32, i32
  }
  func.func @transform_3(%arg0: i32) -> (i32, i32, i32, i32) {
    %c0_i32 = arith.constant 0 : i32
    %c0_i32_0 = arith.constant 0 : i32
    %c0_i32_1 = arith.constant 0 : i32
    %c0_i32_2 = arith.constant 0 : i32
    return %c0_i32, %arg0, %c0_i32_0, %c0_i32_1 : i32, i32, i32, i32
  }
}

</mosaic_0001>

<bundles_post_ra>
// kernel: tpu_custom_call.1
= control target key start
LH: loop header
LB: loop body
LE: loop exit
PB: predicated region body
PF: predicated region fallthrough
CT: control target
= control target key end

     0   :  { %s4120_s12 = smov 0   ;;  %s4122_s13 = smov 0   ;;  %s5470_s0 = inlined_call_operand.vmem [shape: f32[16,2,16,4], index: 0, kind: input, shape index: {}]   ;;  %s5471_s1 = inlined_call_operand.vmem [shape: bf16[2,3,12,4], index: 1, kind: input, shape index: {}]   ;;  %s5472_s2 = inlined_call_operand.vmem [shape: f32[2,4], index: 2, kind: input, shape index: {}]   ;;  %s5473_s3 = inlined_call_operand.vmem [shape: f32[16,2,16,4], index: 3, kind: output, shape index: {}]  }
   0x1   :  { %s4124_s14 = smov 0  }
   0x2 LB: > { %s3389_s15 = sadd.s32 4294967295, %s4095_s14   ;;  %s4137_s16 = sadd.s32 1, %s4095_s14   ;;  %s4095_s14 = sphi %s4124_s14, %s5485_s14   ;;  %s4091_s13 = sphi %s4122_s13, %s5484_s13   ;;  %s4087_s12 = sphi %s4120_s12, %s5483_s12  }
   0x3   : > { %s17_s17 = ssub.s32 %s4095_s14, %s4137_s16  ;;  %s20_s18 = sadd.s32 1, %s4091_s13 }
   0x4   : > { %p18_p0 = scmp.eq.s32.totalorder %s17_s17, 0  ;;  %p27_p1 = scmp.ne.s32.totalorder %s4091_s13, %s4087_s12 }
   0x5   : > { %p28_p2 = scmp.eq.s32.totalorder %s4095_s14, 0  ;;  %p99_p3 = scmp.eq.s32.totalorder %s3389_s15, 1 }
   0x6   : > { %s4148_s19 = scalar_select %p18_p0, %s4091_s13, %s20_s18  }
   0x7   : > { %p29_p4 = por %p28_p2, %p27_p1  ;;  %p4150_p5 = por %p99_p3, %p27_p1 }
   0x8   : > { %p3392_p6 = scmp.ge.s32.totalorder %s4095_s14, 2 }
   0xa   : > { %127 = sbr.rel (%p3392_p6) target bundleno = 37 (0x25), region = 24 }
  0x11   : > { %130 = sbr.rel (!%p29_p4) target bundleno = 37 (0x25), region = 28  ;;  %s132_s21 = sand.u32 (%p29_p4), 1, %s4091_s13  }
  0x12   : > { %s3568_s22 = sshll.u32 (%p29_p4), %s4095_s14, 4  ;;  %s3393_s23 = sshll.u32 (%p29_p4), %s132_s21, 8 }
  0x13   : > { %s4160_s26 = scalar_lea.vmem (%p29_p4), %s5470_s0, %s3568_s22  ;;  %s4165_s27 = scalar_lea.vmem (%p29_p4), [#allocation4], %s3393_s23 }
  0x14   : > { %v227_v0 = vld [vmem:[%s4160_s26] sm:$0xff] (%p29_p4)  ;;  %v229_v1 = vld [vmem:[%s4160_s26 + $0x8] sm:$0xff] (%p29_p4) }
  0x15   : > { %v231_v2 = vld [vmem:[%s4160_s26 + $0x20] sm:$0xff] (%p29_p4)  ;;  %228 = vst [vmem:[%s4165_s27] sm:$0xff] (%p29_p4), %v227_v0  ;;  %230 = vst [vmem:[%s4165_s27 + $0x8] sm:$0xff] (%p29_p4), %v229_v1  ;;  %v233_v3 = vld [vmem:[%s4160_s26 + $0x28] sm:$0xff] (%p29_p4) }
  0x16   : > { %232 = vst [vmem:[%s4165_s27 + $0x10] sm:$0xff] (%p29_p4), %v231_v2  ;;  %v235_v4 = vld [vmem:[%s4160_s26 + $0x40] sm:$0xff] (%p29_p4)  ;;  %v237_v5 = vld [vmem:[%s4160_s26 + $0x48] sm:$0xff] (%p29_p4)  ;;  %234 = vst [vmem:[%s4165_s27 + $0x18] sm:$0xff] (%p29_p4), %v233_v3 }
  0x17   : > { %236 = vst [vmem:[%s4165_s27 + $0x20] sm:$0xff] (%p29_p4), %v235_v4  ;;  %238 = vst [vmem:[%s4165_s27 + $0x28] sm:$0xff] (%p29_p4), %v237_v5  ;;  %v239_v6 = vld [vmem:[%s4160_s26 + $0x60] sm:$0xff] (%p29_p4)  ;;  %v241_v7 = vld [vmem:[%s4160_s26 + $0x68] sm:$0xff] (%p29_p4) }
  0x18   : > { %v243_v8 = vld [vmem:[%s4160_s26 + $0x80] sm:$0xff]  ;;  %240 = vst [vmem:[%s4165_s27 + $0x30] sm:$0xff] %v239_v6  ;;  %242 = vst [vmem:[%s4165_s27 + $0x38] sm:$0xff] %v241_v7  ;;  %v245_v9 = vld [vmem:[%s4160_s26 + $0x88] sm:$0xff] }
  0x19   : > { %244 = vst [vmem:[%s4165_s27 + $0x40] sm:$0xff] %v243_v8  ;;  %v247_v10 = vld [vmem:[%s4160_s26 + $0xa0] sm:$0xff]  ;;  %v249_v11 = vld [vmem:[%s4160_s26 + $0xa8] sm:$0xff]  ;;  %246 = vst [vmem:[%s4165_s27 + $0x48] sm:$0xff] %v245_v9 }
  0x1a   : > { %248 = vst [vmem:[%s4165_s27 + $0x50] sm:$0xff] %v247_v10  ;;  %250 = vst [vmem:[%s4165_s27 + $0x58] sm:$0xff] %v249_v11  ;;  %v251_v12 = vld [vmem:[%s4160_s26 + $0xc0] sm:$0xff]  ;;  %v253_v13 = vld [vmem:[%s4160_s26 + $0xc8] sm:$0xff] }
  0x1b   : > { %v255_v14 = vld [vmem:[%s4160_s26 + $0xe0] sm:$0xff]  ;;  %252 = vst [vmem:[%s4165_s27 + $0x60] sm:$0xff] %v251_v12  ;;  %254 = vst [vmem:[%s4165_s27 + $0x68] sm:$0xff] %v253_v13  ;;  %v257_v15 = vld [vmem:[%s4160_s26 + $0xe8] sm:$0xff] }
  0x1c   : > { %256 = vst [vmem:[%s4165_s27 + $0x70] sm:$0xff] %v255_v14  ;;  %v259_v16 = vld [vmem:[%s4160_s26 + $0x100] sm:$0xff]  ;;  %v261_v17 = vld [vmem:[%s4160_s26 + $0x108] sm:$0xff]  ;;  %258 = vst [vmem:[%s4165_s27 + $0x78] sm:$0xff] %v257_v15 }
  0x1d   : > { %260 = vst [vmem:[%s4165_s27 + $0x80] sm:$0xff] %v259_v16  ;;  %262 = vst [vmem:[%s4165_s27 + $0x88] sm:$0xff] %v261_v17  ;;  %v263_v18 = vld [vmem:[%s4160_s26 + $0x120] sm:$0xff]  ;;  %v265_v19 = vld [vmem:[%s4160_s26 + $0x128] sm:$0xff] }
  0x1e   : > { %v267_v20 = vld [vmem:[%s4160_s26 + $0x140] sm:$0xff]  ;;  %264 = vst [vmem:[%s4165_s27 + $0x90] sm:$0xff] %v263_v18  ;;  %266 = vst [vmem:[%s4165_s27 + $0x98] sm:$0xff] %v265_v19  ;;  %v269_v21 = vld [vmem:[%s4160_s26 + $0x148] sm:$0xff] }
  0x1f   : > { %268 = vst [vmem:[%s4165_s27 + $0xa0] sm:$0xff] %v267_v20  ;;  %v271_v22 = vld [vmem:[%s4160_s26 + $0x160] sm:$0xff]  ;;  %v273_v23 = vld [vmem:[%s4160_s26 + $0x168] sm:$0xff]  ;;  %270 = vst [vmem:[%s4165_s27 + $0xa8] sm:$0xff] %v269_v21 }
  0x20   : > { %272 = vst [vmem:[%s4165_s27 + $0xb0] sm:$0xff] %v271_v22  ;;  %274 = vst [vmem:[%s4165_s27 + $0xb8] sm:$0xff] %v273_v23  ;;  %v275_v24 = vld [vmem:[%s4160_s26 + $0x180] sm:$0xff]  ;;  %v277_v25 = vld [vmem:[%s4160_s26 + $0x188] sm:$0xff] }
  0x21   : > { %v279_v26 = vld [vmem:[%s4160_s26 + $0x1a0] sm:$0xff]  ;;  %276 = vst [vmem:[%s4165_s27 + $0xc0] sm:$0xff] %v275_v24  ;;  %278 = vst [vmem:[%s4165_s27 + $0xc8] sm:$0xff] %v277_v25  ;;  %v281_v27 = vld [vmem:[%s4160_s26 + $0x1a8] sm:$0xff] }
  0x22   : > { %280 = vst [vmem:[%s4165_s27 + $0xd0] sm:$0xff] %v279_v26  ;;  %v283_v28 = vld [vmem:[%s4160_s26 + $0x1c0] sm:$0xff]  ;;  %v285_v29 = vld [vmem:[%s4160_s26 + $0x1c8] sm:$0xff]  ;;  %282 = vst [vmem:[%s4165_s27 + $0xd8] sm:$0xff] %v281_v27 }
  0x23   : > { %284 = vst [vmem:[%s4165_s27 + $0xe0] sm:$0xff] %v283_v28  ;;  %286 = vst [vmem:[%s4165_s27 + $0xe8] sm:$0xff] %v285_v29  ;;  %v287_v30 = vld [vmem:[%s4160_s26 + $0x1e0] sm:$0xff]  ;;  %v289_v31 = vld [vmem:[%s4160_s26 + $0x1e8] sm:$0xff] }
  0x24   : > { %288 = vst [vmem:[%s4165_s27 + $0xf0] sm:$0xff] %v287_v30  ;;  %290 = vst [vmem:[%s4165_s27 + $0xf8] sm:$0xff] %v289_v31 }
  0x25 PF: > { %p3396_p7 = scmp.ge.s32.totalorder %s4095_s14, 1  ;;  %p295_p8 = scmp.lt.s32.totalorder %s4095_s14, 3 }
  0x27   : > { %p296_p9 = pnand %p3396_p7, %p295_p8 }
  0x28   : > { %s302_s28 = sand.u32 (!%p296_p9), 1, %s4087_s12   ;;  %vm674_vm0 = vcmask (!%p296_p9), 1047552   ;;  %s4097_s4 = smov (!%p296_p9), 4   ;;  %vm675_vm1 = vsmask.f32 (!%p296_p9), 7424  ;;  %vm508_vm3 = vcmask (!%p296_p9), 1040384  }
  0x29   : > { %299 = sbr.rel (%p296_p9) target bundleno = 974 (0x3ce), region = 66  ;;  %s4231_s29 = sshll.u32 (!%p296_p9), %s302_s28, 8  ;;  %vm4282_vm2 = vmand (!%p296_p9), %vm674_vm0, %vm675_vm1  ;;  %vm509_vm4 = vsmask.f32 (!%p296_p9), 256  ;;  %vm528_vm5 = vcmask (!%p296_p9), 31744   ;;  %vm824_vm7 = vcmask (!%p296_p9), 1045504  }
  0x2a   : > { %s4234_s30 = scalar_lea.vmem (!%p296_p9), [#allocation4], %s4231_s29  ;;  %s4098_s5 = smov (!%p296_p9), 8   ;;  %vm4418_vm6 = vmand (!%p296_p9), %vm508_vm3, %vm509_vm4  ;;  %vm325_vm8 = vcmask (!%p296_p9), 97280   ;;  %vm609_vm9 = vcmask (!%p296_p9), 64544   ;;  %vm757_vm10 = vcmask (!%p296_p9), 97344  }
  0x2b   : > { %v334_v32 = vld [vmem:[%s4234_s30 + $0x10] sm:$0xff] (!%p296_p9)  ;;  %v335_v33 = vld [vmem:[%s4234_s30 + $0x18] sm:$0xff] (!%p296_p9)  ;;  %v332_v34 = vld [vmem:[%s4234_s30] sm:$0xff] (!%p296_p9)  ;;  %s5273_s21 = scalar_lea.vmem (!%p296_p9), [#allocation5], %s4231_s29 }
  0x2c   : > { %v4239_v35 = vpack.c.bf16 (!%p296_p9), %v335_v33, %v334_v32  ;;  %v333_v36 = vld [vmem:[%s4234_s30 + $0x8] sm:$0xff] (!%p296_p9)  ;;  %v350_v37 = vld [vmem:[%s4234_s30 + $0x90] sm:$0xff] (!%p296_p9)  ;;  %v351_v38 = vld [vmem:[%s4234_s30 + $0x98] sm:$0xff] (!%p296_p9) }
  0x2d   : > { %v4244_v39 = vpack.c.bf16 (!%p296_p9), %v333_v36, %v332_v34  ;;  %v4246_v40 = vpack.c.bf16 (!%p296_p9), %v351_v38, %v350_v37  ;;  %v348_v41 = vld [vmem:[%s4234_s30 + $0x80] sm:$0xff] (!%p296_p9)  ;;  %v349_v42 = vld [vmem:[%s4234_s30 + $0x88] sm:$0xff] (!%p296_p9)  ;;  %v354_v57 = vld [vmem:[%s4234_s30 + $0xb0] sm:$0xff] (!%p296_p9) }
  0x2e   : > { %563 = vrot.lane.b32.xlu1 (!%p296_p9), %v4239_v35, %s4097_s4  ;;  %v4252_v43 = vpack.c.bf16 (!%p296_p9), %v349_v42, %v348_v41  ;;  %v388_v44 = vshrl.u32 (!%p296_p9), %v4239_v35, 16  ;;  %v391_v45 = vshll.u32 (!%p296_p9), %v4239_v35, 16  ;;  %v352_v46 = vld [vmem:[%s4234_s30 + $0xa0] sm:$0xff] (!%p296_p9)  ;;  %v353_v50 = vld [vmem:[%s4234_s30 + $0xa8] sm:$0xff] (!%p296_p9)  ;;  %v355_v58 = vld [vmem:[%s4234_s30 + $0xb8] sm:$0xff] (!%p296_p9) }
  0x2f   : > { %561 = vrot.lane.b32.xlu0 (!%p296_p9), %v4244_v39, %s4097_s4  ;;  %v381_v47 = vshrl.u32 (!%p296_p9), %v4244_v39, 16  ;;  %v384_v48 = vshll.u32 (!%p296_p9), %v4244_v39, 16  ;;  %v447_v49 = vshll.u32 (!%p296_p9), %v4246_v40, 16  ;;  %v336_v51 = vld [vmem:[%s4234_s30 + $0x20] sm:$0xff] (!%p296_p9)  ;;  %v337_v52 = vld [vmem:[%s4234_s30 + $0x28] sm:$0xff] (!%p296_p9)  ;;  %v444_v55 = vshrl.u32 (!%p296_p9), %v4246_v40, 16 }
  0x30   : > { %v437_v53 = vshrl.u32 %v4252_v43, 16  ;;  %v440_v54 = vshll.u32 %v4252_v43, 16  ;;  %v628_v56 = vrot.slane %v391_v45, 1  ;;  %v4286_v63 = vpack.c.bf16 %v353_v50, %v352_v46  ;;  %v338_v0 = vld [vmem:[%s4234_s30 + $0x30] sm:$0xff]  ;;  %v339_v1 = vld [vmem:[%s4234_s30 + $0x38] sm:$0xff]  ;;  %v356_v12 = vld [vmem:[%s4234_s30 + $0xc0] sm:$0xff] }
  0x31   : > { %v626_v59 = vrot.slane %v384_v48, 1  ;;  %v644_v60 = vrot.slane %v447_v49, 1  ;;  %v4292_v3 = vpack.c.bf16 %v337_v52, %v336_v51  ;;  %v4294_v4 = vpack.c.bf16 %v355_v58, %v354_v57  ;;  %v357_v13 = vld [vmem:[%s4234_s30 + $0xc8] sm:$0xff]  ;;  %v340_v16 = vld [vmem:[%s4234_s30 + $0x40] sm:$0xff]  ;;  %v358_v26 = vld [vmem:[%s4234_s30 + $0xd0] sm:$0xff]  ;;  %s3569_s29 = sshll.u32 (%p4150_p5), %s3389_s15, 4 }
  0x32   : > { %579 = vrot.lane.b32.xlu1 %v4246_v40, %s4097_s4  ;;  %v642_v61 = vrot.slane %v440_v54, 1  ;;  %v629_v7 = vor.u32 %v628_v56, %v388_v44  ;;  %v4298_v9 = vpack.c.bf16 %v339_v1, %v338_v0  ;;  %v454_v11 = vshll.u32 %v4286_v63, 16  ;;  %v341_v17 = vld [vmem:[%s4234_s30 + $0x48] sm:$0xff]  ;;  %v359_v27 = vld [vmem:[%s4234_s30 + $0xd8] sm:$0xff]  ;;  %v342_v34 = vld [vmem:[%s4234_s30 + $0x50] sm:$0xff]  ;;  %s5397_s20 = scalar_lea.vmem (%p4150_p5), %s5473_s3, %s3569_s29 }
  0x33   : > { %577 = vrot.lane.b32.xlu0 %v4252_v43, %s4097_s4  ;;  %v627_v2 = vor.u32 %v626_v59, %v381_v47  ;;  %v645_v6 = vor.u32 %v644_v60, %v444_v55  ;;  %v398_v14 = vshll.u32 %v4292_v3, 16  ;;  %v461_v15 = vshll.u32 %v4294_v4, 16  ;;  %v343_v36 = vld [vmem:[%s4234_s30 + $0x58] sm:$0xff]  ;;  %v360_v56 = vld [vmem:[%s4234_s30 + $0xe0] sm:$0xff]  ;;  %v361_v57 = vld [vmem:[%s4234_s30 + $0xe8] sm:$0xff] }
  0x34   : > { %v643_v5 = vor.u32 %v642_v61, %v437_v53  ;;  %v678_v19 = vsel %vm4282_vm2, %v629_v7, 0  ;;  %v4315_v20 = vrot.slane %v388_v44, 7  ;;  %v405_v21 = vshll.u32 %v4298_v9, 16  ;;  %v344_v60 = vld [vmem:[%s4234_s30 + $0x60] sm:$0xff] }
  0x35   : > { %v677_v8 = vsel %vm4282_vm2, %v627_v2, 0  ;;  %v686_v18 = vsel %vm4282_vm2, %v645_v6, 0  ;;  %v4318_v22 = vpack.c.bf16 %v357_v13, %v356_v12  ;;  %v451_v23 = vshrl.u32 %v4286_v63, 16  ;;  %v4062_v12 = vld [vmem:[%s5471_s1 + $0x8] sm:$0x3f]  }
  0x36   : > { %v685_v10 = vsel %vm4282_vm2, %v643_v5, 0  ;;  %v646_v24 = vrot.slane %v454_v11, 1  ;;  %v4323_v25 = vpack.c.bf16 %v341_v17, %v340_v16  ;;  %v395_v28 = vshrl.u32 %v4292_v3, 16  ;;  %v345_v5 = vld [vmem:[%s4234_s30 + $0x68] sm:$0xff]  ;;  %4022 = vmatprep.subr.msk.bf16.mxu0 %vm824_vm7, %v4062_v12 }
  0x37   : > { %725 = vrot.lane.b32.xlu1 %v685_v10, %s4098_s5  ;;  %709 = vrot.lane.b32.xlu0 %v677_v8, %s4098_s5  ;;  %v630_v29 = vrot.slane %v398_v14, 1  ;;  %v458_v30 = vshrl.u32 %v4294_v4, 16  ;;  %v648_v31 = vrot.slane %v461_v15, 1  ;;  %v4335_v32 = vrot.slane %v381_v47, 7  ;;  %v362_v8 = vld [vmem:[%s4234_s30 + $0xf0] sm:$0xff] }
  0x38   : > { %v4337_v33 = vrot.slane %v444_v55, 7  ;;  %v4341_v37 = vrot.slane %v437_v53, 7  ;;  %v402_v38 = vshrl.u32 %v4298_v9, 16  ;;  %v632_v41 = vrot.slane %v405_v21, 1  ;;  %v4061_v10 = vld [vmem:[%s5471_s1 + $0x8] sm:$0x3f]  }
  0x39   : > { %v468_v42 = vshll.u32 %v4318_v22, 16  ;;  %v4347_v44 = vrot.slane %v451_v23, 7  ;;  %v647_v46 = vor.u32 %v646_v24, %v451_v23  ;;  %v4349_v47 = vpack.c.bf16 %v359_v27, %v358_v26  ;;  %v363_v27 = vld [vmem:[%s4234_s30 + $0xf8] sm:$0xff]  ;;  %4025 = vmatprep.subr.msk.bf16.mxu1 %vm824_vm7, %v4061_v10 }
  0x3a   : > { %v412_v50 = vshll.u32 %v4323_v25, 16  ;;  %v4356_v51 = vrot.slane %v395_v28, 7  ;;  %v631_v52 = vor.u32 %v630_v29, %v395_v28  ;;  %v649_v53 = vor.u32 %v648_v31, %v458_v30 }
  0x3b   : > { %727 = vrot.lane.b32.xlu1 %v686_v18, %s4098_s5  ;;  %711 = vrot.lane.b32.xlu0 %v678_v19, %s4098_s5  ;;  %v4358_v55 = vpack.c.bf16 %v343_v36, %v342_v34  ;;  %v4362_v58 = vrot.slane %v458_v30, 7  ;;  %v4364_v59 = vrot.slane %v402_v38, 7  ;;  %v633_v61 = vor.u32 %v632_v41, %v402_v38  ;;  %v346_v34 = vld [vmem:[%s4234_s30 + $0x70] sm:$0xff]  ;;  %v347_v36 = vld [vmem:[%s4234_s30 + $0x78] sm:$0xff] }
  0x3c   : > { %v465_v0 = vshrl.u32 %v4318_v22, 16  ;;  %v650_v1 = vrot.slane %v468_v42, 1  ;;  %v409_v2 = vshrl.u32 %v4323_v25, 16  ;;  %v634_v6 = vrot.slane %v412_v50, 1 }
  0x3d   : > { %v475_v7 = vshll.u32 %v4349_v47, 16  ;;  %v687_v13 = vsel %vm4282_vm2, %v647_v46, 0  ;;  %v679_v16 = vsel %vm4282_vm2, %v631_v52, 0  ;;  %v688_v17 = vsel %vm4282_vm2, %v649_v53, 0 }
  0x3e   : > { %v419_v18 = vshll.u32 %v4358_v55, 16  ;;  %v467_v19 = vrot.slane %v465_v0, 7  ;;  %v472_v23 = vshrl.u32 %v4349_v47, 16  ;;  %v416_v24 = vshrl.u32 %v4358_v55, 16 }
  0x3f   : > { %581 = vrot.lane.b32.xlu1 %v4286_v63, %s4097_s4  ;;  %565 = vrot.lane.b32.xlu0 %v4292_v3, %s4097_s4  ;;  %v4395_v26 = vpack.c.bf16 %v361_v57, %v360_v56  ;;  %v680_v28 = vsel %vm4282_vm2, %v633_v61, 0  ;;  %v4400_v29 = vor.u32 %v650_v1, %v465_v0  ;;  %v411_v30 = vrot.slane %v409_v2, 7 }
  0x40   : > { %v4402_v31 = vpack.c.bf16 %v345_v5, %v344_v60  ;;  %v4406_v38 = vor.u32 %v634_v6, %v409_v2  ;;  %v474_v41 = vrot.slane %v472_v23, 7  ;;  %v4412_v46 = vrot.slane %v475_v7, 1 }
  0x41   : > { %v418_v52 = vrot.slane %v416_v24, 7  ;;  %v4426_v56 = vrot.slane %v419_v18, 1  ;;  %v4428_v57 = vpack.c.bf16 %v363_v27, %v362_v8  ;;  %v393_v60 = vor.u32 %v391_v45, %v4315_v20  ;;  %v4461_v8 = vld [vmem:[%s5471_s1] sm:$0x3f]  }
  0x42   : > { %v4433_v61 = vpack.c.bf16 %v347_v36, %v346_v34  ;;  %v479_v0 = vshrl.u32 %v4395_v26, 16  ;;  %v482_v1 = vshll.u32 %v4395_v26, 16  ;;  %v386_v2 = vor.u32 %v384_v48, %v4335_v32 }
  0x43   : > { %583 = vrot.lane.b32.xlu1 %v4294_v4, %s4097_s4  ;;  %567 = vrot.lane.b32.xlu0 %v4298_v9, %s4097_s4  ;;  %v423_v5 = vshrl.u32 %v4402_v31, 16  ;;  %v426_v35 = vshll.u32 %v4402_v31, 16  ;;  %v512_v45 = vsel %vm4418_vm6, 0, %v393_v60  ;;  %v449_v20 = vor.u32 %v447_v49, %v4337_v33 }
  0x44   : > { %v481_v6 = vrot.slane %v479_v0, 7  ;;  %v486_v39 = vshrl.u32 %v4428_v57, 16  ;;  %530 = vst.msk [vmem:[#allocation2 + $0x10] sm:$0xff] %vm528_vm5, %v512_v45  ;;  %v511_v48 = vsel %vm4418_vm6, 0, %v386_v2  ;;  %v442_v32 = vor.u32 %v440_v54, %v4341_v37 }
  0x45   : > { %v425_v40 = vrot.slane %v423_v5, 7  ;;  %529 = vst.msk [vmem:[#allocation2 + $0x8] sm:$0xff] %vm528_vm5, %v511_v48  ;;  %v520_v49 = vsel %vm4418_vm6, 0, %v449_v20  ;;  %v456_v43 = vor.u32 %v454_v11, %v4347_v44  ;;  %v400_v54 = vor.u32 %v398_v14, %v4356_v51 }
  0x46   : > { %v488_v33 = vrot.slane %v486_v39, 7  ;;  %538 = vst.msk [vmem:[#allocation2 + $0x50] sm:$0xff] %vm528_vm5, %v520_v49  ;;  %v519_v37 = vsel %vm4418_vm6, 0, %v442_v32  ;;  %v407_v11 = vor.u32 %v405_v21, %v4364_v59  ;;  %v826_v14 = vsel %vm824_vm7, %v4062_v12, 0  ;;  %v4509_v21 = vld [vmem:[%s5471_s1] sm:$0x3f]  }
  0x47   : > { %729 = vrot.lane.b32.xlu1 %v687_v13, %s4098_s5  ;;  %713 = vrot.lane.b32.xlu0 %v679_v16, %s4098_s5  ;;  %v1501_v13 = vsel %vm824_vm7, %v4061_v10, 0  ;;  %v463_v16 = vor.u32 %v461_v15, %v4362_v58  ;;  %537 = vst.msk [vmem:[#allocation2 + $0x48] sm:$0xff] %vm528_vm5, %v519_v37  ;;  %v521_v63 = vsel %vm4418_vm6, 0, %v456_v43  ;;  %v513_v3 = vsel %vm4418_vm6, 0, %v400_v54 }
  0x48   : > { %3733 = vmatpush3.bf16.msra.mxu1 %v1501_v13  ;;  %539 = vst.msk [vmem:[#allocation2 + $0x58] sm:$0xff] %vm528_vm5, %v521_v63  ;;  %531 = vst.msk [vmem:[#allocation2 + $0x18] sm:$0xff] %vm528_vm5, %v513_v3  ;;  %3679 = vmatpush3.bf16.msra.mxu0 %v826_v14  ;;  %v470_v15 = vor.u32 %v468_v42, %v467_v19  ;;  %v414_v44 = vor.u32 %v412_v50, %v411_v30  ;;  %v430_v42 = vshrl.u32 %v4433_v61, 16  ;;  %v4642_v63 = vld [vmem:[%s5471_s1 + $0x10] sm:$0x3f]  }
  0x49   : > { %v522_v4 = vsel %vm4418_vm6, 0, %v463_v16  ;;  %v477_v9 = vor.u32 %v475_v7, %v474_v41  ;;  %4026 = vmatprep.subr.msk.bf16.mxu1 %vm824_vm7, %v4461_v8  ;;  %v514_v50 = vsel %vm4418_vm6, 0, %v407_v11  ;;  %v421_v51 = vor.u32 %v419_v18, %v418_v52  ;;  %4023 = vmatprep.subr.msk.bf16.mxu0 %vm824_vm7, %v4509_v21  ;;  %v4637_v16 = vld [vmem:[%s5471_s1 + $0x10] sm:$0x3f]  }
  0x4a   : > { %540 = vst.msk [vmem:[#allocation2 + $0x60] sm:$0xff] %vm528_vm5, %v522_v4  ;;  %v484_v58 = vor.u32 %v482_v1, %v481_v6  ;;  %v489_v59 = vshll.u32 %v4428_v57, 16  ;;  %532 = vst.msk [vmem:[#allocation2 + $0x20] sm:$0xff] %vm528_vm5, %v514_v50  ;;  %v432_v10 = vrot.slane %v430_v42, 7  ;;  %v428_v18 = vor.u32 %v426_v35, %v425_v40 }
  0x4b   : > { %731 = vrot.lane.b32.xlu1 %v688_v17, %s4098_s5  ;;  %715 = vrot.lane.b32.xlu0 %v680_v28, %s4098_s5  ;;  %v524_v7 = vsel %vm4418_vm6, 0, %v477_v9  ;;  %v516_v12 = vsel %vm4418_vm6, 0, %v421_v51  ;;  %v689_v27 = vsel %vm4282_vm2, %v4400_v29, 0  ;;  %v433_v28 = vshll.u32 %v4433_v61, 16 }
  0x4c   : > { %542 = vst.msk [vmem:[#allocation2 + $0x70] sm:$0xff] %vm528_vm5, %v524_v7  ;;  %v525_v17 = vsel %vm4418_vm6, 0, %v484_v58  ;;  %534 = vst.msk [vmem:[#allocation2 + $0x30] sm:$0xff] %vm528_vm5, %v516_v12  ;;  %v491_v19 = vor.u32 %v489_v59, %v488_v33  ;;  %v517_v30 = vsel %vm4418_vm6, 0, %v428_v18  ;;  %v681_v34 = vsel %vm4282_vm2, %v4406_v38, 0 }
  0x4d   : > { %543 = vst.msk [vmem:[#allocation2 + $0x78] sm:$0xff] %vm528_vm5, %v525_v17  ;;  %v653_v36 = vor.u32 %v4412_v46, %v472_v23  ;;  %v637_v41 = vor.u32 %v4426_v56, %v416_v24  ;;  %535 = vst.msk [vmem:[#allocation2 + $0x38] sm:$0xff] %vm528_vm5, %v517_v30  ;;  %v435_v52 = vor.u32 %v433_v28, %v432_v10  ;;  %v654_v24 = vrot.slane %v482_v1, 1 }
  0x4e   : > { %v526_v29 = vsel %vm4418_vm6, 0, %v491_v19  ;;  %v638_v38 = vrot.slane %v426_v35, 1  ;;  %v656_v56 = vrot.slane %v489_v59, 1  ;;  %v640_v2 = vrot.slane %v433_v28, 1 }
  0x4f   : > { %585 = vrot.lane.b32.xlu1 %v4318_v22, %s4097_s4  ;;  %569 = vrot.lane.b32.xlu0 %v4323_v25, %s4097_s4  ;;  %v523_v22 = vsel %vm4418_vm6, 0, %v470_v15  ;;  %v515_v25 = vsel %vm4418_vm6, 0, %v414_v44  ;;  %544 = vst.msk [vmem:[#allocation2 + $0x80] sm:$0xff] %vm528_vm5, %v526_v29  ;;  %v682_v23 = vsel %vm4282_vm2, %v637_v41, 0  ;;  %v655_v46 = vor.u32 %v654_v24, %v479_v0 }
  0x50   : > { %541 = vst.msk [vmem:[#allocation2 + $0x68] sm:$0xff] %vm528_vm5, %v523_v22  ;;  %533 = vst.msk [vmem:[#allocation2 + $0x28] sm:$0xff] %vm528_vm5, %v515_v25  ;;  %v639_v60 = vor.u32 %v638_v38, %v423_v5  ;;  %v657_v35 = vor.u32 %v656_v56, %v486_v39  ;;  %v641_v0 = vor.u32 %v640_v2, %v430_v42  ;;  %v1630_v37 = vsel %vm824_vm7, %v4461_v8, 0 }
  0x51   : > { %v691_v1 = vsel %vm4282_vm2, %v655_v46, 0  ;;  %v955_v13 = vsel %vm824_vm7, %v4509_v21, 0  ;;  %v1096_v2 = vsel %vm824_vm7, %v4642_v63, 0 }
  0x53   : > { %587 = vrot.lane.b32.xlu1 %v4349_v47, %s4097_s4  ;;  %571 = vrot.lane.b32.xlu0 %v4358_v55, %s4097_s4  ;;  %v518_v47 = vsel %vm4418_vm6, 0, %v435_v52  ;;  %v690_v55 = vsel %vm4282_vm2, %v653_v36, 0 }
  0x54   : > { %536 = vst.msk [vmem:[#allocation2 + $0x40] sm:$0xff] %vm528_vm5, %v518_v47 }
  0x57   : > { %733 = vrot.lane.b32.xlu1 %v689_v27, %s4098_s5  ;;  %717 = vrot.lane.b32.xlu0 %v681_v34, %s4098_s5 }
  0x5b   : > { %735 = vrot.lane.b32.xlu1 %v690_v55, %s4098_s5  ;;  %719 = vrot.lane.b32.xlu0 %v682_v23, %s4098_s5 }
  0x5f   : > { %589 = vrot.lane.b32.xlu1 %v4395_v26, %s4097_s4  ;;  %573 = vrot.lane.b32.xlu0 %v4402_v31, %s4097_s4  ;;  %v683_v26 = vsel %vm4282_vm2, %v639_v60, 0  ;;  %v4099_v31 = vmov 0   ;;  %v1770_v60 = vsel %vm824_vm7, %v4637_v16, 0 }
  0x60   : > { %326 = vst.msk [vmem:[#allocation2] sm:$0xff] %vm325_vm8, %v4099_v31  ;;  %328 = vst.msk [vmem:[#allocation2 + $0x88] sm:$0xff] %vm325_vm8, %v4099_v31 }
  0x61   : > { %329 = vst.msk [vmem:[#allocation3] sm:$0xff] %vm325_vm8, %v4099_v31  ;;  %331 = vst.msk [vmem:[#allocation3 + $0x88] sm:$0xff] %vm325_vm8, %v4099_v31 }
  0x63   : > { %591 = vrot.lane.b32.xlu1 %v4428_v57, %s4097_s4  ;;  %575 = vrot.lane.b32.xlu0 %v4433_v61, %s4097_s4  ;;  %v692_v57 = vsel %vm4282_vm2, %v657_v35, 0  ;;  %v684_v61 = vsel %vm4282_vm2, %v641_v0, 0  ;;  %v4756_v35 = vld [vmem:[%s5472_s2] ss:$0 sm:$0xff] }
  0x67   : > { %737 = vrot.lane.b32.xlu1 %v691_v1, %s4098_s5  ;;  %721 = vrot.lane.b32.xlu0 %v683_v26, %s4098_s5  ;;  %v774_v38 = vld [vmem:[#allocation2] sm:$0xff]  ;;  %v1737_v1 = vld [vmem:[#allocation2 + $0x88] sm:$0xff] }
  0x6b   : > { %739 = vrot.lane.b32.xlu1 %v692_v57, %s4098_s5  ;;  %723 = vrot.lane.b32.xlu0 %v684_v61, %s4098_s5 }
  0xa0   : > { %v564_v5 = vpop.permute.xlu1 %563 }
  0xa1   : > { %611 = vst.msk [vmem:[#allocation2 + $0x10] sm:$0xff] %vm609_vm9, %v564_v5  ;;  %v562_v45 = vpop.permute.xlu0 %561 }
  0xa2   : > { %610 = vst.msk [vmem:[#allocation2 + $0x8] sm:$0xff] %vm609_vm9, %v562_v45 }
  0xa4   : > { %v580_v20 = vpop.permute.xlu1 %579 }
  0xa5   : > { %619 = vst.msk [vmem:[#allocation2 + $0x50] sm:$0xff] %vm609_vm9, %v580_v20  ;;  %v578_v6 = vpop.permute.xlu0 %577 }
  0xa6   : > { %618 = vst.msk [vmem:[#allocation2 + $0x48] sm:$0xff] %vm609_vm9, %v578_v6 }
  0xa9   : > { %v726_v39 = vpop.permute.xlu1 %725  ;;  %v710_v48 = vpop.permute.xlu0 %709 }
  0xaa   : > { %766 = vst.msk [vmem:[#allocation2 + $0x48] sm:$0xff] %vm757_vm10, %v726_v39  ;;  %758 = vst.msk [vmem:[#allocation2 + $0x8] sm:$0xff] %vm757_vm10, %v710_v48 }
  0xad   : > { %v728_v32 = vpop.permute.xlu1 %727  ;;  %v712_v40 = vpop.permute.xlu0 %711 }
  0xae   : > { %767 = vst.msk [vmem:[#allocation2 + $0x50] sm:$0xff] %vm757_vm10, %v728_v32  ;;  %759 = vst.msk [vmem:[#allocation2 + $0x10] sm:$0xff] %vm757_vm10, %v712_v40 }
  0xb1   : > { %v582_v49 = vpop.permute.xlu1 %581  ;;  %v566_v43 = vpop.permute.xlu0 %565  ;;  %v4620_v54 = vld [vmem:[#allocation2 + $0x48] sm:$0xff] }
  0xb2   : > { %v4622_v33 = vld [vmem:[#allocation2 + $0x8] sm:$0xff]  ;;  %620 = vst.msk [vmem:[#allocation2 + $0x58] sm:$0xff] %vm609_vm9, %v582_v49  ;;  %612 = vst.msk [vmem:[#allocation2 + $0x18] sm:$0xff] %vm609_vm9, %v566_v43  ;;  %3734 = vmatprep.mubr.msk.bf16.mxu1 %vm325_vm8, %v4620_v54 }
  0xb3   : > { %3680 = vmatprep.mubr.msk.bf16.mxu0 %vm325_vm8, %v4622_v33 }
  0xb5   : > { %v584_v3 = vpop.permute.xlu1 %583  ;;  %v568_v11 = vpop.permute.xlu0 %567  ;;  %v4644_v14 = vld [vmem:[#allocation2 + $0x50] sm:$0xff] }
  0xb6   : > { %v4646_v4 = vld [vmem:[#allocation2 + $0x10] sm:$0xff]  ;;  %621 = vst.msk [vmem:[#allocation2 + $0x60] sm:$0xff] %vm609_vm9, %v584_v3  ;;  %613 = vst.msk [vmem:[#allocation2 + $0x20] sm:$0xff] %vm609_vm9, %v568_v11  ;;  %3735 = vmatmul.mubr.msk.bf16.vlgmr.msra.gmra.mrb[0].mxu1 %vm325_vm8, %v4644_v14 }
  0xb7   : > { %3681 = vmatmul.mubr.msk.bf16.vlgmr.msra.gmra.mrb[0].mxu0 %vm325_vm8, %v4646_v4  ;;  %3751 = vmatpush3.bf16.msra.mxu1 %v1630_v37 }
  0xb8   : > { %3697 = vmatpush3.bf16.msra.mxu0 %v955_v13  ;;  %4027 = vmatprep.subr.msk.bf16.mxu1 %vm824_vm7, %v4637_v16 }
  0xb9   : > { %4024 = vmatprep.subr.msk.bf16.mxu0 %vm824_vm7, %v4642_v63  ;;  %v730_v8 = vpop.permute.xlu1 %729  ;;  %v714_v15 = vpop.permute.xlu0 %713 }
  0xba   : > { %768 = vst.msk [vmem:[#allocation2 + $0x58] sm:$0xff] %vm757_vm10, %v730_v8  ;;  %760 = vst.msk [vmem:[#allocation2 + $0x18] sm:$0xff] %vm757_vm10, %v714_v15 }
  0xbd   : > { %v732_v44 = vpop.permute.xlu1 %731  ;;  %v716_v9 = vpop.permute.xlu0 %715 }
  0xbe   : > { %769 = vst.msk [vmem:[#allocation2 + $0x60] sm:$0xff] %vm757_vm10, %v732_v44  ;;  %761 = vst.msk [vmem:[#allocation2 + $0x20] sm:$0xff] %vm757_vm10, %v716_v9 }
  0xc1   : > { %v586_v21 = vpop.permute.xlu1 %585  ;;  %v570_v42 = vpop.permute.xlu0 %569  ;;  %v4662_v50 = vld [vmem:[#allocation2 + $0x58] sm:$0xff] }
  0xc2   : > { %v4664_v51 = vld [vmem:[#allocation2 + $0x18] sm:$0xff]  ;;  %622 = vst.msk [vmem:[#allocation2 + $0x68] sm:$0xff] %vm609_vm9, %v586_v21  ;;  %614 = vst.msk [vmem:[#allocation2 + $0x28] sm:$0xff] %vm609_vm9, %v570_v42  ;;  %3738 = vmatprep.mubr.msk.bf16.mxu1 %vm325_vm8, %v4662_v50 }
  0xc3   : > { %3684 = vmatprep.mubr.msk.bf16.mxu0 %vm325_vm8, %v4664_v51 }
  0xc5   : > { %v588_v58 = vpop.permute.xlu1 %587  ;;  %v572_v59 = vpop.permute.xlu0 %571  ;;  %v4672_v22 = vld [vmem:[#allocation2 + $0x60] sm:$0xff] }
  0xc6   : > { %v4674_v25 = vld [vmem:[#allocation2 + $0x20] sm:$0xff]  ;;  %623 = vst.msk [vmem:[#allocation2 + $0x70] sm:$0xff] %vm609_vm9, %v588_v58  ;;  %615 = vst.msk [vmem:[#allocation2 + $0x30] sm:$0xff] %vm609_vm9, %v572_v59  ;;  %3739 = vmatmul.mubr.msk.bf16.gmra.mrb[4].mxu1 %vm325_vm8, %v4672_v22 }
  0xc7   : > { %3685 = vmatmul.mubr.msk.bf16.gmra.mrb[4].mxu0 %vm325_vm8, %v4674_v25 }
  0xc9   : > { %v734_v7 = vpop.permute.xlu1 %733  ;;  %v718_v10 = vpop.permute.xlu0 %717 }
  0xca   : > { %770 = vst.msk [vmem:[#allocation2 + $0x68] sm:$0xff] %vm757_vm10, %v734_v7  ;;  %762 = vst.msk [vmem:[#allocation2 + $0x28] sm:$0xff] %vm757_vm10, %v718_v10 }
  0xcd   : > { %v736_v12 = vpop.permute.xlu1 %735  ;;  %v720_v17 = vpop.permute.xlu0 %719 }
  0xce   : > { %771 = vst.msk [vmem:[#allocation2 + $0x70] sm:$0xff] %vm757_vm10, %v736_v12  ;;  %763 = vst.msk [vmem:[#allocation2 + $0x30] sm:$0xff] %vm757_vm10, %v720_v17 }
  0xd1   : > { %v590_v18 = vpop.permute.xlu1 %589  ;;  %v574_v19 = vpop.permute.xlu0 %573  ;;  %v1465_v27 = vld [vmem:[#allocation2 + $0x68] sm:$0xff] }
  0xd2   : > { %v788_v28 = vld [vmem:[#allocation2 + $0x28] sm:$0xff]  ;;  %624 = vst.msk [vmem:[#allocation2 + $0x78] sm:$0xff] %vm609_vm9, %v590_v18  ;;  %616 = vst.msk [vmem:[#allocation2 + $0x38] sm:$0xff] %vm609_vm9, %v574_v19  ;;  %3742 = vmatprep.mubr.msk.bf16.mxu1 %vm325_vm8, %v1465_v27 }
  0xd3   : > { %3688 = vmatprep.mubr.msk.bf16.mxu0 %vm325_vm8, %v788_v28 }
  0xd5   : > { %v592_v30 = vpop.permute.xlu1 %591  ;;  %v576_v34 = vpop.permute.xlu0 %575  ;;  %v1466_v36 = vld [vmem:[#allocation2 + $0x70] sm:$0xff] }
  0xd6   : > { %v789_v41 = vld [vmem:[#allocation2 + $0x30] sm:$0xff]  ;;  %625 = vst.msk [vmem:[#allocation2 + $0x80] sm:$0xff] %vm609_vm9, %v592_v30  ;;  %617 = vst.msk [vmem:[#allocation2 + $0x40] sm:$0xff] %vm609_vm9, %v576_v34  ;;  %3743 = vmatmul.mubr.msk.bf16.gmra.mrb[8].mxu1 %vm325_vm8, %v1466_v36 }
  0xd7   : > { %3689 = vmatmul.mubr.msk.bf16.gmra.mrb[8].mxu0 %vm325_vm8, %v789_v41 }
  0xd9   : > { %v738_v29 = vpop.permute.xlu1 %737  ;;  %v722_v52 = vpop.permute.xlu0 %721 }
  0xda   : > { %772 = vst.msk [vmem:[#allocation2 + $0x78] sm:$0xff] %vm757_vm10, %v738_v29  ;;  %764 = vst.msk [vmem:[#allocation2 + $0x38] sm:$0xff] %vm757_vm10, %v722_v52 }
  0xdd   : > { %v740_v47 = vpop.permute.xlu1 %739  ;;  %v724_v55 = vpop.permute.xlu0 %723 }
  0xde   : > { %773 = vst.msk [vmem:[#allocation2 + $0x80] sm:$0xff] %vm757_vm10, %v740_v47  ;;  %765 = vst.msk [vmem:[#allocation2 + $0x40] sm:$0xff] %vm757_vm10, %v724_v55 }
  0xe1   : > { %v1467_v23 = vld [vmem:[#allocation2 + $0x78] sm:$0xff] }
  0xe2   : > { %v790_v24 = vld [vmem:[#allocation2 + $0x38] sm:$0xff]  ;;  %3746 = vmatprep.mubr.msk.bf16.mxu1 %vm325_vm8, %v1467_v23 }
  0xe3   : > { %3692 = vmatprep.mubr.msk.bf16.mxu0 %vm325_vm8, %v790_v24 }
  0xe5   : > { %v791_v46 = vld [vmem:[#allocation2 + $0x40] sm:$0xff] }
  0xe6   : > { %v1468_v56 = vld [vmem:[#allocation2 + $0x80] sm:$0xff]  ;;  %3693 = vmatmul.mubr.msk.bf16.gmra.mrb[12].mxu0 %vm325_vm8, %v791_v46 }
  0xe7   : > { %3747 = vmatmul.mubr.msk.bf16.gmra.mrb[12].mxu1 %vm325_vm8, %v1468_v56  ;;  %3698 = vmatprep.mubr.msk.bf16.mxu0 %vm325_vm8, %v774_v38 }
  0xe8   : > { %3752 = vmatprep.mubr.msk.bf16.mxu1 %vm325_vm8, %v791_v46 }
  0xee   : > { %3699 = vmatmul.mubr.msk.bf16.vlgmr.msra.gmra.mrb[0].mxu0 %vm325_vm8, %v4622_v33 }
  0xef   : > { %3753 = vmatmul.mubr.msk.bf16.vlgmr.msra.gmra.mrb[0].mxu1 %vm325_vm8, %v4620_v54  ;;  %3702 = vmatprep.mubr.msk.bf16.mxu0 %vm325_vm8, %v4646_v4 }
  0xf0   : > { %3769 = vmatpush3.bf16.msra.mxu1 %v1770_v60  ;;  %3756 = vmatprep.mubr.msk.bf16.mxu1 %vm325_vm8, %v4644_v14 }
  0xf1   : > { %3715 = vmatpush3.bf16.msra.mxu0 %v1096_v2 }
  0xf6   : > { %3703 = vmatmul.mubr.msk.bf16.gmra.mrb[4].mxu0 %vm325_vm8, %v4664_v51 }
  0xf7   : > { %3757 = vmatmul.mubr.msk.bf16.gmra.mrb[4].mxu1 %vm325_vm8, %v4662_v50  ;;  %3706 = vmatprep.mubr.msk.bf16.mxu0 %vm325_vm8, %v4674_v25 }
  0xf8   : > { %3760 = vmatprep.mubr.msk.bf16.mxu1 %vm325_vm8, %v4672_v22 }
  0xfe   : > { %3707 = vmatmul.mubr.msk.bf16.gmra.mrb[8].mxu0 %vm325_vm8, %v788_v28 }
  0xff   : > { %3761 = vmatmul.mubr.msk.bf16.gmra.mrb[8].mxu1 %vm325_vm8, %v1465_v27  ;;  %3710 = vmatprep.mubr.msk.bf16.mxu0 %vm325_vm8, %v789_v41 }
 0x100   : > { %3764 = vmatprep.mubr.msk.bf16.mxu1 %vm325_vm8, %v1466_v36 }
 0x106   : > { %3711 = vmatmul.mubr.msk.bf16.gmra.mrb[12].mxu0 %vm325_vm8, %v790_v24 }
 0x107   : > { %3765 = vmatmul.mubr.msk.bf16.gmra.mrb[12].mxu1 %vm325_vm8, %v1467_v23  ;;  %3716 = vmatprep.mubr.msk.bf16.mxu0 %vm325_vm8, %v4646_v4 }
 0x108   : > { %3770 = vmatprep.mubr.msk.bf16.mxu1 %vm325_vm8, %v4644_v14 }
 0x10e   : > { %3717 = vmatmul.mubr.msk.bf16.vlgmr.msra.gmra.mrb[0].mxu0 %vm325_vm8, %v4664_v51 }
 0x10f   : > { %3771 = vmatmul.mubr.msk.bf16.vlgmr.msra.gmra.mrb[0].mxu1 %vm325_vm8, %v4662_v50  ;;  %3720 = vmatprep.mubr.msk.bf16.mxu0 %vm325_vm8, %v4674_v25 }
 0x110   : > { %3774 = vmatprep.mubr.msk.bf16.mxu1 %vm325_vm8, %v4672_v22 }
 0x116   : > { %3721 = vmatmul.mubr.msk.bf16.gmra.mrb[4].mxu0 %vm325_vm8, %v788_v28 }
 0x117   : > { %3775 = vmatmul.mubr.msk.bf16.gmra.mrb[4].mxu1 %vm325_vm8, %v1465_v27  ;;  %3724 = vmatprep.mubr.msk.bf16.mxu0 %vm325_vm8, %v789_v41 }
 0x118   : > { %3778 = vmatprep.mubr.msk.bf16.mxu1 %vm325_vm8, %v1466_v36 }
 0x11e   : > { %3725 = vmatmul.mubr.msk.bf16.gmra.mrb[8].mxu0 %vm325_vm8, %v790_v24 }
 0x11f   : > { %3779 = vmatmul.mubr.msk.bf16.gmra.mrb[8].mxu1 %vm325_vm8, %v1467_v23  ;;  %3728 = vmatprep.mubr.msk.bf16.mxu0 %vm325_vm8, %v791_v46 }
 0x120   : > { %3782 = vmatprep.mubr.msk.bf16.mxu1 %vm325_vm8, %v1468_v56  ;;  %v4798_v56 = vld [vmem:[%s5471_s1 + $0x20] sm:$0x3f]  }
 0x121   : > { %4028 = vmatprep.subr.msk.bf16.mxu0 %vm824_vm7, %v4798_v56 }
 0x126   : > { %3729 = vmatmul.mubr.msk.bf16.gmra.mrb[12].mxu0 %vm325_vm8, %v4620_v54 }
 0x127   : > { %3783 = vmatmul.mubr.msk.bf16.gmra.mrb[12].mxu1 %vm325_vm8, %v1737_v1 }
 0x1e1   : > { %v3718_v26 = vpop.f32.mrb[0].mxu0 }
 0x1e2   : > { %v3772_v0 = vpop.f32.mrb[0].mxu1  ;;  %v1218_v31 = vadd.f32 %v3718_v26, %v4756_v35  ;;  %v1132_v61 = vpop.f32.mrb[1].mxu0 }
 0x1e3   : > { %v1892_v57 = vadd.f32 %v3772_v0, %v4756_v35  ;;  %v1806_v5 = vpop.f32.mrb[1].mxu1  ;;  %v1216_v45 = vadd.f32 %v4756_v35, %v1132_v61  ;;  %v3719_v6 = vpop.f32.mrb[2].mxu0  ;;  %v4810_v0 = vld [vmem:[%s5471_s1 + $0x20] sm:$0x3f]  }
 0x1e4   : > { %v1890_v20 = vadd.f32 %v4756_v35, %v1806_v5  ;;  %v3773_v39 = vpop.f32.mrb[2].mxu1  ;;  %v1219_v48 = vadd.f32 %v3719_v6, %v4756_v35  ;;  %v1135_v40 = vpop.f32.mrb[3].mxu0  ;;  %v1234_v33 = vmax.f32 %v1218_v31, 0.0  ;;  %4031 = vmatprep.subr.msk.bf16.mxu1 %vm824_vm7, %v4810_v0 }
 0x1e5   : > { %v1893_v32 = vadd.f32 %v3773_v39, %v4756_v35  ;;  %v1809_v49 = vpop.f32.mrb[3].mxu1  ;;  %v1217_v43 = vadd.f32 %v4756_v35, %v1135_v40  ;;  %v1908_v37 = vmax.f32 %v1892_v57, 0.0  ;;  %v1232_v63 = vmax.f32 %v1216_v45, 0.0 }
 0x1e6   : > { %v1891_v54 = vadd.f32 %v4756_v35, %v1809_v49  ;;  %v1235_v13 = vmax.f32 %v1219_v48, 0.0  ;;  %v1906_v3 = vmax.f32 %v1890_v20, 0.0 }
 0x1e7   : > { %v1909_v16 = vmax.f32 %v1893_v32, 0.0  ;;  %v1233_v11 = vmax.f32 %v1217_v43, 0.0 }
 0x1e8   : > { %v1907_v14 = vmax.f32 %v1891_v54, 0.0  ;;  %v4766_v4 = vpack.c.bf16 %v1235_v13, %v1234_v33 }
 0x1e9   : > { %v4768_v8 = vpack.c.bf16 %v1909_v16, %v1908_v37  ;;  %v4770_v15 = vpack.c.bf16 %v1233_v11, %v1232_v63  ;;  %v3722_v9 = vpop.f32.mrb[4].mxu0 }
 0x1ea   : > { %v4772_v44 = vpack.c.bf16 %v1907_v14, %v1906_v3  ;;  %v3776_v21 = vpop.f32.mrb[4].mxu1  ;;  %v1222_v50 = vadd.f32 %v3722_v9, %v4756_v35  ;;  %1347 = vrot.lane.b32.xlu0 %v4766_v4, %s4097_s4  ;;  %v1148_v59 = vpop.f32.mrb[5].mxu0  ;;  %v1267_v32 = vshll.u32 %v4766_v4, 16 }
 0x1eb   : > { %v1941_v42 = vshll.u32 %v4768_v8, 16  ;;  %v1896_v51 = vadd.f32 %v3776_v21, %v4756_v35  ;;  %v1822_v58 = vpop.f32.mrb[5].mxu1  ;;  %v1260_v22 = vshll.u32 %v4770_v15, 16  ;;  %v1220_v7 = vadd.f32 %v4756_v35, %v1148_v59  ;;  %v3723_v10 = vpop.f32.mrb[6].mxu0 }
 0x1ec   : > { %v1894_v25 = vadd.f32 %v4756_v35, %v1822_v58  ;;  %2019 = vrot.lane.b32.xlu1 %v4772_v44, %s4097_s4  ;;  %v3777_v12 = vpop.f32.mrb[6].mxu1  ;;  %v1238_v17 = vmax.f32 %v1222_v50, 0.0  ;;  %v1223_v18 = vadd.f32 %v3723_v10, %v4756_v35  ;;  %v1151_v27 = vpop.f32.mrb[7].mxu0  ;;  %v1938_v47 = vshrl.u32 %v4768_v8, 16 }
 0x1ed   : > { %v1897_v19 = vadd.f32 %v3777_v12, %v4756_v35  ;;  %v1825_v28 = vpop.f32.mrb[7].mxu1  ;;  %v1912_v30 = vmax.f32 %v1896_v51, 0.0  ;;  %v1221_v36 = vadd.f32 %v4756_v35, %v1151_v27  ;;  %v2053_v55 = vrot.slane %v1941_v42, 1 }
 0x1ee   : > { %v1910_v34 = vmax.f32 %v1894_v25, 0.0  ;;  %v1895_v41 = vadd.f32 %v4756_v35, %v1825_v28  ;;  %v1239_v29 = vmax.f32 %v1223_v18, 0.0  ;;  %2021 = vrot.lane.b32.xlu0 %v4768_v8, %s4097_s4  ;;  %v1236_v23 = vmax.f32 %v1220_v7, 0.0  ;;  %v4972_v8 = vld [vmem:[%s5471_s1 + $0x18] sm:$0x3f]  }
 0x1ef   : > { %v1913_v52 = vmax.f32 %v1897_v19, 0.0  ;;  %v1237_v24 = vmax.f32 %v1221_v36, 0.0  ;;  %v1377_v46 = vrot.slane %v1260_v22, 1  ;;  %v2054_v1 = vor.u32 %v2053_v55, %v1938_v47 }
 0x1f0   : > { %v1911_v38 = vmax.f32 %v1895_v41, 0.0  ;;  %v4800_v60 = vpack.c.bf16 %v1239_v29, %v1238_v17  ;;  %v1257_v26 = vshrl.u32 %v4770_v15, 16  ;;  %v1934_v40 = vshll.u32 %v4772_v44, 16 }
 0x1f1   : > { %v4802_v2 = vpack.c.bf16 %v1913_v52, %v1912_v30  ;;  %v4812_v31 = vpack.c.bf16 %v1237_v24, %v1236_v23  ;;  %v3726_v61 = vpop.f32.mrb[8].mxu0  ;;  %v2076_v45 = vsel %vm4282_vm2, %v2054_v1, 0  ;;  %v1264_v12 = vshrl.u32 %v4766_v4, 16 }
 0x1f2   : > { %v4814_v57 = vpack.c.bf16 %v1911_v38, %v1910_v34  ;;  %v3780_v5 = vpop.f32.mrb[8].mxu1  ;;  %v1226_v20 = vadd.f32 %v3726_v61, %v4756_v35  ;;  %1345 = vrot.lane.b32.xlu0 %v4770_v15, %s4097_s4  ;;  %v1164_v39 = vpop.f32.mrb[9].mxu0  ;;  %v1378_v48 = vor.u32 %v1377_v46, %v1257_v26  ;;  %2093 = vrot.lane.b32.xlu1 %v2076_v45, %s4098_s5  ;;  %v1379_v17 = vrot.slane %v1267_v32, 1 }
 0x1f3   : > { %v1838_v6 = vpop.f32.mrb[9].mxu1  ;;  %v1900_v49 = vadd.f32 %v3780_v5, %v4756_v35  ;;  %v3727_v54 = vpop.f32.mrb[10].mxu0  ;;  %v1224_v13 = vadd.f32 %v4756_v35, %v1164_v39  ;;  %v2051_v27 = vrot.slane %v1934_v40, 1  ;;  %v1931_v41 = vshrl.u32 %v4772_v44, 16 }
 0x1f4   : > { %v1898_v43 = vadd.f32 %v4756_v35, %v1838_v6  ;;  %v3781_v33 = vpop.f32.mrb[10].mxu1  ;;  %v1242_v37 = vmax.f32 %v1226_v20, 0.0  ;;  %v1227_v16 = vadd.f32 %v3727_v54, %v4756_v35  ;;  %v1167_v3 = vpop.f32.mrb[11].mxu0  ;;  %v1401_v25 = vsel %vm4282_vm2, %v1378_v48, 0 }
 0x1f5   : > { %v1901_v63 = vadd.f32 %v3781_v33, %v4756_v35  ;;  %v1841_v11 = vpop.f32.mrb[11].mxu1  ;;  %v1916_v14 = vmax.f32 %v1900_v49, 0.0  ;;  %v1225_v21 = vadd.f32 %v4756_v35, %v1167_v3  ;;  %v1240_v51 = vmax.f32 %v1224_v13, 0.0 }
 0x1f6   : > { %v1914_v9 = vmax.f32 %v1898_v43, 0.0  ;;  %v1899_v50 = vadd.f32 %v4756_v35, %v1841_v11  ;;  %v1243_v58 = vmax.f32 %v1227_v16, 0.0  ;;  %1417 = vrot.lane.b32.xlu1 %v1401_v25, %s4098_s5  ;;  %v1380_v34 = vor.u32 %v1379_v17, %v1264_v12 }
 0x1f7   : > { %v1917_v59 = vmax.f32 %v1901_v63, 0.0  ;;  %v1241_v7 = vmax.f32 %v1225_v21, 0.0  ;;  %v1281_v24 = vshll.u32 %v4800_v60, 16  ;;  %v1955_v38 = vshll.u32 %v4802_v2, 16 }
 0x1f8   : > { %v1915_v10 = vmax.f32 %v1899_v50, 0.0  ;;  %v4843_v18 = vpack.c.bf16 %v1243_v58, %v1242_v37  ;;  %v1402_v46 = vsel %vm4282_vm2, %v1380_v34, 0  ;;  %v2052_v1 = vor.u32 %v2051_v27, %v1931_v41 }
 0x1f9   : > { %v4845_v19 = vpack.c.bf16 %v1917_v59, %v1916_v14  ;;  %v4849_v28 = vpack.c.bf16 %v1241_v7, %v1240_v51  ;;  %v3730_v29 = vpop.f32.mrb[12].mxu0  ;;  %v1274_v45 = vshll.u32 %v4812_v31, 16  ;;  %1419 = vrot.lane.b32.xlu0 %v1402_v46, %s4098_s5  ;;  %v1948_v13 = vshll.u32 %v4814_v57, 16 }
 0x1fa   : > { %v4851_v30 = vpack.c.bf16 %v1915_v10, %v1914_v9  ;;  %v3784_v36 = vpop.f32.mrb[12].mxu1  ;;  %v1180_v23 = vpop.f32.mrb[13].mxu0  ;;  %v1230_v20 = vadd.f32 %v3730_v29, %v4756_v35  ;;  %v2075_v43 = vsel %vm4282_vm2, %v2052_v1, 0  ;;  %v1952_v58 = vshrl.u32 %v4802_v2, 16 }
 0x1fb   : > { %v1904_v52 = vadd.f32 %v3784_v36, %v4756_v35  ;;  %v1854_v55 = vpop.f32.mrb[13].mxu1  ;;  %v3731_v61 = vpop.f32.mrb[14].mxu0  ;;  %v1228_v39 = vadd.f32 %v4756_v35, %v1180_v23  ;;  %2091 = vrot.lane.b32.xlu1 %v2075_v43, %s4098_s5  ;;  %v2057_v59 = vrot.slane %v1955_v38, 1  ;;  %v1969_v17 = vshll.u32 %v4845_v19, 16 }
 0x1fc   : > { %v3785_v5 = vpop.f32.mrb[14].mxu1  ;;  %v1902_v6 = vadd.f32 %v4756_v35, %v1854_v55  ;;  %v1183_v48 = vpop.f32.mrb[15].mxu0  ;;  %v1231_v54 = vadd.f32 %v3731_v61, %v4756_v35  ;;  %v1246_v63 = vmax.f32 %v1230_v20, 0.0  ;;  %v1271_v36 = vshrl.u32 %v4812_v31, 16 }
 0x1fd   : > { %v1857_v49 = vpop.f32.mrb[15].mxu1  ;;  %v1905_v33 = vadd.f32 %v3785_v5, %v4756_v35  ;;  %v1229_v37 = vadd.f32 %v4756_v35, %v1183_v48  ;;  %v1920_v16 = vmax.f32 %v1904_v52, 0.0  ;;  %v1244_v11 = vmax.f32 %v1228_v39, 0.0  ;;  %1351 = vrot.lane.b32.xlu0 %v4800_v60, %s4097_s4 }
 0x1fe   : > { %v1903_v3 = vadd.f32 %v4756_v35, %v1857_v49  ;;  %v1247_v14 = vmax.f32 %v1231_v54, 0.0  ;;  %v1918_v50 = vmax.f32 %v1902_v6, 0.0  ;;  %v1381_v35 = vrot.slane %v1274_v45, 1 }
 0x1ff   : > { %v1921_v9 = vmax.f32 %v1905_v33, 0.0  ;;  %v1245_v21 = vmax.f32 %v1229_v37, 0.0  ;;  %2023 = vrot.lane.b32.xlu1 %v4814_v57, %s4097_s4  ;;  %v2058_v34 = vor.u32 %v2057_v59, %v1952_v58  ;;  %v1383_v29 = vrot.slane %v1281_v24, 1 }
 0x200   : > { %v1919_v51 = vmax.f32 %v1903_v3, 0.0  ;;  %v4877_v25 = vpack.c.bf16 %v1247_v14, %v1246_v63  ;;  %v1382_v55 = vor.u32 %v1381_v35, %v1271_v36  ;;  %v1278_v23 = vshrl.u32 %v4800_v60, 16 }
 0x201   : > { %v4879_v7 = vpack.c.bf16 %v1921_v9, %v1920_v16  ;;  %v4881_v10 = vpack.c.bf16 %v1245_v21, %v1244_v11  ;;  %2025 = vrot.lane.b32.xlu0 %v4802_v2, %s4097_s4  ;;  %v2078_v52 = vsel %vm4282_vm2, %v2058_v34, 0  ;;  %v2055_v46 = vrot.slane %v1948_v13, 1 }
 0x202   : > { %v4886_v27 = vpack.c.bf16 %v1919_v51, %v1918_v50  ;;  %v1940_v1 = vrot.slane %v1938_v47, 7  ;;  %v1259_v61 = vrot.slane %v1257_v26, 7  ;;  %v1266_v5 = vrot.slane %v1264_v12, 7 }
 0x203   : > { %2097 = vrot.lane.b32.xlu1 %v2078_v52, %s4098_s5  ;;  %v2061_v20 = vrot.slane %v1969_v17, 1  ;;  %v1295_v6 = vshll.u32 %v4843_v18, 16  ;;  %v1933_v39 = vrot.slane %v1931_v41, 7  ;;  %v1384_v48 = vor.u32 %v1383_v29, %v1278_v23 }
 0x204   : > { %v1945_v49 = vshrl.u32 %v4814_v57, 16  ;;  %v1288_v43 = vshll.u32 %v4849_v28, 16  ;;  %v1962_v54 = vshll.u32 %v4851_v30, 16  ;;  %v1954_v47 = vrot.slane %v1952_v58, 7 }
 0x205   : > { %1349 = vrot.lane.b32.xlu0 %v4812_v31, %s4097_s4  ;;  %v1966_v26 = vshrl.u32 %v4845_v19, 16  ;;  %v1309_v12 = vshll.u32 %v4877_v25, 16  ;;  %v1403_v33 = vsel %vm4282_vm2, %v1382_v55, 0  ;;  %v1273_v37 = vrot.slane %v1271_v36, 7 }
 0x206   : > { %v2056_v41 = vor.u32 %v2055_v46, %v1945_v49  ;;  %v1983_v16 = vshll.u32 %v4879_v7, 16  ;;  %v1285_v3 = vshrl.u32 %v4849_v28, 16  ;;  %v1292_v11 = vshrl.u32 %v4843_v18, 16 }
 0x207   : > { %1421 = vrot.lane.b32.xlu1 %v1403_v33, %s4098_s5  ;;  %v2062_v63 = vor.u32 %v2061_v20, %v1966_v26  ;;  %v1302_v14 = vshll.u32 %v4881_v10, 16  ;;  %v1976_v9 = vshll.u32 %v4886_v27, 16  ;;  %v1404_v21 = vsel %vm4282_vm2, %v1384_v48, 0 }
 0x208   : > { %v5474_v50 = vshrl.u32 %v4851_v30, 16  ;;  %v1280_v51 = vrot.slane %v1278_v23, 7  ;;  %v1385_v58 = vrot.slane %v1288_v43, 1  ;;  %v1299_v59 = vshrl.u32 %v4881_v10, 16 }
 0x209   : > { %1423 = vrot.lane.b32.xlu0 %v1404_v21, %s4098_s5  ;;  %v5475_v35 = vshrl.u32 %v4886_v27, 16  ;;  %v1947_v34 = vrot.slane %v1945_v49, 7  ;;  %v2077_v36 = vsel %vm4282_vm2, %v2056_v41, 0  ;;  %v1968_v29 = vrot.slane %v1966_v26, 7 }
 0x20a   : > { %v1306_v52 = vshrl.u32 %v4877_v25, 16  ;;  %v2080_v55 = vsel %vm4282_vm2, %v2062_v63, 0  ;;  %v1287_v23 = vrot.slane %v1285_v3, 7  ;;  %v1294_v46 = vrot.slane %v1292_v11, 7 }
 0x20b   : > { %2095 = vrot.lane.b32.xlu1 %v2077_v36, %s4098_s5  ;;  %v1387_v20 = vrot.slane %v1295_v6, 1  ;;  %v1961_v48 = vrot.slane %v5474_v50, 7  ;;  %v2059_v49 = vrot.slane %v1962_v54, 1  ;;  %v1980_v26 = vshrl.u32 %v4879_v7, 16 }
 0x20c   : > { %v1269_v33 = vor.u32 %v1267_v32, %v1266_v5  ;;  %v1301_v41 = vrot.slane %v1299_v59, 7  ;;  %v1975_v63 = vrot.slane %v5475_v35, 7  ;;  %v1936_v21 = vor.u32 %v1934_v40, %v1933_v39  ;;  %v4967_v35 = vld [vmem:[%s5471_s1 + $0x18] sm:$0x3f]  }
 0x20d   : > { %1355 = vrot.lane.b32.xlu0 %v4843_v18, %s4097_s4  ;;  %v1943_v36 = vor.u32 %v1941_v42, %v1940_v1  ;;  %v1386_v50 = vor.u32 %v1385_v58, %v1285_v3  ;;  %v1308_v4 = vrot.slane %v1306_v52, 7  ;;  %v1262_v5 = vor.u32 %v1260_v22, %v1259_v61 }
 0x20e   : > { %v1321_v32 = vsel %vm4418_vm6, 0, %v1269_v33  ;;  %v1994_v44 = vsel %vm4418_vm6, 0, %v1936_v21  ;;  %v2175_v42 = vsel %vm824_vm7, %v4798_v56, 0  ;;  %v2696_v22 = vsel %vm824_vm7, %v4810_v0, 0 }
 0x20f   : > { %2027 = vrot.lane.b32.xlu1 %v4851_v30, %s4097_s4  ;;  %1330 = vst.msk [vmem:[#allocation3 + $0x10] sm:$0xff] %vm528_vm5, %v1321_v32  ;;  %v1995_v15 = vsel %vm4418_vm6, 0, %v1943_v36  ;;  %v1982_v40 = vrot.slane %v1980_v26, 7  ;;  %2003 = vst.msk [vmem:[#allocation3 + $0x48] sm:$0xff] %vm528_vm5, %v1994_v44  ;;  %v1320_v1 = vsel %vm4418_vm6, 0, %v1262_v5  ;;  %3787 = vmatpush3.bf16.msra.mxu0 %v2175_v42  ;;  %v1283_v61 = vor.u32 %v1281_v24, %v1280_v51 }
 0x210   : > { %2004 = vst.msk [vmem:[#allocation3 + $0x50] sm:$0xff] %vm528_vm5, %v1995_v15  ;;  %3841 = vmatpush3.bf16.msra.mxu1 %v2696_v22  ;;  %v1950_v56 = vor.u32 %v1948_v13, %v1947_v34  ;;  %1329 = vst.msk [vmem:[#allocation3 + $0x8] sm:$0xff] %vm528_vm5, %v1320_v1  ;;  %v1957_v0 = vor.u32 %v1955_v38, %v1954_v47  ;;  %v1276_v39 = vor.u32 %v1274_v45, %v1273_v37  ;;  %v5129_v5 = vld [vmem:[%s5471_s1 + $0x28] sm:$0x3f]  }
 0x211   : > { %2029 = vrot.lane.b32.xlu0 %v4845_v19, %s4097_s4  ;;  %v1297_v3 = vor.u32 %v1295_v6, %v1294_v46  ;;  %v1964_v60 = vor.u32 %v1962_v54, %v1961_v48  ;;  %v1323_v57 = vsel %vm4418_vm6, 0, %v1283_v61  ;;  %v1971_v13 = vor.u32 %v1969_v17, %v1968_v29  ;;  %4029 = vmatprep.subr.msk.bf16.mxu0 %vm824_vm7, %v4967_v35 }
 0x212   : > { %v1996_v24 = vsel %vm4418_vm6, 0, %v1950_v56  ;;  %v1290_v2 = vor.u32 %v1288_v43, %v1287_v23  ;;  %4032 = vmatprep.subr.msk.bf16.mxu1 %vm824_vm7, %v4972_v8  ;;  %1332 = vst.msk [vmem:[#allocation3 + $0x20] sm:$0xff] %vm528_vm5, %v1323_v57  ;;  %v1997_v31 = vsel %vm4418_vm6, 0, %v1957_v0  ;;  %v1322_v19 = vsel %vm4418_vm6, 0, %v1276_v39 }
 0x213   : > { %2101 = vrot.lane.b32.xlu1 %v2080_v55, %s4098_s5  ;;  %2005 = vst.msk [vmem:[#allocation3 + $0x58] sm:$0xff] %vm528_vm5, %v1996_v24  ;;  %v1325_v38 = vsel %vm4418_vm6, 0, %v1297_v3  ;;  %v1998_v45 = vsel %vm4418_vm6, 0, %v1964_v60  ;;  %v1388_v17 = vor.u32 %v1387_v20, %v1292_v11  ;;  %2006 = vst.msk [vmem:[#allocation3 + $0x60] sm:$0xff] %vm528_vm5, %v1997_v31  ;;  %v1999_v6 = vsel %vm4418_vm6, 0, %v1971_v13 }
 0x214   : > { %1331 = vst.msk [vmem:[#allocation3 + $0x18] sm:$0xff] %vm528_vm5, %v1322_v19  ;;  %1334 = vst.msk [vmem:[#allocation3 + $0x30] sm:$0xff] %vm528_vm5, %v1325_v38  ;;  %v1324_v43 = vsel %vm4418_vm6, 0, %v1290_v2  ;;  %v1311_v18 = vor.u32 %v1309_v12, %v1308_v4  ;;  %v1978_v54 = vor.u32 %v1976_v9, %v1975_v63  ;;  %v1985_v47 = vor.u32 %v1983_v16, %v1982_v40  ;;  %v5143_v40 = vld [vmem:[%s5471_s1 + $0x28] sm:$0x3f]  }
 0x215   : > { %2007 = vst.msk [vmem:[#allocation3 + $0x68] sm:$0xff] %vm528_vm5, %v1998_v45  ;;  %1353 = vrot.lane.b32.xlu0 %v4849_v28, %s4097_s4  ;;  %2008 = vst.msk [vmem:[#allocation3 + $0x70] sm:$0xff] %vm528_vm5, %v1999_v6  ;;  %v1304_v37 = vor.u32 %v1302_v14, %v1301_v41  ;;  %v1405_v11 = vsel %vm4282_vm2, %v1386_v50, 0  ;;  %v5481_v28 = vshrl.u32 %v4851_v30, 16  ;;  %v1406_v50 = vsel %vm4282_vm2, %v1388_v17, 0 }
 0x216   : > { %1333 = vst.msk [vmem:[#allocation3 + $0x28] sm:$0xff] %vm528_vm5, %v1324_v43  ;;  %v1327_v58 = vsel %vm4418_vm6, 0, %v1311_v18  ;;  %v2000_v34 = vsel %vm4418_vm6, 0, %v1978_v54  ;;  %v2001_v29 = vsel %vm4418_vm6, 0, %v1985_v47  ;;  %v1389_v53 = vrot.slane %v1302_v14, 1 }
 0x217   : > { %v2060_v51 = vor.u32 %v2059_v49, %v5481_v28  ;;  %1425 = vrot.lane.b32.xlu1 %v1405_v11, %s4098_s5  ;;  %v1326_v55 = vsel %vm4418_vm6, 0, %v1304_v37  ;;  %1336 = vst.msk [vmem:[#allocation3 + $0x40] sm:$0xff] %vm528_vm5, %v1327_v58  ;;  %2009 = vst.msk [vmem:[#allocation3 + $0x78] sm:$0xff] %vm528_vm5, %v2000_v34  ;;  %v2063_v46 = vrot.slane %v1976_v9, 1  ;;  %v1391_v20 = vrot.slane %v1309_v12, 1 }
 0x218   : > { %2010 = vst.msk [vmem:[#allocation3 + $0x80] sm:$0xff] %vm528_vm5, %v2001_v29  ;;  %1335 = vst.msk [vmem:[#allocation3 + $0x38] sm:$0xff] %vm528_vm5, %v1326_v55  ;;  %v1390_v23 = vor.u32 %v1389_v53, %v1299_v59  ;;  %v5482_v48 = vshrl.u32 %v4886_v27, 16  ;;  %v2065_v59 = vrot.slane %v1983_v16, 1  ;;  %v2304_v32 = vsel %vm824_vm7, %v4967_v35, 0 }
 0x219   : > { %1427 = vrot.lane.b32.xlu0 %v1406_v50, %s4098_s5  ;;  %v2079_v30 = vsel %vm4282_vm2, %v2060_v51, 0  ;;  %v1392_v9 = vor.u32 %v1391_v20, %v1306_v52  ;;  %v2825_v35 = vsel %vm824_vm7, %v4972_v8, 0  ;;  %v2965_v20 = vsel %vm824_vm7, %v5143_v40, 0 }
 0x21a   : > { %v1407_v14 = vsel %vm4282_vm2, %v1390_v23, 0  ;;  %v2064_v49 = vor.u32 %v2063_v46, %v5482_v48  ;;  %v2066_v33 = vor.u32 %v2065_v59, %v1980_v26  ;;  %v2445_v46 = vsel %vm824_vm7, %v5129_v5, 0  ;;  %v5254_v48 = vld [vmem:[%s5472_s2 + $0x1] ss:$0 sm:$0xff]  ;;  %v2583_v59 = vld [vmem:[%s4234_s30 + $0x10] sm:$0xff] }
 0x21b   : > { %2099 = vrot.lane.b32.xlu1 %v2079_v30, %s4098_s5  ;;  %v2123_v30 = vld [vmem:[#allocation3] sm:$0xff] }
 0x21c   : > { %v2081_v12 = vsel %vm4282_vm2, %v2064_v49, 0 }
 0x21d   : > { %1359 = vrot.lane.b32.xlu0 %v4877_v25, %s4097_s4  ;;  %v2082_v25 = vsel %vm4282_vm2, %v2066_v33, 0  ;;  %v2581_v33 = vld [vmem:[%s4234_s30] sm:$0xff] }
 0x21f   : > { %2031 = vrot.lane.b32.xlu1 %v4886_v27, %s4097_s4  ;;  %v1408_v27 = vsel %vm4282_vm2, %v1392_v9, 0 }
 0x221   : > { %2033 = vrot.lane.b32.xlu0 %v4879_v7, %s4097_s4 }
 0x223   : > { %1429 = vrot.lane.b32.xlu1 %v1407_v14, %s4098_s5  ;;  %v2932_v14 = vld [vmem:[#allocation3 + $0x88] sm:$0xff] }
 0x225   : > { %1357 = vrot.lane.b32.xlu0 %v4881_v10, %s4097_s4 }
 0x227   : > { %2103 = vrot.lane.b32.xlu1 %v2081_v12, %s4098_s5 }
 0x229   : > { %1431 = vrot.lane.b32.xlu0 %v1408_v27, %s4098_s5 }
 0x22b   : > { %2105 = vrot.lane.b32.xlu1 %v2082_v25, %s4098_s5 }
 0x25c   : > { %v1348_v16 = vpop.permute.xlu0 %1347 }
 0x25d   : > { %1370 = vst.msk [vmem:[#allocation3 + $0x10] sm:$0xff] %vm609_vm9, %v1348_v16  ;;  %v2584_v16 = vld [vmem:[%s4234_s30 + $0x18] sm:$0xff] }
 0x25e   : > { %v2020_v10 = vpop.permute.xlu1 %2019 }
 0x25f   : > { %2043 = vst.msk [vmem:[#allocation3 + $0x48] sm:$0xff] %vm609_vm9, %v2020_v10 }
 0x260   : > { %v2022_v7 = vpop.permute.xlu0 %2021 }
 0x261   : > { %2044 = vst.msk [vmem:[#allocation3 + $0x50] sm:$0xff] %vm609_vm9, %v2022_v7  ;;  %v3533_v7 = vld [vmem:[%s4234_s30 + $0x90] sm:$0xff] }
 0x264   : > { %v1346_v52 = vpop.permute.xlu0 %1345  ;;  %v2094_v26 = vpop.permute.xlu1 %2093 }
 0x265   : > { %1369 = vst.msk [vmem:[#allocation3 + $0x8] sm:$0xff] %vm609_vm9, %v1346_v52 }
 0x266   : > { %2116 = vst.msk [vmem:[#allocation3 + $0x50] sm:$0xff] %vm757_vm10, %v2094_v26 }
 0x268   : > { %v1418_v41 = vpop.permute.xlu1 %1417 }
 0x269   : > { %1441 = vst.msk [vmem:[#allocation3 + $0x8] sm:$0xff] %vm757_vm10, %v1418_v41 }
 0x26b   : > { %v1420_v62 = vpop.permute.xlu0 %1419 }
 0x26c   : > { %1442 = vst.msk [vmem:[#allocation3 + $0x10] sm:$0xff] %vm757_vm10, %v1420_v62  ;;  %v2582_v62 = vld [vmem:[%s4234_s30 + $0x8] sm:$0xff] }
 0x26d   : > { %v2092_v63 = vpop.permute.xlu1 %2091  ;;  %v5148_v1 = vld [vmem:[#allocation3 + $0x50] sm:$0xff] }
 0x26e   : > { %2115 = vst.msk [vmem:[#allocation3 + $0x48] sm:$0xff] %vm757_vm10, %v2092_v63 }
 0x26f   : > { %v1352_v36 = vpop.permute.xlu0 %1351 }
 0x270   : > { %v5118_v21 = vld [vmem:[#allocation3 + $0x8] sm:$0xff]  ;;  %1372 = vst.msk [vmem:[#allocation3 + $0x20] sm:$0xff] %vm609_vm9, %v1352_v36  ;;  %v3531_v36 = vld [vmem:[%s4234_s30 + $0x80] sm:$0xff] }
 0x271   : > { %3788 = vmatprep.mubr.msk.bf16.mxu0 %vm325_vm8, %v5118_v21  ;;  %v2024_v4 = vpop.permute.xlu1 %2023 }
 0x272   : > { %2045 = vst.msk [vmem:[#allocation3 + $0x58] sm:$0xff] %vm609_vm9, %v2024_v4 }
 0x273   : > { %v2026_v44 = vpop.permute.xlu0 %2025  ;;  %v5131_v15 = vld [vmem:[#allocation3 + $0x10] sm:$0xff] }
 0x274   : > { %2046 = vst.msk [vmem:[#allocation3 + $0x60] sm:$0xff] %vm609_vm9, %v2026_v44  ;;  %3789 = vmatmul.mubr.msk.bf16.vlgmr.msra.gmra.mrb[16].mxu0 %vm325_vm8, %v5131_v15 }
 0x275   : > { %v2098_v42 = vpop.permute.xlu1 %2097  ;;  %v5136_v22 = vld [vmem:[#allocation3 + $0x48] sm:$0xff]  ;;  %3805 = vmatpush3.bf16.msra.mxu0 %v2304_v32 }
 0x276   : > { %2118 = vst.msk [vmem:[#allocation3 + $0x60] sm:$0xff] %vm757_vm10, %v2098_v42  ;;  %3842 = vmatprep.mubr.msk.bf16.mxu1 %vm325_vm8, %v5136_v22  ;;  %4030 = vmatprep.subr.msk.bf16.mxu0 %vm824_vm7, %v5129_v5 }
 0x277   : > { %v1350_v61 = vpop.permute.xlu0 %1349  ;;  %3843 = vmatmul.mubr.msk.bf16.vlgmr.msra.gmra.mrb[16].mxu1 %vm325_vm8, %v5148_v1 }
 0x278   : > { %1371 = vst.msk [vmem:[#allocation3 + $0x18] sm:$0xff] %vm609_vm9, %v1350_v61  ;;  %3859 = vmatpush3.bf16.msra.mxu1 %v2825_v35  ;;  %v3532_v61 = vld [vmem:[%s4234_s30 + $0x88] sm:$0xff] }
 0x279   : > { %v1422_v8 = vpop.permute.xlu1 %1421  ;;  %4033 = vmatprep.subr.msk.bf16.mxu1 %vm824_vm7, %v5143_v40 }
 0x27a   : > { %1443 = vst.msk [vmem:[#allocation3 + $0x18] sm:$0xff] %vm757_vm10, %v1422_v8 }
 0x27b   : > { %v1424_v56 = vpop.permute.xlu0 %1423 }
 0x27c   : > { %1444 = vst.msk [vmem:[#allocation3 + $0x20] sm:$0xff] %vm757_vm10, %v1424_v56 }
 0x27d   : > { %v2096_v0 = vpop.permute.xlu1 %2095  ;;  %v5176_v31 = vld [vmem:[#allocation3 + $0x60] sm:$0xff] }
 0x27e   : > { %2117 = vst.msk [vmem:[#allocation3 + $0x58] sm:$0xff] %vm757_vm10, %v2096_v0 }
 0x27f   : > { %v1356_v39 = vpop.permute.xlu0 %1355 }
 0x280   : > { %1374 = vst.msk [vmem:[#allocation3 + $0x30] sm:$0xff] %vm609_vm9, %v1356_v39 }
 0x281   : > { %v2028_v3 = vpop.permute.xlu1 %2027  ;;  %v5161_v60 = vld [vmem:[#allocation3 + $0x18] sm:$0xff] }
 0x282   : > { %2047 = vst.msk [vmem:[#allocation3 + $0x68] sm:$0xff] %vm609_vm9, %v2028_v3  ;;  %3792 = vmatprep.mubr.msk.bf16.mxu0 %vm325_vm8, %v5161_v60 }
 0x283   : > { %v2030_v57 = vpop.permute.xlu0 %2029  ;;  %v5166_v24 = vld [vmem:[#allocation3 + $0x20] sm:$0xff] }
 0x284   : > { %2048 = vst.msk [vmem:[#allocation3 + $0x70] sm:$0xff] %vm609_vm9, %v2030_v57  ;;  %3793 = vmatmul.mubr.msk.bf16.gmra.mrb[20].mxu0 %vm325_vm8, %v5166_v24 }
 0x285   : > { %v2102_v13 = vpop.permute.xlu1 %2101  ;;  %v5171_v2 = vld [vmem:[#allocation3 + $0x58] sm:$0xff] }
 0x286   : > { %2120 = vst.msk [vmem:[#allocation3 + $0x70] sm:$0xff] %vm757_vm10, %v2102_v13  ;;  %3846 = vmatprep.mubr.msk.bf16.mxu1 %vm325_vm8, %v5171_v2 }
 0x287   : > { %v1354_v19 = vpop.permute.xlu0 %1353  ;;  %3847 = vmatmul.mubr.msk.bf16.gmra.mrb[20].mxu1 %vm325_vm8, %v5176_v31 }
 0x288   : > { %1373 = vst.msk [vmem:[#allocation3 + $0x28] sm:$0xff] %vm609_vm9, %v1354_v19  ;;  %v2587_v19 = vld [vmem:[%s4234_s30 + $0x30] sm:$0xff] }
 0x289   : > { %v1426_v38 = vpop.permute.xlu1 %1425 }
 0x28a   : > { %1445 = vst.msk [vmem:[#allocation3 + $0x28] sm:$0xff] %vm757_vm10, %v1426_v38 }
 0x28b   : > { %v1428_v45 = vpop.permute.xlu0 %1427 }
 0x28c   : > { %1446 = vst.msk [vmem:[#allocation3 + $0x30] sm:$0xff] %vm757_vm10, %v1428_v45 }
 0x28d   : > { %v2100_v17 = vpop.permute.xlu1 %2099  ;;  %v2661_v28 = vld [vmem:[#allocation3 + $0x70] sm:$0xff] }
 0x28e   : > { %2119 = vst.msk [vmem:[#allocation3 + $0x68] sm:$0xff] %vm757_vm10, %v2100_v17 }
 0x28f   : > { %v1360_v6 = vpop.permute.xlu0 %1359 }
 0x290   : > { %1376 = vst.msk [vmem:[#allocation3 + $0x40] sm:$0xff] %vm609_vm9, %v1360_v6  ;;  %v2585_v6 = vld [vmem:[%s4234_s30 + $0x20] sm:$0xff] }
 0x291   : > { %v2032_v43 = vpop.permute.xlu1 %2031  ;;  %v2138_v18 = vld [vmem:[#allocation3 + $0x28] sm:$0xff] }
 0x292   : > { %2049 = vst.msk [vmem:[#allocation3 + $0x78] sm:$0xff] %vm609_vm9, %v2032_v43  ;;  %3796 = vmatprep.mubr.msk.bf16.mxu0 %vm325_vm8, %v2138_v18 }
 0x293   : > { %v2034_v54 = vpop.permute.xlu0 %2033  ;;  %v2139_v47 = vld [vmem:[#allocation3 + $0x30] sm:$0xff] }
 0x294   : > { %2050 = vst.msk [vmem:[#allocation3 + $0x80] sm:$0xff] %vm609_vm9, %v2034_v54  ;;  %3797 = vmatmul.mubr.msk.bf16.gmra.mrb[24].mxu0 %vm325_vm8, %v2139_v47 }
 0x295   : > { %v1430_v37 = vpop.permute.xlu1 %1429  ;;  %v2660_v11 = vld [vmem:[#allocation3 + $0x68] sm:$0xff] }
 0x296   : > { %3850 = vmatprep.mubr.msk.bf16.mxu1 %vm325_vm8, %v2660_v11 }
 0x297   : > { %v1358_v51 = vpop.permute.xlu0 %1357  ;;  %3851 = vmatmul.mubr.msk.bf16.gmra.mrb[24].mxu1 %vm325_vm8, %v2661_v28 }
 0x298   : > { %1375 = vst.msk [vmem:[#allocation3 + $0x38] sm:$0xff] %vm609_vm9, %v1358_v51 }
 0x299   : > { %1447 = vst.msk [vmem:[#allocation3 + $0x38] sm:$0xff] %vm757_vm10, %v1430_v37  ;;  %v2104_v58 = vpop.permute.xlu1 %2103 }
 0x29a   : > { %2121 = vst.msk [vmem:[#allocation3 + $0x78] sm:$0xff] %vm757_vm10, %v2104_v58 }
 0x29b   : > { %v1432_v34 = vpop.permute.xlu0 %1431 }
 0x29c   : > { %1448 = vst.msk [vmem:[#allocation3 + $0x40] sm:$0xff] %vm757_vm10, %v1432_v34  ;;  %v2586_v34 = vld [vmem:[%s4234_s30 + $0x28] sm:$0xff] }
 0x29d   : > { %v2106_v29 = vpop.permute.xlu1 %2105 }
 0x29e   : > { %2122 = vst.msk [vmem:[#allocation3 + $0x80] sm:$0xff] %vm757_vm10, %v2106_v29 }
 0x2a0   : > { %v2140_v55 = vld [vmem:[#allocation3 + $0x38] sm:$0xff] }
 0x2a1   : > { %3800 = vmatprep.mubr.msk.bf16.mxu0 %vm325_vm8, %v2140_v55  ;;  %v2662_v50 = vld [vmem:[#allocation3 + $0x78] sm:$0xff] }
 0x2a2   : > { %3854 = vmatprep.mubr.msk.bf16.mxu1 %vm325_vm8, %v2662_v50 }
 0x2a3   : > { %v2141_v53 = vld [vmem:[#allocation3 + $0x40] sm:$0xff] }
 0x2a4   : > { %3801 = vmatmul.mubr.msk.bf16.gmra.mrb[28].mxu0 %vm325_vm8, %v2141_v53 }
 0x2a5   : > { %v2663_v23 = vld [vmem:[#allocation3 + $0x80] sm:$0xff]  ;;  %3806 = vmatprep.mubr.msk.bf16.mxu0 %vm325_vm8, %v2123_v30 }
 0x2a6   : > { %3855 = vmatmul.mubr.msk.bf16.gmra.mrb[28].mxu1 %vm325_vm8, %v2663_v23 }
 0x2a7   : > { %3860 = vmatprep.mubr.msk.bf16.mxu1 %vm325_vm8, %v2141_v53 }
 0x2ac   : > { %3807 = vmatmul.mubr.msk.bf16.vlgmr.msra.gmra.mrb[16].mxu0 %vm325_vm8, %v5118_v21 }
 0x2ad   : > { %3810 = vmatprep.mubr.msk.bf16.mxu0 %vm325_vm8, %v5131_v15  ;;  %3823 = vmatpush3.bf16.msra.mxu0 %v2445_v46 }
 0x2ae   : > { %3861 = vmatmul.mubr.msk.bf16.vlgmr.msra.gmra.mrb[16].mxu1 %vm325_vm8, %v5136_v22 }
 0x2af   : > { %3877 = vmatpush3.bf16.msra.mxu1 %v2965_v20  ;;  %3864 = vmatprep.mubr.msk.bf16.mxu1 %vm325_vm8, %v5148_v1  ;;  %v3538_v20 = vld [vmem:[%s4234_s30 + $0xb8] sm:$0xff] }
 0x2b4   : > { %3811 = vmatmul.mubr.msk.bf16.gmra.mrb[20].mxu0 %vm325_vm8, %v5161_v60 }
 0x2b5   : > { %3814 = vmatprep.mubr.msk.bf16.mxu0 %vm325_vm8, %v5166_v24 }
 0x2b6   : > { %3865 = vmatmul.mubr.msk.bf16.gmra.mrb[20].mxu1 %vm325_vm8, %v5171_v2 }
 0x2b7   : > { %3868 = vmatprep.mubr.msk.bf16.mxu1 %vm325_vm8, %v5176_v31 }
 0x2bc   : > { %3815 = vmatmul.mubr.msk.bf16.gmra.mrb[24].mxu0 %vm325_vm8, %v2138_v18 }
 0x2bd   : > { %3818 = vmatprep.mubr.msk.bf16.mxu0 %vm325_vm8, %v2139_v47 }
 0x2be   : > { %3869 = vmatmul.mubr.msk.bf16.gmra.mrb[24].mxu1 %vm325_vm8, %v2660_v11 }
 0x2bf   : > { %3872 = vmatprep.mubr.msk.bf16.mxu1 %vm325_vm8, %v2661_v28 }
 0x2c4   : > { %3819 = vmatmul.mubr.msk.bf16.gmra.mrb[28].mxu0 %vm325_vm8, %v2140_v55 }
 0x2c5   : > { %3824 = vmatprep.mubr.msk.bf16.mxu0 %vm325_vm8, %v5131_v15  ;;  %v3534_v15 = vld [vmem:[%s4234_s30 + $0x98] sm:$0xff] }
 0x2c6   : > { %3873 = vmatmul.mubr.msk.bf16.gmra.mrb[28].mxu1 %vm325_vm8, %v2662_v50 }
 0x2c7   : > { %3878 = vmatprep.mubr.msk.bf16.mxu1 %vm325_vm8, %v5148_v1 }
 0x2cc   : > { %3825 = vmatmul.mubr.msk.bf16.vlgmr.msra.gmra.mrb[16].mxu0 %vm325_vm8, %v5161_v60 }
 0x2cd   : > { %3828 = vmatprep.mubr.msk.bf16.mxu0 %vm325_vm8, %v5166_v24 }
 0x2ce   : > { %3879 = vmatmul.mubr.msk.bf16.vlgmr.msra.gmra.mrb[16].mxu1 %vm325_vm8, %v5171_v2 }
 0x2cf   : > { %3882 = vmatprep.mubr.msk.bf16.mxu1 %vm325_vm8, %v5176_v31 }
 0x2d4   : > { %3829 = vmatmul.mubr.msk.bf16.gmra.mrb[20].mxu0 %vm325_vm8, %v2138_v18 }
 0x2d5   : > { %3832 = vmatprep.mubr.msk.bf16.mxu0 %vm325_vm8, %v2139_v47  ;;  %v2588_v47 = vld [vmem:[%s4234_s30 + $0x38] sm:$0xff] }
 0x2d6   : > { %3883 = vmatmul.mubr.msk.bf16.gmra.mrb[20].mxu1 %vm325_vm8, %v2660_v11  ;;  %v3537_v11 = vld [vmem:[%s4234_s30 + $0xb0] sm:$0xff] }
 0x2d7   : > { %3886 = vmatprep.mubr.msk.bf16.mxu1 %vm325_vm8, %v2661_v28 }
 0x2dc   : > { %3833 = vmatmul.mubr.msk.bf16.gmra.mrb[24].mxu0 %vm325_vm8, %v2140_v55 }
 0x2dd   : > { %3836 = vmatprep.mubr.msk.bf16.mxu0 %vm325_vm8, %v2141_v53 }
 0x2de   : > { %3887 = vmatmul.mubr.msk.bf16.gmra.mrb[24].mxu1 %vm325_vm8, %v2662_v50  ;;  %v3535_v50 = vld [vmem:[%s4234_s30 + $0xa0] sm:$0xff] }
 0x2df   : > { %3890 = vmatprep.mubr.msk.bf16.mxu1 %vm325_vm8, %v2663_v23 }
 0x2e4   : > { %3837 = vmatmul.mubr.msk.bf16.gmra.mrb[28].mxu0 %vm325_vm8, %v5136_v22 }
 0x2e6   : > { %3891 = vmatmul.mubr.msk.bf16.gmra.mrb[28].mxu1 %vm325_vm8, %v2932_v14 }
 0x39f   : > { %v3826_v49 = vpop.f32.mrb[16].mxu0 }
 0x3a0   : > { %v2567_v9 = vadd.f32 %v3826_v49, %v5254_v48  ;;  %v2481_v12 = vpop.f32.mrb[17].mxu0 }
 0x3a1   : > { %v2565_v27 = vadd.f32 %v5254_v48, %v2481_v12  ;;  %v3827_v25 = vpop.f32.mrb[18].mxu0  ;;  %v3880_v10 = vpop.f32.mrb[16].mxu1 }
 0x3a2   : > { %v2599_v52 = vadd.f32 %v2583_v59, %v2567_v9  ;;  %v2568_v26 = vadd.f32 %v3827_v25, %v5254_v48  ;;  %v2484_v41 = vpop.f32.mrb[19].mxu0  ;;  %v3087_v63 = vadd.f32 %v3880_v10, %v5254_v48  ;;  %v3001_v21 = vpop.f32.mrb[17].mxu1 }
 0x3a3   : > { %v2597_v4 = vadd.f32 %v2581_v33, %v2565_v27  ;;  %v2566_v32 = vadd.f32 %v5254_v48, %v2484_v41  ;;  %v3085_v5 = vadd.f32 %v5254_v48, %v3001_v21  ;;  %v3881_v44 = vpop.f32.mrb[18].mxu1  ;;  %v3536_v33 = vld [vmem:[%s4234_s30 + $0xa8] sm:$0xff] }
 0x3a4   : > { %v2615_v42 = vmax.f32 %v2599_v52, 0.0  ;;  %v2600_v22 = vadd.f32 %v2584_v16, %v2568_v26  ;;  %v3120_v35 = vadd.f32 %v3533_v7, %v3087_v63  ;;  %v3088_v40 = vadd.f32 %v3881_v44, %v5254_v48  ;;  %v3004_v1 = vpop.f32.mrb[19].mxu1  ;;  %v2589_v44 = vld [vmem:[%s4234_s30 + $0x40] sm:$0xff] }
 0x3a5   : > { %v2613_v8 = vmax.f32 %v2597_v4, 0.0  ;;  %v2598_v56 = vadd.f32 %v2582_v62, %v2566_v32  ;;  %v3118_v0 = vadd.f32 %v3531_v36, %v3085_v5  ;;  %v3086_v39 = vadd.f32 %v5254_v48, %v3004_v1  ;;  %v2591_v36 = vld [vmem:[%s4234_s30 + $0x50] sm:$0xff] }
 0x3a6   : > { %2631 = vst.msk [vmem:[%s5273_s21 + $0x10] sm:$0xff] %vm528_vm5, %v2615_v42  ;;  %v2616_v3 = vmax.f32 %v2600_v22, 0.0  ;;  %v3136_v60 = vmax.f32 %v3120_v35, 0.0  ;;  %v3121_v57 = vadd.f32 %v3534_v15, %v3088_v40  ;;  %v2592_v35 = vld [vmem:[%s4234_s30 + $0x58] sm:$0xff]  ;;  %v3541_v1 = vld [vmem:[%s4234_s30 + $0xd0] sm:$0xff] }
 0x3a7   : > { %2629 = vst.msk [vmem:[%s5273_s21] sm:$0xff] %vm528_vm5, %v2613_v8  ;;  %v2614_v24 = vmax.f32 %v2598_v56, 0.0  ;;  %v3134_v13 = vmax.f32 %v3118_v0, 0.0  ;;  %v3119_v2 = vadd.f32 %v3532_v61, %v3086_v39  ;;  %v3830_v31 = vpop.f32.mrb[20].mxu0  ;;  %v2590_v0 = vld [vmem:[%s4234_s30 + $0x48] sm:$0xff] }
 0x3a8   : > { %2632 = vst.msk [vmem:[%s5273_s21 + $0x18] sm:$0xff] %vm528_vm5, %v2616_v3  ;;  %3549 = vst.msk [vmem:[%s5273_s21 + $0x90] sm:$0xff] %vm528_vm5, %v3136_v60  ;;  %v3137_v38 = vmax.f32 %v3121_v57, 0.0  ;;  %v2571_v45 = vadd.f32 %v3830_v31, %v5254_v48  ;;  %v2497_v17 = vpop.f32.mrb[21].mxu0  ;;  %v3539_v60 = vld [vmem:[%s4234_s30 + $0xc0] sm:$0xff]  ;;  %v3542_v31 = vld [vmem:[%s4234_s30 + $0xd8] sm:$0xff] }
 0x3a9   : > { %2630 = vst.msk [vmem:[%s5273_s21 + $0x8] sm:$0xff] %vm528_vm5, %v2614_v24  ;;  %3547 = vst.msk [vmem:[%s5273_s21 + $0x80] sm:$0xff] %vm528_vm5, %v3134_v13  ;;  %v3135_v43 = vmax.f32 %v3119_v2, 0.0  ;;  %v2569_v18 = vadd.f32 %v5254_v48, %v2497_v17  ;;  %v3831_v54 = vpop.f32.mrb[22].mxu0  ;;  %v3884_v37 = vpop.f32.mrb[20].mxu1 }
 0x3aa   : > { %3550 = vst.msk [vmem:[%s5273_s21 + $0x98] sm:$0xff] %vm528_vm5, %v3137_v38  ;;  %v2603_v28 = vadd.f32 %v2587_v19, %v2571_v45  ;;  %v2572_v51 = vadd.f32 %v3831_v54, %v5254_v48  ;;  %v2500_v58 = vpop.f32.mrb[23].mxu0  ;;  %v3091_v29 = vadd.f32 %v3884_v37, %v5254_v48  ;;  %v3017_v55 = vpop.f32.mrb[21].mxu1 }
 0x3ab   : > { %3548 = vst.msk [vmem:[%s5273_s21 + $0x88] sm:$0xff] %vm528_vm5, %v3135_v43  ;;  %v2601_v30 = vadd.f32 %v2585_v6, %v2569_v18  ;;  %v2570_v53 = vadd.f32 %v5254_v48, %v2500_v58  ;;  %v3089_v23 = vadd.f32 %v5254_v48, %v3017_v55  ;;  %v3885_v46 = vpop.f32.mrb[22].mxu1  ;;  %v3540_v43 = vld [vmem:[%s4234_s30 + $0xc8] sm:$0xff] }
 0x3ac   : > { %v2619_v14 = vmax.f32 %v2603_v28, 0.0  ;;  %v2604_v49 = vadd.f32 %v2588_v47, %v2572_v51  ;;  %v3124_v59 = vadd.f32 %v3537_v11, %v3091_v29  ;;  %v3092_v9 = vadd.f32 %v3885_v46, %v5254_v48  ;;  %v3020_v12 = vpop.f32.mrb[23].mxu1  ;;  %v2593_v46 = vld [vmem:[%s4234_s30 + $0x60] sm:$0xff] }
 0x3ad   : > { %v2617_v27 = vmax.f32 %v2601_v30, 0.0  ;;  %v2602_v25 = vadd.f32 %v2586_v34, %v2570_v53  ;;  %v3122_v16 = vadd.f32 %v3535_v50, %v3089_v23  ;;  %v3090_v10 = vadd.f32 %v5254_v48, %v3020_v12  ;;  %v2595_v50 = vld [vmem:[%s4234_s30 + $0x70] sm:$0xff] }
 0x3ae   : > { %2635 = vst.msk [vmem:[%s5273_s21 + $0x30] sm:$0xff] %vm528_vm5, %v2619_v14  ;;  %v2620_v7 = vmax.f32 %v2604_v49, 0.0  ;;  %v3140_v52 = vmax.f32 %v3124_v59, 0.0  ;;  %v3125_v26 = vadd.f32 %v3538_v20, %v3092_v9  ;;  %v2596_v59 = vld [vmem:[%s4234_s30 + $0x78] sm:$0xff]  ;;  %v3545_v12 = vld [vmem:[%s4234_s30 + $0xf0] sm:$0xff] }
 0x3af   : > { %2633 = vst.msk [vmem:[%s5273_s21 + $0x20] sm:$0xff] %vm528_vm5, %v2617_v27  ;;  %v2618_v41 = vmax.f32 %v2602_v25, 0.0  ;;  %v3138_v62 = vmax.f32 %v3122_v16, 0.0  ;;  %v3123_v63 = vadd.f32 %v3536_v33, %v3090_v10  ;;  %v3834_v21 = vpop.f32.mrb[24].mxu0  ;;  %v2594_v16 = vld [vmem:[%s4234_s30 + $0x68] sm:$0xff] }
 0x3b0   : > { %2636 = vst.msk [vmem:[%s5273_s21 + $0x38] sm:$0xff] %vm528_vm5, %v2620_v7  ;;  %3553 = vst.msk [vmem:[%s5273_s21 + $0xb0] sm:$0xff] %vm528_vm5, %v3140_v52  ;;  %v3141_v4 = vmax.f32 %v3125_v26, 0.0  ;;  %v2575_v32 = vadd.f32 %v3834_v21, %v5254_v48  ;;  %v2513_v5 = vpop.f32.mrb[25].mxu0  ;;  %v3543_v52 = vld [vmem:[%s4234_s30 + $0xe0] sm:$0xff]  ;;  %v3546_v21 = vld [vmem:[%s4234_s30 + $0xf8] sm:$0xff] }
 0x3b1   : > { %2634 = vst.msk [vmem:[%s5273_s21 + $0x28] sm:$0xff] %vm528_vm5, %v2618_v41  ;;  %3551 = vst.msk [vmem:[%s5273_s21 + $0xa0] sm:$0xff] %vm528_vm5, %v3138_v62  ;;  %v3139_v15 = vmax.f32 %v3123_v63, 0.0  ;;  %v2573_v42 = vadd.f32 %v5254_v48, %v2513_v5  ;;  %v3835_v22 = vpop.f32.mrb[26].mxu0  ;;  %v3888_v40 = vpop.f32.mrb[24].mxu1 }
 0x3b2   : > { %3554 = vst.msk [vmem:[%s5273_s21 + $0xb8] sm:$0xff] %vm528_vm5, %v3141_v4  ;;  %v2607_v61 = vadd.f32 %v2591_v36, %v2575_v32  ;;  %v2576_v8 = vadd.f32 %v3835_v22, %v5254_v48  ;;  %v2516_v56 = vpop.f32.mrb[27].mxu0  ;;  %v3095_v39 = vadd.f32 %v3888_v40, %v5254_v48  ;;  %v3033_v3 = vpop.f32.mrb[25].mxu1 }
 0x3b3   : > { %3552 = vst.msk [vmem:[%s5273_s21 + $0xa8] sm:$0xff] %vm528_vm5, %v3139_v15  ;;  %v2605_v57 = vadd.f32 %v2589_v44, %v2573_v42  ;;  %v2574_v24 = vadd.f32 %v5254_v48, %v2516_v56  ;;  %v3093_v13 = vadd.f32 %v5254_v48, %v3033_v3  ;;  %v3889_v2 = vpop.f32.mrb[26].mxu1  ;;  %v3544_v15 = vld [vmem:[%s4234_s30 + $0xe8] sm:$0xff] }
 0x3b4   : > { %v2623_v19 = vmax.f32 %v2607_v61, 0.0  ;;  %v2608_v38 = vadd.f32 %v2592_v35, %v2576_v8  ;;  %v3128_v45 = vadd.f32 %v3541_v1, %v3095_v39  ;;  %v3096_v17 = vadd.f32 %v3889_v2, %v5254_v48  ;;  %v3036_v6 = vpop.f32.mrb[27].mxu1 }
 0x3b5   : > { %v2621_v18 = vmax.f32 %v2605_v57, 0.0  ;;  %v2606_v54 = vadd.f32 %v2590_v0, %v2574_v24  ;;  %v3126_v47 = vadd.f32 %v3539_v60, %v3093_v13  ;;  %v3094_v37 = vadd.f32 %v5254_v48, %v3036_v6  ;;  %v3266_v60 = vld [vmem:[%s5273_s21] sm:$0xff] (%p4150_p5)  ;;  %v3268_v57 = vld [vmem:[%s5273_s21 + $0x8] sm:$0xff] (%p4150_p5)  ;;  %v3270_v24 = vld [vmem:[%s5273_s21 + $0x10] sm:$0xff] (%p4150_p5) }
 0x3b6   : > { %2639 = vst.msk [vmem:[%s5273_s21 + $0x50] sm:$0xff] %vm528_vm5, %v2623_v19  ;;  %v2624_v11 = vmax.f32 %v2608_v38, 0.0  ;;  %v3144_v28 = vmax.f32 %v3128_v45, 0.0  ;;  %v3129_v51 = vadd.f32 %v3542_v31, %v3096_v17  ;;  %v3272_v13 = vld [vmem:[%s5273_s21 + $0x18] sm:$0xff] (%p4150_p5)  ;;  %v3274_v2 = vld [vmem:[%s5273_s21 + $0x20] sm:$0xff] (%p4150_p5)  ;;  %3267 = vst [vmem:[%s5397_s20] sm:$0xff] (%p4150_p5), %v3266_v60 }
 0x3b7   : > { %2637 = vst.msk [vmem:[%s5273_s21 + $0x40] sm:$0xff] %vm528_vm5, %v2621_v18  ;;  %v2622_v58 = vmax.f32 %v2606_v54, 0.0  ;;  %v3142_v34 = vmax.f32 %v3126_v47, 0.0  ;;  %v3127_v29 = vadd.f32 %v3540_v43, %v3094_v37  ;;  %v3838_v55 = vpop.f32.mrb[28].mxu0  ;;  %3269 = vst [vmem:[%s5397_s20 + $0x8] sm:$0xff] (%p4150_p5), %v3268_v57  ;;  %v3278_v19 = vld [vmem:[%s5273_s21 + $0x30] sm:$0xff] (%p4150_p5) }
 0x3b8   : > { %2640 = vst.msk [vmem:[%s5273_s21 + $0x58] sm:$0xff] %vm528_vm5, %v2624_v11  ;;  %3557 = vst.msk [vmem:[%s5273_s21 + $0xd0] sm:$0xff] %vm528_vm5, %v3144_v28  ;;  %v3145_v30 = vmax.f32 %v3129_v51, 0.0  ;;  %v2579_v53 = vadd.f32 %v3838_v55, %v5254_v48  ;;  %v2529_v23 = vpop.f32.mrb[29].mxu0  ;;  %v3276_v31 = vld [vmem:[%s5273_s21 + $0x28] sm:$0xff] (%p4150_p5)  ;;  %v3280_v38 = vld [vmem:[%s5273_s21 + $0x38] sm:$0xff] (%p4150_p5) }
 0x3b9   : > { %2638 = vst.msk [vmem:[%s5273_s21 + $0x48] sm:$0xff] %vm528_vm5, %v2622_v58  ;;  %3555 = vst.msk [vmem:[%s5273_s21 + $0xc0] sm:$0xff] %vm528_vm5, %v3142_v34  ;;  %v3143_v20 = vmax.f32 %v3127_v29, 0.0  ;;  %v2577_v14 = vadd.f32 %v5254_v48, %v2529_v23  ;;  %v3839_v49 = vpop.f32.mrb[30].mxu0  ;;  %v3892_v9 = vpop.f32.mrb[28].mxu1  ;;  %v3298_v11 = vld [vmem:[%s5273_s21 + $0x80] sm:$0xff] (%p4150_p5) }
 0x3ba   : > { %3558 = vst.msk [vmem:[%s5273_s21 + $0xd8] sm:$0xff] %vm528_vm5, %v3145_v30  ;;  %v2611_v33 = vadd.f32 %v2595_v50, %v2579_v53  ;;  %v2580_v27 = vadd.f32 %v3839_v49, %v5254_v48  ;;  %v2532_v25 = vpop.f32.mrb[31].mxu0  ;;  %v3099_v10 = vadd.f32 %v3892_v9, %v5254_v48  ;;  %v3049_v7 = vpop.f32.mrb[29].mxu1  ;;  %3271 = vst [vmem:[%s5397_s20 + $0x20] sm:$0xff] (%p4150_p5), %v3270_v24  ;;  %v3300_v28 = vld [vmem:[%s5273_s21 + $0x88] sm:$0xff] (%p4150_p5)  ;;  %v3302_v51 = vld [vmem:[%s5273_s21 + $0x90] sm:$0xff] (%p4150_p5) }
 0x3bb   : > { %3556 = vst.msk [vmem:[%s5273_s21 + $0xc8] sm:$0xff] %vm528_vm5, %v3143_v20  ;;  %v2609_v26 = vadd.f32 %v2593_v46, %v2577_v14  ;;  %v2578_v41 = vadd.f32 %v5254_v48, %v2532_v25  ;;  %v3097_v62 = vadd.f32 %v5254_v48, %v3049_v7  ;;  %v3893_v63 = vpop.f32.mrb[30].mxu1  ;;  %3273 = vst [vmem:[%s5397_s20 + $0x28] sm:$0xff] (%p4150_p5), %v3272_v13  ;;  %v3304_v58 = vld [vmem:[%s5273_s21 + $0x98] sm:$0xff] (%p4150_p5)  ;;  %v3306_v34 = vld [vmem:[%s5273_s21 + $0xa0] sm:$0xff] (%p4150_p5) }
 0x3bc   : > { %v2627_v36 = vmax.f32 %v2611_v33, 0.0  ;;  %v2612_v4 = vadd.f32 %v2596_v59, %v2580_v27  ;;  %v3132_v32 = vadd.f32 %v3545_v12, %v3099_v10  ;;  %v3100_v5 = vadd.f32 %v3893_v63, %v5254_v48  ;;  %v3052_v44 = vpop.f32.mrb[31].mxu1  ;;  %3275 = vst [vmem:[%s5397_s20 + $0x40] sm:$0xff] (%p4150_p5), %v3274_v2  ;;  %3277 = vst [vmem:[%s5397_s20 + $0x48] sm:$0xff] (%p4150_p5), %v3276_v31  ;;  %v3308_v29 = vld [vmem:[%s5273_s21 + $0xa8] sm:$0xff] (%p4150_p5)  ;;  %v3310_v55 = vld [vmem:[%s5273_s21 + $0xb0] sm:$0xff] (%p4150_p5) }
 0x3bd   : > { %v2625_v42 = vmax.f32 %v2609_v26, 0.0  ;;  %v2610_v22 = vadd.f32 %v2594_v16, %v2578_v41  ;;  %v3130_v35 = vadd.f32 %v3543_v52, %v3097_v62  ;;  %v3098_v40 = vadd.f32 %v5254_v48, %v3052_v44  ;;  %3173 = sbr.rel (!%p4150_p5) target bundleno = 974 (0x3ce), region = 74  ;;  %3279 = vst [vmem:[%s5397_s20 + $0x60] sm:$0xff] (%p4150_p5), %v3278_v19  ;;  %3281 = vst [vmem:[%s5397_s20 + $0x68] sm:$0xff] (%p4150_p5), %v3280_v38  ;;  %v3286_v6 = vld [vmem:[%s5273_s21 + $0x50] sm:$0xff] (%p4150_p5)  ;;  %v3312_v50 = vld [vmem:[%s5273_s21 + $0xb8] sm:$0xff] (%p4150_p5) }
 0x3be   : > { %2643 = vst.msk [vmem:[%s5273_s21 + $0x70] sm:$0xff] %vm528_vm5, %v2627_v36  ;;  %v2628_v1 = vmax.f32 %v2612_v4, 0.0  ;;  %v3148_v61 = vmax.f32 %v3132_v32, 0.0  ;;  %v3133_v8 = vadd.f32 %v3546_v21, %v3100_v5  ;;  %v3282_v45 = vld [vmem:[%s5273_s21 + $0x40] sm:$0xff] (%p4150_p5)  ;;  %3287 = vst [vmem:[%s5397_s20 + $0xa0] sm:$0xff] (%p4150_p5), %v3286_v6 }
 0x3bf   : > { %2641 = vst.msk [vmem:[%s5273_s21 + $0x60] sm:$0xff] %vm528_vm5, %v2625_v42  ;;  %v2626_v56 = vmax.f32 %v2610_v22, 0.0  ;;  %v3146_v0 = vmax.f32 %v3130_v35, 0.0  ;;  %v3131_v39 = vadd.f32 %v3544_v15, %v3098_v40  ;;  %3283 = vst [vmem:[%s5397_s20 + $0x80] sm:$0xff] (%p4150_p5), %v3282_v45  ;;  %v3288_v43 = vld [vmem:[%s5273_s21 + $0x58] sm:$0xff] (%p4150_p5)  ;;  %v3318_v23 = vld [vmem:[%s5273_s21 + $0xd0] sm:$0xff] (%p4150_p5) }
 0x3c0   : > { %2644 = vst.msk [vmem:[%s5273_s21 + $0x78] sm:$0xff] %vm528_vm5, %v2628_v1  ;;  %3561 = vst.msk [vmem:[%s5273_s21 + $0xf0] sm:$0xff] %vm528_vm5, %v3148_v61  ;;  %v3149_v3 = vmax.f32 %v3133_v8, 0.0  ;;  %v3284_v17 = vld [vmem:[%s5273_s21 + $0x48] sm:$0xff] (%p4150_p5)  ;;  %v3314_v30 = vld [vmem:[%s5273_s21 + $0xc0] sm:$0xff] (%p4150_p5) }
 0x3c1   : > { %2642 = vst.msk [vmem:[%s5273_s21 + $0x68] sm:$0xff] %vm528_vm5, %v2626_v56  ;;  %3559 = vst.msk [vmem:[%s5273_s21 + $0xe0] sm:$0xff] %vm528_vm5, %v3146_v0  ;;  %v3147_v48 = vmax.f32 %v3131_v39, 0.0  ;;  %v3320_v46 = vld [vmem:[%s5273_s21 + $0xd8] sm:$0xff] (%p4150_p5) }
 0x3c2   : > { %3562 = vst.msk [vmem:[%s5273_s21 + $0xf8] sm:$0xff] %vm528_vm5, %v3149_v3  ;;  %3285 = vst [vmem:[%s5397_s20 + $0x88] sm:$0xff] (%p4150_p5), %v3284_v17  ;;  %v3316_v53 = vld [vmem:[%s5273_s21 + $0xc8] sm:$0xff] (%p4150_p5) }
 0x3c3   : > { %3560 = vst.msk [vmem:[%s5273_s21 + $0xe8] sm:$0xff] %vm528_vm5, %v3147_v48  ;;  %3289 = vst [vmem:[%s5397_s20 + $0xa8] sm:$0xff] (%p4150_p5), %v3288_v43 }
 0x3c4   : > { %3299 = vst [vmem:[%s5397_s20 + $0x100] sm:$0xff] %v3298_v11  ;;  %3301 = vst [vmem:[%s5397_s20 + $0x108] sm:$0xff] %v3300_v28 }
 0x3c5   : > { %v3294_v47 = vld [vmem:[%s5273_s21 + $0x70] sm:$0xff]  ;;  %3303 = vst [vmem:[%s5397_s20 + $0x120] sm:$0xff] %v3302_v51  ;;  %3305 = vst [vmem:[%s5397_s20 + $0x128] sm:$0xff] %v3304_v58 }
 0x3c6   : > { %v3290_v18 = vld [vmem:[%s5273_s21 + $0x60] sm:$0xff]  ;;  %3295 = vst [vmem:[%s5397_s20 + $0xe0] sm:$0xff] %v3294_v47  ;;  %3307 = vst [vmem:[%s5397_s20 + $0x140] sm:$0xff] %v3306_v34 }
 0x3c7   : > { %3291 = vst [vmem:[%s5397_s20 + $0xc0] sm:$0xff] %v3290_v18  ;;  %v3296_v37 = vld [vmem:[%s5273_s21 + $0x78] sm:$0xff]  ;;  %3309 = vst [vmem:[%s5397_s20 + $0x148] sm:$0xff] %v3308_v29  ;;  %v3326_v49 = vld [vmem:[%s5273_s21 + $0xf0] sm:$0xff] }
 0x3c8   : > { %v3292_v54 = vld [vmem:[%s5273_s21 + $0x68] sm:$0xff]  ;;  %3297 = vst [vmem:[%s5397_s20 + $0xe8] sm:$0xff] %v3296_v37  ;;  %3311 = vst [vmem:[%s5397_s20 + $0x160] sm:$0xff] %v3310_v55  ;;  %v3322_v20 = vld [vmem:[%s5273_s21 + $0xe0] sm:$0xff] }
 0x3c9   : > { %3293 = vst [vmem:[%s5397_s20 + $0xc8] sm:$0xff] %v3292_v54  ;;  %3313 = vst [vmem:[%s5397_s20 + $0x168] sm:$0xff] %v3312_v50  ;;  %v3328_v59 = vld [vmem:[%s5273_s21 + $0xf8] sm:$0xff] }
 0x3ca   : > { %3315 = vst [vmem:[%s5397_s20 + $0x180] sm:$0xff] %v3314_v30  ;;  %3317 = vst [vmem:[%s5397_s20 + $0x188] sm:$0xff] %v3316_v53  ;;  %v3324_v14 = vld [vmem:[%s5273_s21 + $0xe8] sm:$0xff] }
 0x3cb   : > { %3319 = vst [vmem:[%s5397_s20 + $0x1a0] sm:$0xff] %v3318_v23  ;;  %3321 = vst [vmem:[%s5397_s20 + $0x1a8] sm:$0xff] %v3320_v46 }
 0x3cc   : > { %3323 = vst [vmem:[%s5397_s20 + $0x1c0] sm:$0xff] %v3322_v20  ;;  %3325 = vst [vmem:[%s5397_s20 + $0x1c8] sm:$0xff] %v3324_v14 }
 0x3cd   : > { %3327 = vst [vmem:[%s5397_s20 + $0x1e0] sm:$0xff] %v3326_v49  ;;  %3329 = vst [vmem:[%s5397_s20 + $0x1e8] sm:$0xff] %v3328_v59 }
 0x3ce PF: > { %p10_p10 = scmp.ge.s32.totalorder %s4137_s16, 4   ;;  %s5483_s12 = smov %s4091_s13 }
 0x3cf   : > { %s5484_s13 = smov %s4148_s19  ;;  %s5485_s14 = smov %s4137_s16 }
 0x3d0   :  { %12 = sbr.rel (!%p10_p10) target bundleno = 2 (0x2), region = 162 }

// kernel: tpu_custom_call.1
= control target key start
LH: loop header
LB: loop body
LE: loop exit
PB: predicated region body
PF: predicated region fallthrough
CT: control target
= control target key end

     0   :  { %s4120_s12 = smov 0   ;;  %s4122_s13 = smov 0   ;;  %s5470_s0 = inlined_call_operand.vmem [shape: f32[16,2,16,4], index: 0, kind: input, shape index: {}]   ;;  %s5471_s1 = inlined_call_operand.vmem [shape: bf16[2,3,12,4], index: 1, kind: input, shape index: {}]   ;;  %s5472_s2 = inlined_call_operand.vmem [shape: f32[2,4], index: 2, kind: input, shape index: {}]   ;;  %s5473_s3 = inlined_call_operand.vmem [shape: f32[16,2,16,4], index: 3, kind: output, shape index: {}]  }
   0x1   :  { %s4124_s14 = smov 0  }
   0x2 LB: > { %s3389_s15 = sadd.s32 4294967295, %s4095_s14   ;;  %s4137_s16 = sadd.s32 1, %s4095_s14   ;;  %s4095_s14 = sphi %s4124_s14, %s5485_s14   ;;  %s4091_s13 = sphi %s4122_s13, %s5484_s13   ;;  %s4087_s12 = sphi %s4120_s12, %s5483_s12  }
   0x3   : > { %s17_s17 = ssub.s32 %s4095_s14, %s4137_s16  ;;  %s20_s18 = sadd.s32 1, %s4091_s13 }
   0x4   : > { %p18_p0 = scmp.eq.s32.totalorder %s17_s17, 0  ;;  %p27_p1 = scmp.ne.s32.totalorder %s4091_s13, %s4087_s12 }
   0x5   : > { %p28_p2 = scmp.eq.s32.totalorder %s4095_s14, 0  ;;  %p99_p3 = scmp.eq.s32.totalorder %s3389_s15, 1 }
   0x6   : > { %s4148_s19 = scalar_select %p18_p0, %s4091_s13, %s20_s18  }
   0x7   : > { %p29_p4 = por %p28_p2, %p27_p1  ;;  %p4150_p5 = por %p99_p3, %p27_p1 }
   0x8   : > { %p3392_p6 = scmp.ge.s32.totalorder %s4095_s14, 2 }
   0xa   : > { %127 = sbr.rel (%p3392_p6) target bundleno = 37 (0x25), region = 24 }
  0x11   : > { %130 = sbr.rel (!%p29_p4) target bundleno = 37 (0x25), region = 28  ;;  %s132_s21 = sand.u32 (%p29_p4), 1, %s4091_s13  }
  0x12   : > { %s3568_s22 = sshll.u32 (%p29_p4), %s4095_s14, 4  ;;  %s3393_s23 = sshll.u32 (%p29_p4), %s132_s21, 8 }
  0x13   : > { %s4160_s26 = scalar_lea.vmem (%p29_p4), %s5470_s0, %s3568_s22  ;;  %s4165_s27 = scalar_lea.vmem (%p29_p4), [#allocation4], %s3393_s23 }
  0x14   : > { %v227_v0 = vld [vmem:[%s4160_s26] sm:$0xff] (%p29_p4)  ;;  %v229_v1 = vld [vmem:[%s4160_s26 + $0x8] sm:$0xff] (%p29_p4) }
  0x15   : > { %v231_v2 = vld [vmem:[%s4160_s26 + $0x20] sm:$0xff] (%p29_p4)  ;;  %228 = vst [vmem:[%s4165_s27] sm:$0xff] (%p29_p4), %v227_v0  ;;  %230 = vst [vmem:[%s4165_s27 + $0x8] sm:$0xff] (%p29_p4), %v229_v1  ;;  %v233_v3 = vld [vmem:[%s4160_s26 + $0x28] sm:$0xff] (%p29_p4) }
  0x16   : > { %232 = vst [vmem:[%s4165_s27 + $0x10] sm:$0xff] (%p29_p4), %v231_v2  ;;  %v235_v4 = vld [vmem:[%s4160_s26 + $0x40] sm:$0xff] (%p29_p4)  ;;  %v237_v5 = vld [vmem:[%s4160_s26 + $0x48] sm:$0xff] (%p29_p4)  ;;  %234 = vst [vmem:[%s4165_s27 + $0x18] sm:$0xff] (%p29_p4), %v233_v3 }
  0x17   : > { %236 = vst [vmem:[%s4165_s27 + $0x20] sm:$0xff] (%p29_p4), %v235_v4  ;;  %238 = vst [vmem:[%s4165_s27 + $0x28] sm:$0xff] (%p29_p4), %v237_v5  ;;  %v239_v6 = vld [vmem:[%s4160_s26 + $0x60] sm:$0xff] (%p29_p4)  ;;  %v241_v7 = vld [vmem:[%s4160_s26 + $0x68] sm:$0xff] (%p29_p4) }
  0x18   : > { %v243_v8 = vld [vmem:[%s4160_s26 + $0x80] sm:$0xff]  ;;  %240 = vst [vmem:[%s4165_s27 + $0x30] sm:$0xff] %v239_v6  ;;  %242 = vst [vmem:[%s4165_s27 + $0x38] sm:$0xff] %v241_v7  ;;  %v245_v9 = vld [vmem:[%s4160_s26 + $0x88] sm:$0xff] }
  0x19   : > { %244 = vst [vmem:[%s4165_s27 + $0x40] sm:$0xff] %v243_v8  ;;  %v247_v10 = vld [vmem:[%s4160_s26 + $0xa0] sm:$0xff]  ;;  %v249_v11 = vld [vmem:[%s4160_s26 + $0xa8] sm:$0xff]  ;;  %246 = vst [vmem:[%s4165_s27 + $0x48] sm:$0xff] %v245_v9 }
  0x1a   : > { %248 = vst [vmem:[%s4165_s27 + $0x50] sm:$0xff] %v247_v10  ;;  %250 = vst [vmem:[%s4165_s27 + $0x58] sm:$0xff] %v249_v11  ;;  %v251_v12 = vld [vmem:[%s4160_s26 + $0xc0] sm:$0xff]  ;;  %v253_v13 = vld [vmem:[%s4160_s26 + $0xc8] sm:$0xff] }
  0x1b   : > { %v255_v14 = vld [vmem:[%s4160_s26 + $0xe0] sm:$0xff]  ;;  %252 = vst [vmem:[%s4165_s27 + $0x60] sm:$0xff] %v251_v12  ;;  %254 = vst [vmem:[%s4165_s27 + $0x68] sm:$0xff] %v253_v13  ;;  %v257_v15 = vld [vmem:[%s4160_s26 + $0xe8] sm:$0xff] }
  0x1c   : > { %256 = vst [vmem:[%s4165_s27 + $0x70] sm:$0xff] %v255_v14  ;;  %v259_v16 = vld [vmem:[%s4160_s26 + $0x100] sm:$0xff]  ;;  %v261_v17 = vld [vmem:[%s4160_s26 + $0x108] sm:$0xff]  ;;  %258 = vst [vmem:[%s4165_s27 + $0x78] sm:$0xff] %v257_v15 }
  0x1d   : > { %260 = vst [vmem:[%s4165_s27 + $0x80] sm:$0xff] %v259_v16  ;;  %262 = vst [vmem:[%s4165_s27 + $0x88] sm:$0xff] %v261_v17  ;;  %v263_v18 = vld [vmem:[%s4160_s26 + $0x120] sm:$0xff]  ;;  %v265_v19 = vld [vmem:[%s4160_s26 + $0x128] sm:$0xff] }
  0x1e   : > { %v267_v20 = vld [vmem:[%s4160_s26 + $0x140] sm:$0xff]  ;;  %264 = vst [vmem:[%s4165_s27 + $0x90] sm:$0xff] %v263_v18  ;;  %266 = vst [vmem:[%s4165_s27 + $0x98] sm:$0xff] %v265_v19  ;;  %v269_v21 = vld [vmem:[%s4160_s26 + $0x148] sm:$0xff] }
  0x1f   : > { %268 = vst [vmem:[%s4165_s27 + $0xa0] sm:$0xff] %v267_v20  ;;  %v271_v22 = vld [vmem:[%s4160_s26 + $0x160] sm:$0xff]  ;;  %v273_v23 = vld [vmem:[%s4160_s26 + $0x168] sm:$0xff]  ;;  %270 = vst [vmem:[%s4165_s27 + $0xa8] sm:$0xff] %v269_v21 }
  0x20   : > { %272 = vst [vmem:[%s4165_s27 + $0xb0] sm:$0xff] %v271_v22  ;;  %274 = vst [vmem:[%s4165_s27 + $0xb8] sm:$0xff] %v273_v23  ;;  %v275_v24 = vld [vmem:[%s4160_s26 + $0x180] sm:$0xff]  ;;  %v277_v25 = vld [vmem:[%s4160_s26 + $0x188] sm:$0xff] }
  0x21   : > { %v279_v26 = vld [vmem:[%s4160_s26 + $0x1a0] sm:$0xff]  ;;  %276 = vst [vmem:[%s4165_s27 + $0xc0] sm:$0xff] %v275_v24  ;;  %278 = vst [vmem:[%s4165_s27 + $0xc8] sm:$0xff] %v277_v25  ;;  %v281_v27 = vld [vmem:[%s4160_s26 + $0x1a8] sm:$0xff] }
  0x22   : > { %280 = vst [vmem:[%s4165_s27 + $0xd0] sm:$0xff] %v279_v26  ;;  %v283_v28 = vld [vmem:[%s4160_s26 + $0x1c0] sm:$0xff]  ;;  %v285_v29 = vld [vmem:[%s4160_s26 + $0x1c8] sm:$0xff]  ;;  %282 = vst [vmem:[%s4165_s27 + $0xd8] sm:$0xff] %v281_v27 }
  0x23   : > { %284 = vst [vmem:[%s4165_s27 + $0xe0] sm:$0xff] %v283_v28  ;;  %286 = vst [vmem:[%s4165_s27 + $0xe8] sm:$0xff] %v285_v29  ;;  %v287_v30 = vld [vmem:[%s4160_s26 + $0x1e0] sm:$0xff]  ;;  %v289_v31 = vld [vmem:[%s4160_s26 + $0x1e8] sm:$0xff] }
  0x24   : > { %288 = vst [vmem:[%s4165_s27 + $0xf0] sm:$0xff] %v287_v30  ;;  %290 = vst [vmem:[%s4165_s27 + $0xf8] sm:$0xff] %v289_v31 }
  0x25 PF: > { %p3396_p7 = scmp.ge.s32.totalorder %s4095_s14, 1  ;;  %p295_p8 = scmp.lt.s32.totalorder %s4095_s14, 3 }
  0x27   : > { %p296_p9 = pnand %p3396_p7, %p295_p8 }
  0x28   : > { %s302_s28 = sand.u32 (!%p296_p9), 1, %s4087_s12   ;;  %vm674_vm0 = vcmask (!%p296_p9), 1047552   ;;  %s4097_s4 = smov (!%p296_p9), 4   ;;  %vm675_vm1 = vsmask.f32 (!%p296_p9), 7424  ;;  %vm508_vm3 = vcmask (!%p296_p9), 1040384  }
  0x29   : > { %299 = sbr.rel (%p296_p9) target bundleno = 974 (0x3ce), region = 66  ;;  %s4231_s29 = sshll.u32 (!%p296_p9), %s302_s28, 8  ;;  %vm4282_vm2 = vmand (!%p296_p9), %vm674_vm0, %vm675_vm1  ;;  %vm509_vm4 = vsmask.f32 (!%p296_p9), 256  ;;  %vm528_vm5 = vcmask (!%p296_p9), 31744   ;;  %vm824_vm7 = vcmask (!%p296_p9), 1045504  }
  0x2a   : > { %s4234_s30 = scalar_lea.vmem (!%p296_p9), [#allocation4], %s4231_s29  ;;  %s4098_s5 = smov (!%p296_p9), 8   ;;  %vm4418_vm6 = vmand (!%p296_p9), %vm508_vm3, %vm509_vm4  ;;  %vm325_vm8 = vcmask (!%p296_p9), 97280   ;;  %vm609_vm9 = vcmask (!%p296_p9), 64544   ;;  %vm757_vm10 = vcmask (!%p296_p9), 97344  }
  0x2b   : > { %v334_v32 = vld [vmem:[%s4234_s30 + $0x10] sm:$0xff] (!%p296_p9)  ;;  %v335_v33 = vld [vmem:[%s4234_s30 + $0x18] sm:$0xff] (!%p296_p9)  ;;  %v332_v34 = vld [vmem:[%s4234_s30] sm:$0xff] (!%p296_p9)  ;;  %s5273_s21 = scalar_lea.vmem (!%p296_p9), [#allocation5], %s4231_s29 }
  0x2c   : > { %v4239_v35 = vpack.c.bf16 (!%p296_p9), %v335_v33, %v334_v32  ;;  %v333_v36 = vld [vmem:[%s4234_s30 + $0x8] sm:$0xff] (!%p296_p9)  ;;  %v350_v37 = vld [vmem:[%s4234_s30 + $0x90] sm:$0xff] (!%p296_p9)  ;;  %v351_v38 = vld [vmem:[%s4234_s30 + $0x98] sm:$0xff] (!%p296_p9) }
  0x2d   : > { %v4244_v39 = vpack.c.bf16 (!%p296_p9), %v333_v36, %v332_v34  ;;  %v4246_v40 = vpack.c.bf16 (!%p296_p9), %v351_v38, %v350_v37  ;;  %v348_v41 = vld [vmem:[%s4234_s30 + $0x80] sm:$0xff] (!%p296_p9)  ;;  %v349_v42 = vld [vmem:[%s4234_s30 + $0x88] sm:$0xff] (!%p296_p9)  ;;  %v354_v57 = vld [vmem:[%s4234_s30 + $0xb0] sm:$0xff] (!%p296_p9) }
  0x2e   : > { %563 = vrot.lane.b32.xlu1 (!%p296_p9), %v4239_v35, %s4097_s4  ;;  %v4252_v43 = vpack.c.bf16 (!%p296_p9), %v349_v42, %v348_v41  ;;  %v388_v44 = vshrl.u32 (!%p296_p9), %v4239_v35, 16  ;;  %v391_v45 = vshll.u32 (!%p296_p9), %v4239_v35, 16  ;;  %v352_v46 = vld [vmem:[%s4234_s30 + $0xa0] sm:$0xff] (!%p296_p9)  ;;  %v353_v50 = vld [vmem:[%s4234_s30 + $0xa8] sm:$0xff] (!%p296_p9)  ;;  %v355_v58 = vld [vmem:[%s4234_s30 + $0xb8] sm:$0xff] (!%p296_p9) }
  0x2f   : > { %561 = vrot.lane.b32.xlu0 (!%p296_p9), %v4244_v39, %s4097_s4  ;;  %v381_v47 = vshrl.u32 (!%p296_p9), %v4244_v39, 16  ;;  %v384_v48 = vshll.u32 (!%p296_p9), %v4244_v39, 16  ;;  %v447_v49 = vshll.u32 (!%p296_p9), %v4246_v40, 16  ;;  %v336_v51 = vld [vmem:[%s4234_s30 + $0x20] sm:$0xff] (!%p296_p9)  ;;  %v337_v52 = vld [vmem:[%s4234_s30 + $0x28] sm:$0xff] (!%p296_p9)  ;;  %v444_v55 = vshrl.u32 (!%p296_p9), %v4246_v40, 16 }
  0x30   : > { %v437_v53 = vshrl.u32 %v4252_v43, 16  ;;  %v440_v54 = vshll.u32 %v4252_v43, 16  ;;  %v628_v56 = vrot.slane %v391_v45, 1  ;;  %v4286_v63 = vpack.c.bf16 %v353_v50, %v352_v46  ;;  %v338_v0 = vld [vmem:[%s4234_s30 + $0x30] sm:$0xff]  ;;  %v339_v1 = vld [vmem:[%s4234_s30 + $0x38] sm:$0xff]  ;;  %v356_v12 = vld [vmem:[%s4234_s30 + $0xc0] sm:$0xff] }
  0x31   : > { %v626_v59 = vrot.slane %v384_v48, 1  ;;  %v644_v60 = vrot.slane %v447_v49, 1  ;;  %v4292_v3 = vpack.c.bf16 %v337_v52, %v336_v51  ;;  %v4294_v4 = vpack.c.bf16 %v355_v58, %v354_v57  ;;  %v357_v13 = vld [vmem:[%s4234_s30 + $0xc8] sm:$0xff]  ;;  %v340_v16 = vld [vmem:[%s4234_s30 + $0x40] sm:$0xff]  ;;  %v358_v26 = vld [vmem:[%s4234_s30 + $0xd0] sm:$0xff]  ;;  %s3569_s29 = sshll.u32 (%p4150_p5), %s3389_s15, 4 }
  0x32   : > { %579 = vrot.lane.b32.xlu1 %v4246_v40, %s4097_s4  ;;  %v642_v61 = vrot.slane %v440_v54, 1  ;;  %v629_v7 = vor.u32 %v628_v56, %v388_v44  ;;  %v4298_v9 = vpack.c.bf16 %v339_v1, %v338_v0  ;;  %v454_v11 = vshll.u32 %v4286_v63, 16  ;;  %v341_v17 = vld [vmem:[%s4234_s30 + $0x48] sm:$0xff]  ;;  %v359_v27 = vld [vmem:[%s4234_s30 + $0xd8] sm:$0xff]  ;;  %v342_v34 = vld [vmem:[%s4234_s30 + $0x50] sm:$0xff]  ;;  %s5397_s20 = scalar_lea.vmem (%p4150_p5), %s5473_s3, %s3569_s29 }
  0x33   : > { %577 = vrot.lane.b32.xlu0 %v4252_v43, %s4097_s4  ;;  %v627_v2 = vor.u32 %v626_v59, %v381_v47  ;;  %v645_v6 = vor.u32 %v644_v60, %v444_v55  ;;  %v398_v14 = vshll.u32 %v4292_v3, 16  ;;  %v461_v15 = vshll.u32 %v4294_v4, 16  ;;  %v343_v36 = vld [vmem:[%s4234_s30 + $0x58] sm:$0xff]  ;;  %v360_v56 = vld [vmem:[%s4234_s30 + $0xe0] sm:$0xff]  ;;  %v361_v57 = vld [vmem:[%s4234_s30 + $0xe8] sm:$0xff] }
  0x34   : > { %v643_v5 = vor.u32 %v642_v61, %v437_v53  ;;  %v678_v19 = vsel %vm4282_vm2, %v629_v7, 0  ;;  %v4315_v20 = vrot.slane %v388_v44, 7  ;;  %v405_v21 = vshll.u32 %v4298_v9, 16  ;;  %v344_v60 = vld [vmem:[%s4234_s30 + $0x60] sm:$0xff] }
  0x35   : > { %v677_v8 = vsel %vm4282_vm2, %v627_v2, 0  ;;  %v686_v18 = vsel %vm4282_vm2, %v645_v6, 0  ;;  %v4318_v22 = vpack.c.bf16 %v357_v13, %v356_v12  ;;  %v451_v23 = vshrl.u32 %v4286_v63, 16  ;;  %v4062_v12 = vld [vmem:[%s5471_s1 + $0x8] sm:$0x3f]  }
  0x36   : > { %v685_v10 = vsel %vm4282_vm2, %v643_v5, 0  ;;  %v646_v24 = vrot.slane %v454_v11, 1  ;;  %v4323_v25 = vpack.c.bf16 %v341_v17, %v340_v16  ;;  %v395_v28 = vshrl.u32 %v4292_v3, 16  ;;  %v345_v5 = vld [vmem:[%s4234_s30 + $0x68] sm:$0xff]  ;;  %4022 = vmatprep.subr.msk.bf16.mxu0 %vm824_vm7, %v4062_v12 }
  0x37   : > { %725 = vrot.lane.b32.xlu1 %v685_v10, %s4098_s5  ;;  %709 = vrot.lane.b32.xlu0 %v677_v8, %s4098_s5  ;;  %v630_v29 = vrot.slane %v398_v14, 1  ;;  %v458_v30 = vshrl.u32 %v4294_v4, 16  ;;  %v648_v31 = vrot.slane %v461_v15, 1  ;;  %v4335_v32 = vrot.slane %v381_v47, 7  ;;  %v362_v8 = vld [vmem:[%s4234_s30 + $0xf0] sm:$0xff] }
  0x38   : > { %v4337_v33 = vrot.slane %v444_v55, 7  ;;  %v4341_v37 = vrot.slane %v437_v53, 7  ;;  %v402_v38 = vshrl.u32 %v4298_v9, 16  ;;  %v632_v41 = vrot.slane %v405_v21, 1  ;;  %v4061_v10 = vld [vmem:[%s5471_s1 + $0x8] sm:$0x3f]  }
  0x39   : > { %v468_v42 = vshll.u32 %v4318_v22, 16  ;;  %v4347_v44 = vrot.slane %v451_v23, 7  ;;  %v647_v46 = vor.u32 %v646_v24, %v451_v23  ;;  %v4349_v47 = vpack.c.bf16 %v359_v27, %v358_v26  ;;  %v363_v27 = vld [vmem:[%s4234_s30 + $0xf8] sm:$0xff]  ;;  %4025 = vmatprep.subr.msk.bf16.mxu1 %vm824_vm7, %v4061_v10 }
  0x3a   : > { %v412_v50 = vshll.u32 %v4323_v25, 16  ;;  %v4356_v51 = vrot.slane %v395_v28, 7  ;;  %v631_v52 = vor.u32 %v630_v29, %v395_v28  ;;  %v649_v53 = vor.u32 %v648_v31, %v458_v30 }
  0x3b   : > { %727 = vrot.lane.b32.xlu1 %v686_v18, %s4098_s5  ;;  %711 = vrot.lane.b32.xlu0 %v678_v19, %s4098_s5  ;;  %v4358_v55 = vpack.c.bf16 %v343_v36, %v342_v34  ;;  %v4362_v58 = vrot.slane %v458_v30, 7  ;;  %v4364_v59 = vrot.slane %v402_v38, 7  ;;  %v633_v61 = vor.u32 %v632_v41, %v402_v38  ;;  %v346_v34 = vld [vmem:[%s4234_s30 + $0x70] sm:$0xff]  ;;  %v347_v36 = vld [vmem:[%s4234_s30 + $0x78] sm:$0xff] }
  0x3c   : > { %v465_v0 = vshrl.u32 %v4318_v22, 16  ;;  %v650_v1 = vrot.slane %v468_v42, 1  ;;  %v409_v2 = vshrl.u32 %v4323_v25, 16  ;;  %v634_v6 = vrot.slane %v412_v50, 1 }
  0x3d   : > { %v475_v7 = vshll.u32 %v4349_v47, 16  ;;  %v687_v13 = vsel %vm4282_vm2, %v647_v46, 0  ;;  %v679_v16 = vsel %vm4282_vm2, %v631_v52, 0  ;;  %v688_v17 = vsel %vm4282_vm2, %v649_v53, 0 }
  0x3e   : > { %v419_v18 = vshll.u32 %v4358_v55, 16  ;;  %v467_v19 = vrot.slane %v465_v0, 7  ;;  %v472_v23 = vshrl.u32 %v4349_v47, 16  ;;  %v416_v24 = vshrl.u32 %v4358_v55, 16 }
  0x3f   : > { %581 = vrot.lane.b32.xlu1 %v4286_v63, %s4097_s4  ;;  %565 = vrot.lane.b32.xlu0 %v4292_v3, %s4097_s4  ;;  %v4395_v26 = vpack.c.bf16 %v361_v57, %v360_v56  ;;  %v680_v28 = vsel %vm4282_vm2, %v633_v61, 0  ;;  %v4400_v29 = vor.u32 %v650_v1, %v465_v0  ;;  %v411_v30 = vrot.slane %v409_v2, 7 }
  0x40   : > { %v4402_v31 = vpack.c.bf16 %v345_v5, %v344_v60  ;;  %v4406_v38 = vor.u32 %v634_v6, %v409_v2  ;;  %v474_v41 = vrot.slane %v472_v23, 7  ;;  %v4412_v46 = vrot.slane %v475_v7, 1 }
  0x41   : > { %v418_v52 = vrot.slane %v416_v24, 7  ;;  %v4426_v56 = vrot.slane %v419_v18, 1  ;;  %v4428_v57 = vpack.c.bf16 %v363_v27, %v362_v8  ;;  %v393_v60 = vor.u32 %v391_v45, %v4315_v20  ;;  %v4461_v8 = vld [vmem:[%s5471_s1] sm:$0x3f]  }
  0x42   : > { %v4433_v61 = vpack.c.bf16 %v347_v36, %v346_v34  ;;  %v479_v0 = vshrl.u32 %v4395_v26, 16  ;;  %v482_v1 = vshll.u32 %v4395_v26, 16  ;;  %v386_v2 = vor.u32 %v384_v48, %v4335_v32 }
  0x43   : > { %583 = vrot.lane.b32.xlu1 %v4294_v4, %s4097_s4  ;;  %567 = vrot.lane.b32.xlu0 %v4298_v9, %s4097_s4  ;;  %v423_v5 = vshrl.u32 %v4402_v31, 16  ;;  %v426_v35 = vshll.u32 %v4402_v31, 16  ;;  %v512_v45 = vsel %vm4418_vm6, 0, %v393_v60  ;;  %v449_v20 = vor.u32 %v447_v49, %v4337_v33 }
  0x44   : > { %v481_v6 = vrot.slane %v479_v0, 7  ;;  %v486_v39 = vshrl.u32 %v4428_v57, 16  ;;  %530 = vst.msk [vmem:[#allocation2 + $0x10] sm:$0xff] %vm528_vm5, %v512_v45  ;;  %v511_v48 = vsel %vm4418_vm6, 0, %v386_v2  ;;  %v442_v32 = vor.u32 %v440_v54, %v4341_v37 }
  0x45   : > { %v425_v40 = vrot.slane %v423_v5, 7  ;;  %529 = vst.msk [vmem:[#allocation2 + $0x8] sm:$0xff] %vm528_vm5, %v511_v48  ;;  %v520_v49 = vsel %vm4418_vm6, 0, %v449_v20  ;;  %v456_v43 = vor.u32 %v454_v11, %v4347_v44  ;;  %v400_v54 = vor.u32 %v398_v14, %v4356_v51 }
  0x46   : > { %v488_v33 = vrot.slane %v486_v39, 7  ;;  %538 = vst.msk [vmem:[#allocation2 + $0x50] sm:$0xff] %vm528_vm5, %v520_v49  ;;  %v519_v37 = vsel %vm4418_vm6, 0, %v442_v32  ;;  %v407_v11 = vor.u32 %v405_v21, %v4364_v59  ;;  %v826_v14 = vsel %vm824_vm7, %v4062_v12, 0  ;;  %v4509_v21 = vld [vmem:[%s5471_s1] sm:$0x3f]  }
  0x47   : > { %729 = vrot.lane.b32.xlu1 %v687_v13, %s4098_s5  ;;  %713 = vrot.lane.b32.xlu0 %v679_v16, %s4098_s5  ;;  %v1501_v13 = vsel %vm824_vm7, %v4061_v10, 0  ;;  %v463_v16 = vor.u32 %v461_v15, %v4362_v58  ;;  %537 = vst.msk [vmem:[#allocation2 + $0x48] sm:$0xff] %vm528_vm5, %v519_v37  ;;  %v521_v63 = vsel %vm4418_vm6, 0, %v456_v43  ;;  %v513_v3 = vsel %vm4418_vm6, 0, %v400_v54 }
  0x48   : > { %3733 = vmatpush3.bf16.msra.mxu1 %v1501_v13  ;;  %539 = vst.msk [vmem:[#allocation2 + $0x58] sm:$0xff] %vm528_vm5, %v521_v63  ;;  %531 = vst.msk [vmem:[#allocation2 + $0x18] sm:$0xff] %vm528_vm5, %v513_v3  ;;  %3679 = vmatpush3.bf16.msra.mxu0 %v826_v14  ;;  %v470_v15 = vor.u32 %v468_v42, %v467_v19  ;;  %v414_v44 = vor.u32 %v412_v50, %v411_v30  ;;  %v430_v42 = vshrl.u32 %v4433_v61, 16  ;;  %v4642_v63 = vld [vmem:[%s5471_s1 + $0x10] sm:$0x3f]  }
  0x49   : > { %v522_v4 = vsel %vm4418_vm6, 0, %v463_v16  ;;  %v477_v9 = vor.u32 %v475_v7, %v474_v41  ;;  %4026 = vmatprep.subr.msk.bf16.mxu1 %vm824_vm7, %v4461_v8  ;;  %v514_v50 = vsel %vm4418_vm6, 0, %v407_v11  ;;  %v421_v51 = vor.u32 %v419_v18, %v418_v52  ;;  %4023 = vmatprep.subr.msk.bf16.mxu0 %vm824_vm7, %v4509_v21  ;;  %v4637_v16 = vld [vmem:[%s5471_s1 + $0x10] sm:$0x3f]  }
  0x4a   : > { %540 = vst.msk [vmem:[#allocation2 + $0x60] sm:$0xff] %vm528_vm5, %v522_v4  ;;  %v484_v58 = vor.u32 %v482_v1, %v481_v6  ;;  %v489_v59 = vshll.u32 %v4428_v57, 16  ;;  %532 = vst.msk [vmem:[#allocation2 + $0x20] sm:$0xff] %vm528_vm5, %v514_v50  ;;  %v432_v10 = vrot.slane %v430_v42, 7  ;;  %v428_v18 = vor.u32 %v426_v35, %v425_v40 }
  0x4b   : > { %731 = vrot.lane.b32.xlu1 %v688_v17, %s4098_s5  ;;  %715 = vrot.lane.b32.xlu0 %v680_v28, %s4098_s5  ;;  %v524_v7 = vsel %vm4418_vm6, 0, %v477_v9  ;;  %v516_v12 = vsel %vm4418_vm6, 0, %v421_v51  ;;  %v689_v27 = vsel %vm4282_vm2, %v4400_v29, 0  ;;  %v433_v28 = vshll.u32 %v4433_v61, 16 }
  0x4c   : > { %542 = vst.msk [vmem:[#allocation2 + $0x70] sm:$0xff] %vm528_vm5, %v524_v7  ;;  %v525_v17 = vsel %vm4418_vm6, 0, %v484_v58  ;;  %534 = vst.msk [vmem:[#allocation2 + $0x30] sm:$0xff] %vm528_vm5, %v516_v12  ;;  %v491_v19 = vor.u32 %v489_v59, %v488_v33  ;;  %v517_v30 = vsel %vm4418_vm6, 0, %v428_v18  ;;  %v681_v34 = vsel %vm4282_vm2, %v4406_v38, 0 }
  0x4d   : > { %543 = vst.msk [vmem:[#allocation2 + $0x78] sm:$0xff] %vm528_vm5, %v525_v17  ;;  %v653_v36 = vor.u32 %v4412_v46, %v472_v23  ;;  %v637_v41 = vor.u32 %v4426_v56, %v416_v24  ;;  %535 = vst.msk [vmem:[#allocation2 + $0x38] sm:$0xff] %vm528_vm5, %v517_v30  ;;  %v435_v52 = vor.u32 %v433_v28, %v432_v10  ;;  %v654_v24 = vrot.slane %v482_v1, 1 }
  0x4e   : > { %v526_v29 = vsel %vm4418_vm6, 0, %v491_v19  ;;  %v638_v38 = vrot.slane %v426_v35, 1  ;;  %v656_v56 = vrot.slane %v489_v59, 1  ;;  %v640_v2 = vrot.slane %v433_v28, 1 }
  0x4f   : > { %585 = vrot.lane.b32.xlu1 %v4318_v22, %s4097_s4  ;;  %569 = vrot.lane.b32.xlu0 %v4323_v25, %s4097_s4  ;;  %v523_v22 = vsel %vm4418_vm6, 0, %v470_v15  ;;  %v515_v25 = vsel %vm4418_vm6, 0, %v414_v44  ;;  %544 = vst.msk [vmem:[#allocation2 + $0x80] sm:$0xff] %vm528_vm5, %v526_v29  ;;  %v682_v23 = vsel %vm4282_vm2, %v637_v41, 0  ;;  %v655_v46 = vor.u32 %v654_v24, %v479_v0 }
  0x50   : > { %541 = vst.msk [vmem:[#allocation2 + $0x68] sm:$0xff] %vm528_vm5, %v523_v22  ;;  %533 = vst.msk [vmem:[#allocation2 + $0x28] sm:$0xff] %vm528_vm5, %v515_v25  ;;  %v639_v60 = vor.u32 %v638_v38, %v423_v5  ;;  %v657_v35 = vor.u32 %v656_v56, %v486_v39  ;;  %v641_v0 = vor.u32 %v640_v2, %v430_v42  ;;  %v1630_v37 = vsel %vm824_vm7, %v4461_v8, 0 }
  0x51   : > { %v691_v1 = vsel %vm4282_vm2, %v655_v46, 0  ;;  %v955_v13 = vsel %vm824_vm7, %v4509_v21, 0  ;;  %v1096_v2 = vsel %vm824_vm7, %v4642_v63, 0 }
  0x53   : > { %587 = vrot.lane.b32.xlu1 %v4349_v47, %s4097_s4  ;;  %571 = vrot.lane.b32.xlu0 %v4358_v55, %s4097_s4  ;;  %v518_v47 = vsel %vm4418_vm6, 0, %v435_v52  ;;  %v690_v55 = vsel %vm4282_vm2, %v653_v36, 0 }
  0x54   : > { %536 = vst.msk [vmem:[#allocation2 + $0x40] sm:$0xff] %vm528_vm5, %v518_v47 }
  0x57   : > { %733 = vrot.lane.b32.xlu1 %v689_v27, %s4098_s5  ;;  %717 = vrot.lane.b32.xlu0 %v681_v34, %s4098_s5 }
  0x5b   : > { %735 = vrot.lane.b32.xlu1 %v690_v55, %s4098_s5  ;;  %719 = vrot.lane.b32.xlu0 %v682_v23, %s4098_s5 }
  0x5f   : > { %589 = vrot.lane.b32.xlu1 %v4395_v26, %s4097_s4  ;;  %573 = vrot.lane.b32.xlu0 %v4402_v31, %s4097_s4  ;;  %v683_v26 = vsel %vm4282_vm2, %v639_v60, 0  ;;  %v4099_v31 = vmov 0   ;;  %v1770_v60 = vsel %vm824_vm7, %v4637_v16, 0 }
  0x60   : > { %326 = vst.msk [vmem:[#allocation2] sm:$0xff] %vm325_vm8, %v4099_v31  ;;  %328 = vst.msk [vmem:[#allocation2 + $0x88] sm:$0xff] %vm325_vm8, %v4099_v31 }
  0x61   : > { %329 = vst.msk [vmem:[#allocation3] sm:$0xff] %vm325_vm8, %v4099_v31  ;;  %331 = vst.msk [vmem:[#allocation3 + $0x88] sm:$0xff] %vm325_vm8, %v4099_v31 }
  0x63   : > { %591 = vrot.lane.b32.xlu1 %v4428_v57, %s4097_s4  ;;  %575 = vrot.lane.b32.xlu0 %v4433_v61, %s4097_s4  ;;  %v692_v57 = vsel %vm4282_vm2, %v657_v35, 0  ;;  %v684_v61 = vsel %vm4282_vm2, %v641_v0, 0  ;;  %v4756_v35 = vld [vmem:[%s5472_s2] ss:$0 sm:$0xff] }
  0x67   : > { %737 = vrot.lane.b32.xlu1 %v691_v1, %s4098_s5  ;;  %721 = vrot.lane.b32.xlu0 %v683_v26, %s4098_s5  ;;  %v774_v38 = vld [vmem:[#allocation2] sm:$0xff]  ;;  %v1737_v1 = vld [vmem:[#allocation2 + $0x88] sm:$0xff] }
  0x6b   : > { %739 = vrot.lane.b32.xlu1 %v692_v57, %s4098_s5  ;;  %723 = vrot.lane.b32.xlu0 %v684_v61, %s4098_s5 }
  0xa0   : > { %v564_v5 = vpop.permute.xlu1 %563 }
  0xa1   : > { %611 = vst.msk [vmem:[#allocation2 + $0x10] sm:$0xff] %vm609_vm9, %v564_v5  ;;  %v562_v45 = vpop.permute.xlu0 %561 }
  0xa2   : > { %610 = vst.msk [vmem:[#allocation2 + $0x8] sm:$0xff] %vm609_vm9, %v562_v45 }
  0xa4   : > { %v580_v20 = vpop.permute.xlu1 %579 }
  0xa5   : > { %619 = vst.msk [vmem:[#allocation2 + $0x50] sm:$0xff] %vm609_vm9, %v580_v20  ;;  %v578_v6 = vpop.permute.xlu0 %577 }
  0xa6   : > { %618 = vst.msk [vmem:[#allocation2 + $0x48] sm:$0xff] %vm609_vm9, %v578_v6 }
  0xa9   : > { %v726_v39 = vpop.permute.xlu1 %725  ;;  %v710_v48 = vpop.permute.xlu0 %709 }
  0xaa   : > { %766 = vst.msk [vmem:[#allocation2 + $0x48] sm:$0xff] %vm757_vm10, %v726_v39  ;;  %758 = vst.msk [vmem:[#allocation2 + $0x8] sm:$0xff] %vm757_vm10, %v710_v48 }
  0xad   : > { %v728_v32 = vpop.permute.xlu1 %727  ;;  %v712_v40 = vpop.permute.xlu0 %711 }
  0xae   : > { %767 = vst.msk [vmem:[#allocation2 + $0x50] sm:$0xff] %vm757_vm10, %v728_v32  ;;  %759 = vst.msk [vmem:[#allocation2 + $0x10] sm:$0xff] %vm757_vm10, %v712_v40 }
  0xb1   : > { %v582_v49 = vpop.permute.xlu1 %581  ;;  %v566_v43 = vpop.permute.xlu0 %565  ;;  %v4620_v54 = vld [vmem:[#allocation2 + $0x48] sm:$0xff] }
  0xb2   : > { %v4622_v33 = vld [vmem:[#allocation2 + $0x8] sm:$0xff]  ;;  %620 = vst.msk [vmem:[#allocation2 + $0x58] sm:$0xff] %vm609_vm9, %v582_v49  ;;  %612 = vst.msk [vmem:[#allocation2 + $0x18] sm:$0xff] %vm609_vm9, %v566_v43  ;;  %3734 = vmatprep.mubr.msk.bf16.mxu1 %vm325_vm8, %v4620_v54 }
  0xb3   : > { %3680 = vmatprep.mubr.msk.bf16.mxu0 %vm325_vm8, %v4622_v33 }
  0xb5   : > { %v584_v3 = vpop.permute.xlu1 %583  ;;  %v568_v11 = vpop.permute.xlu0 %567  ;;  %v4644_v14 = vld [vmem:[#allocation2 + $0x50] sm:$0xff] }
  0xb6   : > { %v4646_v4 = vld [vmem:[#allocation2 + $0x10] sm:$0xff]  ;;  %621 = vst.msk [vmem:[#allocation2 + $0x60] sm:$0xff] %vm609_vm9, %v584_v3  ;;  %613 = vst.msk [vmem:[#allocation2 + $0x20] sm:$0xff] %vm609_vm9, %v568_v11  ;;  %3735 = vmatmul.mubr.msk.bf16.vlgmr.msra.gmra.mrb[0].mxu1 %vm325_vm8, %v4644_v14 }
  0xb7   : > { %3681 = vmatmul.mubr.msk.bf16.vlgmr.msra.gmra.mrb[0].mxu0 %vm325_vm8, %v4646_v4  ;;  %3751 = vmatpush3.bf16.msra.mxu1 %v1630_v37 }
  0xb8   : > { %3697 = vmatpush3.bf16.msra.mxu0 %v955_v13  ;;  %4027 = vmatprep.subr.msk.bf16.mxu1 %vm824_vm7, %v4637_v16 }
  0xb9   : > { %4024 = vmatprep.subr.msk.bf16.mxu0 %vm824_vm7, %v4642_v63  ;;  %v730_v8 = vpop.permute.xlu1 %729  ;;  %v714_v15 = vpop.permute.xlu0 %713 }
  0xba   : > { %768 = vst.msk [vmem:[#allocation2 + $0x58] sm:$0xff] %vm757_vm10, %v730_v8  ;;  %760 = vst.msk [vmem:[#allocation2 + $0x18] sm:$0xff] %vm757_vm10, %v714_v15 }
  0xbd   : > { %v732_v44 = vpop.permute.xlu1 %731  ;;  %v716_v9 = vpop.permute.xlu0 %715 }
  0xbe   : > { %769 = vst.msk [vmem:[#allocation2 + $0x60] sm:$0xff] %vm757_vm10, %v732_v44  ;;  %761 = vst.msk [vmem:[#allocation2 + $0x20] sm:$0xff] %vm757_vm10, %v716_v9 }
  0xc1   : > { %v586_v21 = vpop.permute.xlu1 %585  ;;  %v570_v42 = vpop.permute.xlu0 %569  ;;  %v4662_v50 = vld [vmem:[#allocation2 + $0x58] sm:$0xff] }
  0xc2   : > { %v4664_v51 = vld [vmem:[#allocation2 + $0x18] sm:$0xff]  ;;  %622 = vst.msk [vmem:[#allocation2 + $0x68] sm:$0xff] %vm609_vm9, %v586_v21  ;;  %614 = vst.msk [vmem:[#allocation2 + $0x28] sm:$0xff] %vm609_vm9, %v570_v42  ;;  %3738 = vmatprep.mubr.msk.bf16.mxu1 %vm325_vm8, %v4662_v50 }
  0xc3   : > { %3684 = vmatprep.mubr.msk.bf16.mxu0 %vm325_vm8, %v4664_v51 }
  0xc5   : > { %v588_v58 = vpop.permute.xlu1 %587  ;;  %v572_v59 = vpop.permute.xlu0 %571  ;;  %v4672_v22 = vld [vmem:[#allocation2 + $0x60] sm:$0xff] }
  0xc6   : > { %v4674_v25 = vld [vmem:[#allocation2 + $0x20] sm:$0xff]  ;;  %623 = vst.msk [vmem:[#allocation2 + $0x70] sm:$0xff] %vm609_vm9, %v588_v58  ;;  %615 = vst.msk [vmem:[#allocation2 + $0x30] sm:$0xff] %vm609_vm9, %v572_v59  ;;  %3739 = vmatmul.mubr.msk.bf16.gmra.mrb[4].mxu1 %vm325_vm8, %v4672_v22 }
  0xc7   : > { %3685 = vmatmul.mubr.msk.bf16.gmra.mrb[4].mxu0 %vm325_vm8, %v4674_v25 }
  0xc9   : > { %v734_v7 = vpop.permute.xlu1 %733  ;;  %v718_v10 = vpop.permute.xlu0 %717 }
  0xca   : > { %770 = vst.msk [vmem:[#allocation2 + $0x68] sm:$0xff] %vm757_vm10, %v734_v7  ;;  %762 = vst.msk [vmem:[#allocation2 + $0x28] sm:$0xff] %vm757_vm10, %v718_v10 }
  0xcd   : > { %v736_v12 = vpop.permute.xlu1 %735  ;;  %v720_v17 = vpop.permute.xlu0 %719 }
  0xce   : > { %771 = vst.msk [vmem:[#allocation2 + $0x70] sm:$0xff] %vm757_vm10, %v736_v12  ;;  %763 = vst.msk [vmem:[#allocation2 + $0x30] sm:$0xff] %vm757_vm10, %v720_v17 }
  0xd1   : > { %v590_v18 = vpop.permute.xlu1 %589  ;;  %v574_v19 = vpop.permute.xlu0 %573  ;;  %v1465_v27 = vld [vmem:[#allocation2 + $0x68] sm:$0xff] }
  0xd2   : > { %v788_v28 = vld [vmem:[#allocation2 + $0x28] sm:$0xff]  ;;  %624 = vst.msk [vmem:[#allocation2 + $0x78] sm:$0xff] %vm609_vm9, %v590_v18  ;;  %616 = vst.msk [vmem:[#allocation2 + $0x38] sm:$0xff] %vm609_vm9, %v574_v19  ;;  %3742 = vmatprep.mubr.msk.bf16.mxu1 %vm325_vm8, %v1465_v27 }
  0xd3   : > { %3688 = vmatprep.mubr.msk.bf16.mxu0 %vm325_vm8, %v788_v28 }
  0xd5   : > { %v592_v30 = vpop.permute.xlu1 %591  ;;  %v576_v34 = vpop.permute.xlu0 %575  ;;  %v1466_v36 = vld [vmem:[#allocation2 + $0x70] sm:$0xff] }
  0xd6   : > { %v789_v41 = vld [vmem:[#allocation2 + $0x30] sm:$0xff]  ;;  %625 = vst.msk [vmem:[#allocation2 + $0x80] sm:$0xff] %vm609_vm9, %v592_v30  ;;  %617 = vst.msk [vmem:[#allocation2 + $0x40] sm:$0xff] %vm609_vm9, %v576_v34  ;;  %3743 = vmatmul.mubr.msk.bf16.gmra.mrb[8].mxu1 %vm325_vm8, %v1466_v36 }
  0xd7   : > { %3689 = vmatmul.mubr.msk.bf16.gmra.mrb[8].mxu0 %vm325_vm8, %v789_v41 }
  0xd9   : > { %v738_v29 = vpop.permute.xlu1 %737  ;;  %v722_v52 = vpop.permute.xlu0 %721 }
  0xda   : > { %772 = vst.msk [vmem:[#allocation2 + $0x78] sm:$0xff] %vm757_vm10, %v738_v29  ;;  %764 = vst.msk [vmem:[#allocation2 + $0x38] sm:$0xff] %vm757_vm10, %v722_v52 }
  0xdd   : > { %v740_v47 = vpop.permute.xlu1 %739  ;;  %v724_v55 = vpop.permute.xlu0 %723 }
  0xde   : > { %773 = vst.msk [vmem:[#allocation2 + $0x80] sm:$0xff] %vm757_vm10, %v740_v47  ;;  %765 = vst.msk [vmem:[#allocation2 + $0x40] sm:$0xff] %vm757_vm10, %v724_v55 }
  0xe1   : > { %v1467_v23 = vld [vmem:[#allocation2 + $0x78] sm:$0xff] }
  0xe2   : > { %v790_v24 = vld [vmem:[#allocation2 + $0x38] sm:$0xff]  ;;  %3746 = vmatprep.mubr.msk.bf16.mxu1 %vm325_vm8, %v1467_v23 }
  0xe3   : > { %3692 = vmatprep.mubr.msk.bf16.mxu0 %vm325_vm8, %v790_v24 }
  0xe5   : > { %v791_v46 = vld [vmem:[#allocation2 + $0x40] sm:$0xff] }
  0xe6   : > { %v1468_v56 = vld [vmem:[#allocation2 + $0x80] sm:$0xff]  ;;  %3693 = vmatmul.mubr.msk.bf16.gmra.mrb[12].mxu0 %vm325_vm8, %v791_v46 }
  0xe7   : > { %3747 = vmatmul.mubr.msk.bf16.gmra.mrb[12].mxu1 %vm325_vm8, %v1468_v56  ;;  %3698 = vmatprep.mubr.msk.bf16.mxu0 %vm325_vm8, %v774_v38 }
  0xe8   : > { %3752 = vmatprep.mubr.msk.bf16.mxu1 %vm325_vm8, %v791_v46 }
  0xee   : > { %3699 = vmatmul.mubr.msk.bf16.vlgmr.msra.gmra.mrb[0].mxu0 %vm325_vm8, %v4622_v33 }
  0xef   : > { %3753 = vmatmul.mubr.msk.bf16.vlgmr.msra.gmra.mrb[0].mxu1 %vm325_vm8, %v4620_v54  ;;  %3702 = vmatprep.mubr.msk.bf16.mxu0 %vm325_vm8, %v4646_v4 }
  0xf0   : > { %3769 = vmatpush3.bf16.msra.mxu1 %v1770_v60  ;;  %3756 = vmatprep.mubr.msk.bf16.mxu1 %vm325_vm8, %v4644_v14 }
  0xf1   : > { %3715 = vmatpush3.bf16.msra.mxu0 %v1096_v2 }
  0xf6   : > { %3703 = vmatmul.mubr.msk.bf16.gmra.mrb[4].mxu0 %vm325_vm8, %v4664_v51 }
  0xf7   : > { %3757 = vmatmul.mubr.msk.bf16.gmra.mrb[4].mxu1 %vm325_vm8, %v4662_v50  ;;  %3706 = vmatprep.mubr.msk.bf16.mxu0 %vm325_vm8, %v4674_v25 }
  0xf8   : > { %3760 = vmatprep.mubr.msk.bf16.mxu1 %vm325_vm8, %v4672_v22 }
  0xfe   : > { %3707 = vmatmul.mubr.msk.bf16.gmra.mrb[8].mxu0 %vm325_vm8, %v788_v28 }
  0xff   : > { %3761 = vmatmul.mubr.msk.bf16.gmra.mrb[8].mxu1 %vm325_vm8, %v1465_v27  ;;  %3710 = vmatprep.mubr.msk.bf16.mxu0 %vm325_vm8, %v789_v41 }
 0x100   : > { %3764 = vmatprep.mubr.msk.bf16.mxu1 %vm325_vm8, %v1466_v36 }
 0x106   : > { %3711 = vmatmul.mubr.msk.bf16.gmra.mrb[12].mxu0 %vm325_vm8, %v790_v24 }
 0x107   : > { %3765 = vmatmul.mubr.msk.bf16.gmra.mrb[12].mxu1 %vm325_vm8, %v1467_v23  ;;  %3716 = vmatprep.mubr.msk.bf16.mxu0 %vm325_vm8, %v4646_v4 }
 0x108   : > { %3770 = vmatprep.mubr.msk.bf16.mxu1 %vm325_vm8, %v4644_v14 }
 0x10e   : > { %3717 = vmatmul.mubr.msk.bf16.vlgmr.msra.gmra.mrb[0].mxu0 %vm325_vm8, %v4664_v51 }
 0x10f   : > { %3771 = vmatmul.mubr.msk.bf16.vlgmr.msra.gmra.mrb[0].mxu1 %vm325_vm8, %v4662_v50  ;;  %3720 = vmatprep.mubr.msk.bf16.mxu0 %vm325_vm8, %v4674_v25 }
 0x110   : > { %3774 = vmatprep.mubr.msk.bf16.mxu1 %vm325_vm8, %v4672_v22 }
 0x116   : > { %3721 = vmatmul.mubr.msk.bf16.gmra.mrb[4].mxu0 %vm325_vm8, %v788_v28 }
 0x117   : > { %3775 = vmatmul.mubr.msk.bf16.gmra.mrb[4].mxu1 %vm325_vm8, %v1465_v27  ;;  %3724 = vmatprep.mubr.msk.bf16.mxu0 %vm325_vm8, %v789_v41 }
 0x118   : > { %3778 = vmatprep.mubr.msk.bf16.mxu1 %vm325_vm8, %v1466_v36 }
 0x11e   : > { %3725 = vmatmul.mubr.msk.bf16.gmra.mrb[8].mxu0 %vm325_vm8, %v790_v24 }
 0x11f   : > { %3779 = vmatmul.mubr.msk.bf16.gmra.mrb[8].mxu1 %vm325_vm8, %v1467_v23  ;;  %3728 = vmatprep.mubr.msk.bf16.mxu0 %vm325_vm8, %v791_v46 }
 0x120   : > { %3782 = vmatprep.mubr.msk.bf16.mxu1 %vm325_vm8, %v1468_v56  ;;  %v4798_v56 = vld [vmem:[%s5471_s1 + $0x20] sm:$0x3f]  }
 0x121   : > { %4028 = vmatprep.subr.msk.bf16.mxu0 %vm824_vm7, %v4798_v56 }
 0x126   : > { %3729 = vmatmul.mubr.msk.bf16.gmra.mrb[12].mxu0 %vm325_vm8, %v4620_v54 }
 0x127   : > { %3783 = vmatmul.mubr.msk.bf16.gmra.mrb[12].mxu1 %vm325_vm8, %v1737_v1 }
 0x1e1   : > { %v3718_v26 = vpop.f32.mrb[0].mxu0 }
 0x1e2   : > { %v3772_v0 = vpop.f32.mrb[0].mxu1  ;;  %v1218_v31 = vadd.f32 %v3718_v26, %v4756_v35  ;;  %v1132_v61 = vpop.f32.mrb[1].mxu0 }
 0x1e3   : > { %v1892_v57 = vadd.f32 %v3772_v0, %v4756_v35  ;;  %v1806_v5 = vpop.f32.mrb[1].mxu1  ;;  %v1216_v45 = vadd.f32 %v4756_v35, %v1132_v61  ;;  %v3719_v6 = vpop.f32.mrb[2].mxu0  ;;  %v4810_v0 = vld [vmem:[%s5471_s1 + $0x20] sm:$0x3f]  }
 0x1e4   : > { %v1890_v20 = vadd.f32 %v4756_v35, %v1806_v5  ;;  %v3773_v39 = vpop.f32.mrb[2].mxu1  ;;  %v1219_v48 = vadd.f32 %v3719_v6, %v4756_v35  ;;  %v1135_v40 = vpop.f32.mrb[3].mxu0  ;;  %v1234_v33 = vmax.f32 %v1218_v31, 0.0  ;;  %4031 = vmatprep.subr.msk.bf16.mxu1 %vm824_vm7, %v4810_v0 }
 0x1e5   : > { %v1893_v32 = vadd.f32 %v3773_v39, %v4756_v35  ;;  %v1809_v49 = vpop.f32.mrb[3].mxu1  ;;  %v1217_v43 = vadd.f32 %v4756_v35, %v1135_v40  ;;  %v1908_v37 = vmax.f32 %v1892_v57, 0.0  ;;  %v1232_v63 = vmax.f32 %v1216_v45, 0.0 }
 0x1e6   : > { %v1891_v54 = vadd.f32 %v4756_v35, %v1809_v49  ;;  %v1235_v13 = vmax.f32 %v1219_v48, 0.0  ;;  %v1906_v3 = vmax.f32 %v1890_v20, 0.0 }
 0x1e7   : > { %v1909_v16 = vmax.f32 %v1893_v32, 0.0  ;;  %v1233_v11 = vmax.f32 %v1217_v43, 0.0 }
 0x1e8   : > { %v1907_v14 = vmax.f32 %v1891_v54, 0.0  ;;  %v4766_v4 = vpack.c.bf16 %v1235_v13, %v1234_v33 }
 0x1e9   : > { %v4768_v8 = vpack.c.bf16 %v1909_v16, %v1908_v37  ;;  %v4770_v15 = vpack.c.bf16 %v1233_v11, %v1232_v63  ;;  %v3722_v9 = vpop.f32.mrb[4].mxu0 }
 0x1ea   : > { %v4772_v44 = vpack.c.bf16 %v1907_v14, %v1906_v3  ;;  %v3776_v21 = vpop.f32.mrb[4].mxu1  ;;  %v1222_v50 = vadd.f32 %v3722_v9, %v4756_v35  ;;  %1347 = vrot.lane.b32.xlu0 %v4766_v4, %s4097_s4  ;;  %v1148_v59 = vpop.f32.mrb[5].mxu0  ;;  %v1267_v32 = vshll.u32 %v4766_v4, 16 }
 0x1eb   : > { %v1941_v42 = vshll.u32 %v4768_v8, 16  ;;  %v1896_v51 = vadd.f32 %v3776_v21, %v4756_v35  ;;  %v1822_v58 = vpop.f32.mrb[5].mxu1  ;;  %v1260_v22 = vshll.u32 %v4770_v15, 16  ;;  %v1220_v7 = vadd.f32 %v4756_v35, %v1148_v59  ;;  %v3723_v10 = vpop.f32.mrb[6].mxu0 }
 0x1ec   : > { %v1894_v25 = vadd.f32 %v4756_v35, %v1822_v58  ;;  %2019 = vrot.lane.b32.xlu1 %v4772_v44, %s4097_s4  ;;  %v3777_v12 = vpop.f32.mrb[6].mxu1  ;;  %v1238_v17 = vmax.f32 %v1222_v50, 0.0  ;;  %v1223_v18 = vadd.f32 %v3723_v10, %v4756_v35  ;;  %v1151_v27 = vpop.f32.mrb[7].mxu0  ;;  %v1938_v47 = vshrl.u32 %v4768_v8, 16 }
 0x1ed   : > { %v1897_v19 = vadd.f32 %v3777_v12, %v4756_v35  ;;  %v1825_v28 = vpop.f32.mrb[7].mxu1  ;;  %v1912_v30 = vmax.f32 %v1896_v51, 0.0  ;;  %v1221_v36 = vadd.f32 %v4756_v35, %v1151_v27  ;;  %v2053_v55 = vrot.slane %v1941_v42, 1 }
 0x1ee   : > { %v1910_v34 = vmax.f32 %v1894_v25, 0.0  ;;  %v1895_v41 = vadd.f32 %v4756_v35, %v1825_v28  ;;  %v1239_v29 = vmax.f32 %v1223_v18, 0.0  ;;  %2021 = vrot.lane.b32.xlu0 %v4768_v8, %s4097_s4  ;;  %v1236_v23 = vmax.f32 %v1220_v7, 0.0  ;;  %v4972_v8 = vld [vmem:[%s5471_s1 + $0x18] sm:$0x3f]  }
 0x1ef   : > { %v1913_v52 = vmax.f32 %v1897_v19, 0.0  ;;  %v1237_v24 = vmax.f32 %v1221_v36, 0.0  ;;  %v1377_v46 = vrot.slane %v1260_v22, 1  ;;  %v2054_v1 = vor.u32 %v2053_v55, %v1938_v47 }
 0x1f0   : > { %v1911_v38 = vmax.f32 %v1895_v41, 0.0  ;;  %v4800_v60 = vpack.c.bf16 %v1239_v29, %v1238_v17  ;;  %v1257_v26 = vshrl.u32 %v4770_v15, 16  ;;  %v1934_v40 = vshll.u32 %v4772_v44, 16 }
 0x1f1   : > { %v4802_v2 = vpack.c.bf16 %v1913_v52, %v1912_v30  ;;  %v4812_v31 = vpack.c.bf16 %v1237_v24, %v1236_v23  ;;  %v3726_v61 = vpop.f32.mrb[8].mxu0  ;;  %v2076_v45 = vsel %vm4282_vm2, %v2054_v1, 0  ;;  %v1264_v12 = vshrl.u32 %v4766_v4, 16 }
 0x1f2   : > { %v4814_v57 = vpack.c.bf16 %v1911_v38, %v1910_v34  ;;  %v3780_v5 = vpop.f32.mrb[8].mxu1  ;;  %v1226_v20 = vadd.f32 %v3726_v61, %v4756_v35  ;;  %1345 = vrot.lane.b32.xlu0 %v4770_v15, %s4097_s4  ;;  %v1164_v39 = vpop.f32.mrb[9].mxu0  ;;  %v1378_v48 = vor.u32 %v1377_v46, %v1257_v26  ;;  %2093 = vrot.lane.b32.xlu1 %v2076_v45, %s4098_s5  ;;  %v1379_v17 = vrot.slane %v1267_v32, 1 }
 0x1f3   : > { %v1838_v6 = vpop.f32.mrb[9].mxu1  ;;  %v1900_v49 = vadd.f32 %v3780_v5, %v4756_v35  ;;  %v3727_v54 = vpop.f32.mrb[10].mxu0  ;;  %v1224_v13 = vadd.f32 %v4756_v35, %v1164_v39  ;;  %v2051_v27 = vrot.slane %v1934_v40, 1  ;;  %v1931_v41 = vshrl.u32 %v4772_v44, 16 }
 0x1f4   : > { %v1898_v43 = vadd.f32 %v4756_v35, %v1838_v6  ;;  %v3781_v33 = vpop.f32.mrb[10].mxu1  ;;  %v1242_v37 = vmax.f32 %v1226_v20, 0.0  ;;  %v1227_v16 = vadd.f32 %v3727_v54, %v4756_v35  ;;  %v1167_v3 = vpop.f32.mrb[11].mxu0  ;;  %v1401_v25 = vsel %vm4282_vm2, %v1378_v48, 0 }
 0x1f5   : > { %v1901_v63 = vadd.f32 %v3781_v33, %v4756_v35  ;;  %v1841_v11 = vpop.f32.mrb[11].mxu1  ;;  %v1916_v14 = vmax.f32 %v1900_v49, 0.0  ;;  %v1225_v21 = vadd.f32 %v4756_v35, %v1167_v3  ;;  %v1240_v51 = vmax.f32 %v1224_v13, 0.0 }
 0x1f6   : > { %v1914_v9 = vmax.f32 %v1898_v43, 0.0  ;;  %v1899_v50 = vadd.f32 %v4756_v35, %v1841_v11  ;;  %v1243_v58 = vmax.f32 %v1227_v16, 0.0  ;;  %1417 = vrot.lane.b32.xlu1 %v1401_v25, %s4098_s5  ;;  %v1380_v34 = vor.u32 %v1379_v17, %v1264_v12 }
 0x1f7   : > { %v1917_v59 = vmax.f32 %v1901_v63, 0.0  ;;  %v1241_v7 = vmax.f32 %v1225_v21, 0.0  ;;  %v1281_v24 = vshll.u32 %v4800_v60, 16  ;;  %v1955_v38 = vshll.u32 %v4802_v2, 16 }
 0x1f8   : > { %v1915_v10 = vmax.f32 %v1899_v50, 0.0  ;;  %v4843_v18 = vpack.c.bf16 %v1243_v58, %v1242_v37  ;;  %v1402_v46 = vsel %vm4282_vm2, %v1380_v34, 0  ;;  %v2052_v1 = vor.u32 %v2051_v27, %v1931_v41 }
 0x1f9   : > { %v4845_v19 = vpack.c.bf16 %v1917_v59, %v1916_v14  ;;  %v4849_v28 = vpack.c.bf16 %v1241_v7, %v1240_v51  ;;  %v3730_v29 = vpop.f32.mrb[12].mxu0  ;;  %v1274_v45 = vshll.u32 %v4812_v31, 16  ;;  %1419 = vrot.lane.b32.xlu0 %v1402_v46, %s4098_s5  ;;  %v1948_v13 = vshll.u32 %v4814_v57, 16 }
 0x1fa   : > { %v4851_v30 = vpack.c.bf16 %v1915_v10, %v1914_v9  ;;  %v3784_v36 = vpop.f32.mrb[12].mxu1  ;;  %v1180_v23 = vpop.f32.mrb[13].mxu0  ;;  %v1230_v20 = vadd.f32 %v3730_v29, %v4756_v35  ;;  %v2075_v43 = vsel %vm4282_vm2, %v2052_v1, 0  ;;  %v1952_v58 = vshrl.u32 %v4802_v2, 16 }
 0x1fb   : > { %v1904_v52 = vadd.f32 %v3784_v36, %v4756_v35  ;;  %v1854_v55 = vpop.f32.mrb[13].mxu1  ;;  %v3731_v61 = vpop.f32.mrb[14].mxu0  ;;  %v1228_v39 = vadd.f32 %v4756_v35, %v1180_v23  ;;  %2091 = vrot.lane.b32.xlu1 %v2075_v43, %s4098_s5  ;;  %v2057_v59 = vrot.slane %v1955_v38, 1  ;;  %v1969_v17 = vshll.u32 %v4845_v19, 16 }
 0x1fc   : > { %v3785_v5 = vpop.f32.mrb[14].mxu1  ;;  %v1902_v6 = vadd.f32 %v4756_v35, %v1854_v55  ;;  %v1183_v48 = vpop.f32.mrb[15].mxu0  ;;  %v1231_v54 = vadd.f32 %v3731_v61, %v4756_v35  ;;  %v1246_v63 = vmax.f32 %v1230_v20, 0.0  ;;  %v1271_v36 = vshrl.u32 %v4812_v31, 16 }
 0x1fd   : > { %v1857_v49 = vpop.f32.mrb[15].mxu1  ;;  %v1905_v33 = vadd.f32 %v3785_v5, %v4756_v35  ;;  %v1229_v37 = vadd.f32 %v4756_v35, %v1183_v48  ;;  %v1920_v16 = vmax.f32 %v1904_v52, 0.0  ;;  %v1244_v11 = vmax.f32 %v1228_v39, 0.0  ;;  %1351 = vrot.lane.b32.xlu0 %v4800_v60, %s4097_s4 }
 0x1fe   : > { %v1903_v3 = vadd.f32 %v4756_v35, %v1857_v49  ;;  %v1247_v14 = vmax.f32 %v1231_v54, 0.0  ;;  %v1918_v50 = vmax.f32 %v1902_v6, 0.0  ;;  %v1381_v35 = vrot.slane %v1274_v45, 1 }
 0x1ff   : > { %v1921_v9 = vmax.f32 %v1905_v33, 0.0  ;;  %v1245_v21 = vmax.f32 %v1229_v37, 0.0  ;;  %2023 = vrot.lane.b32.xlu1 %v4814_v57, %s4097_s4  ;;  %v2058_v34 = vor.u32 %v2057_v59, %v1952_v58  ;;  %v1383_v29 = vrot.slane %v1281_v24, 1 }
 0x200   : > { %v1919_v51 = vmax.f32 %v1903_v3, 0.0  ;;  %v4877_v25 = vpack.c.bf16 %v1247_v14, %v1246_v63  ;;  %v1382_v55 = vor.u32 %v1381_v35, %v1271_v36  ;;  %v1278_v23 = vshrl.u32 %v4800_v60, 16 }
 0x201   : > { %v4879_v7 = vpack.c.bf16 %v1921_v9, %v1920_v16  ;;  %v4881_v10 = vpack.c.bf16 %v1245_v21, %v1244_v11  ;;  %2025 = vrot.lane.b32.xlu0 %v4802_v2, %s4097_s4  ;;  %v2078_v52 = vsel %vm4282_vm2, %v2058_v34, 0  ;;  %v2055_v46 = vrot.slane %v1948_v13, 1 }
 0x202   : > { %v4886_v27 = vpack.c.bf16 %v1919_v51, %v1918_v50  ;;  %v1940_v1 = vrot.slane %v1938_v47, 7  ;;  %v1259_v61 = vrot.slane %v1257_v26, 7  ;;  %v1266_v5 = vrot.slane %v1264_v12, 7 }
 0x203   : > { %2097 = vrot.lane.b32.xlu1 %v2078_v52, %s4098_s5  ;;  %v2061_v20 = vrot.slane %v1969_v17, 1  ;;  %v1295_v6 = vshll.u32 %v4843_v18, 16  ;;  %v1933_v39 = vrot.slane %v1931_v41, 7  ;;  %v1384_v48 = vor.u32 %v1383_v29, %v1278_v23 }
 0x204   : > { %v1945_v49 = vshrl.u32 %v4814_v57, 16  ;;  %v1288_v43 = vshll.u32 %v4849_v28, 16  ;;  %v1962_v54 = vshll.u32 %v4851_v30, 16  ;;  %v1954_v47 = vrot.slane %v1952_v58, 7 }
 0x205   : > { %1349 = vrot.lane.b32.xlu0 %v4812_v31, %s4097_s4  ;;  %v1966_v26 = vshrl.u32 %v4845_v19, 16  ;;  %v1309_v12 = vshll.u32 %v4877_v25, 16  ;;  %v1403_v33 = vsel %vm4282_vm2, %v1382_v55, 0  ;;  %v1273_v37 = vrot.slane %v1271_v36, 7 }
 0x206   : > { %v2056_v41 = vor.u32 %v2055_v46, %v1945_v49  ;;  %v1983_v16 = vshll.u32 %v4879_v7, 16  ;;  %v1285_v3 = vshrl.u32 %v4849_v28, 16  ;;  %v1292_v11 = vshrl.u32 %v4843_v18, 16 }
 0x207   : > { %1421 = vrot.lane.b32.xlu1 %v1403_v33, %s4098_s5  ;;  %v2062_v63 = vor.u32 %v2061_v20, %v1966_v26  ;;  %v1302_v14 = vshll.u32 %v4881_v10, 16  ;;  %v1976_v9 = vshll.u32 %v4886_v27, 16  ;;  %v1404_v21 = vsel %vm4282_vm2, %v1384_v48, 0 }
 0x208   : > { %v5474_v50 = vshrl.u32 %v4851_v30, 16  ;;  %v1280_v51 = vrot.slane %v1278_v23, 7  ;;  %v1385_v58 = vrot.slane %v1288_v43, 1  ;;  %v1299_v59 = vshrl.u32 %v4881_v10, 16 }
 0x209   : > { %1423 = vrot.lane.b32.xlu0 %v1404_v21, %s4098_s5  ;;  %v5475_v35 = vshrl.u32 %v4886_v27, 16  ;;  %v1947_v34 = vrot.slane %v1945_v49, 7  ;;  %v2077_v36 = vsel %vm4282_vm2, %v2056_v41, 0  ;;  %v1968_v29 = vrot.slane %v1966_v26, 7 }
 0x20a   : > { %v1306_v52 = vshrl.u32 %v4877_v25, 16  ;;  %v2080_v55 = vsel %vm4282_vm2, %v2062_v63, 0  ;;  %v1287_v23 = vrot.slane %v1285_v3, 7  ;;  %v1294_v46 = vrot.slane %v1292_v11, 7 }
 0x20b   : > { %2095 = vrot.lane.b32.xlu1 %v2077_v36, %s4098_s5  ;;  %v1387_v20 = vrot.slane %v1295_v6, 1  ;;  %v1961_v48 = vrot.slane %v5474_v50, 7  ;;  %v2059_v49 = vrot.slane %v1962_v54, 1  ;;  %v1980_v26 = vshrl.u32 %v4879_v7, 16 }
 0x20c   : > { %v1269_v33 = vor.u32 %v1267_v32, %v1266_v5  ;;  %v1301_v41 = vrot.slane %v1299_v59, 7  ;;  %v1975_v63 = vrot.slane %v5475_v35, 7  ;;  %v1936_v21 = vor.u32 %v1934_v40, %v1933_v39  ;;  %v4967_v35 = vld [vmem:[%s5471_s1 + $0x18] sm:$0x3f]  }
 0x20d   : > { %1355 = vrot.lane.b32.xlu0 %v4843_v18, %s4097_s4  ;;  %v1943_v36 = vor.u32 %v1941_v42, %v1940_v1  ;;  %v1386_v50 = vor.u32 %v1385_v58, %v1285_v3  ;;  %v1308_v4 = vrot.slane %v1306_v52, 7  ;;  %v1262_v5 = vor.u32 %v1260_v22, %v1259_v61 }
 0x20e   : > { %v1321_v32 = vsel %vm4418_vm6, 0, %v1269_v33  ;;  %v1994_v44 = vsel %vm4418_vm6, 0, %v1936_v21  ;;  %v2175_v42 = vsel %vm824_vm7, %v4798_v56, 0  ;;  %v2696_v22 = vsel %vm824_vm7, %v4810_v0, 0 }
 0x20f   : > { %2027 = vrot.lane.b32.xlu1 %v4851_v30, %s4097_s4  ;;  %1330 = vst.msk [vmem:[#allocation3 + $0x10] sm:$0xff] %vm528_vm5, %v1321_v32  ;;  %v1995_v15 = vsel %vm4418_vm6, 0, %v1943_v36  ;;  %v1982_v40 = vrot.slane %v1980_v26, 7  ;;  %2003 = vst.msk [vmem:[#allocation3 + $0x48] sm:$0xff] %vm528_vm5, %v1994_v44  ;;  %v1320_v1 = vsel %vm4418_vm6, 0, %v1262_v5  ;;  %3787 = vmatpush3.bf16.msra.mxu0 %v2175_v42  ;;  %v1283_v61 = vor.u32 %v1281_v24, %v1280_v51 }
 0x210   : > { %2004 = vst.msk [vmem:[#allocation3 + $0x50] sm:$0xff] %vm528_vm5, %v1995_v15  ;;  %3841 = vmatpush3.bf16.msra.mxu1 %v2696_v22  ;;  %v1950_v56 = vor.u32 %v1948_v13, %v1947_v34  ;;  %1329 = vst.msk [vmem:[#allocation3 + $0x8] sm:$0xff] %vm528_vm5, %v1320_v1  ;;  %v1957_v0 = vor.u32 %v1955_v38, %v1954_v47  ;;  %v1276_v39 = vor.u32 %v1274_v45, %v1273_v37  ;;  %v5129_v5 = vld [vmem:[%s5471_s1 + $0x28] sm:$0x3f]  }
 0x211   : > { %2029 = vrot.lane.b32.xlu0 %v4845_v19, %s4097_s4  ;;  %v1297_v3 = vor.u32 %v1295_v6, %v1294_v46  ;;  %v1964_v60 = vor.u32 %v1962_v54, %v1961_v48  ;;  %v1323_v57 = vsel %vm4418_vm6, 0, %v1283_v61  ;;  %v1971_v13 = vor.u32 %v1969_v17, %v1968_v29  ;;  %4029 = vmatprep.subr.msk.bf16.mxu0 %vm824_vm7, %v4967_v35 }
 0x212   : > { %v1996_v24 = vsel %vm4418_vm6, 0, %v1950_v56  ;;  %v1290_v2 = vor.u32 %v1288_v43, %v1287_v23  ;;  %4032 = vmatprep.subr.msk.bf16.mxu1 %vm824_vm7, %v4972_v8  ;;  %1332 = vst.msk [vmem:[#allocation3 + $0x20] sm:$0xff] %vm528_vm5, %v1323_v57  ;;  %v1997_v31 = vsel %vm4418_vm6, 0, %v1957_v0  ;;  %v1322_v19 = vsel %vm4418_vm6, 0, %v1276_v39 }
 0x213   : > { %2101 = vrot.lane.b32.xlu1 %v2080_v55, %s4098_s5  ;;  %2005 = vst.msk [vmem:[#allocation3 + $0x58] sm:$0xff] %vm528_vm5, %v1996_v24  ;;  %v1325_v38 = vsel %vm4418_vm6, 0, %v1297_v3  ;;  %v1998_v45 = vsel %vm4418_vm6, 0, %v1964_v60  ;;  %v1388_v17 = vor.u32 %v1387_v20, %v1292_v11  ;;  %2006 = vst.msk [vmem:[#allocation3 + $0x60] sm:$0xff] %vm528_vm5, %v1997_v31  ;;  %v1999_v6 = vsel %vm4418_vm6, 0, %v1971_v13 }
 0x214   : > { %1331 = vst.msk [vmem:[#allocation3 + $0x18] sm:$0xff] %vm528_vm5, %v1322_v19  ;;  %1334 = vst.msk [vmem:[#allocation3 + $0x30] sm:$0xff] %vm528_vm5, %v1325_v38  ;;  %v1324_v43 = vsel %vm4418_vm6, 0, %v1290_v2  ;;  %v1311_v18 = vor.u32 %v1309_v12, %v1308_v4  ;;  %v1978_v54 = vor.u32 %v1976_v9, %v1975_v63  ;;  %v1985_v47 = vor.u32 %v1983_v16, %v1982_v40  ;;  %v5143_v40 = vld [vmem:[%s5471_s1 + $0x28] sm:$0x3f]  }
 0x215   : > { %2007 = vst.msk [vmem:[#allocation3 + $0x68] sm:$0xff] %vm528_vm5, %v1998_v45  ;;  %1353 = vrot.lane.b32.xlu0 %v4849_v28, %s4097_s4  ;;  %2008 = vst.msk [vmem:[#allocation3 + $0x70] sm:$0xff] %vm528_vm5, %v1999_v6  ;;  %v1304_v37 = vor.u32 %v1302_v14, %v1301_v41  ;;  %v1405_v11 = vsel %vm4282_vm2, %v1386_v50, 0  ;;  %v5481_v28 = vshrl.u32 %v4851_v30, 16  ;;  %v1406_v50 = vsel %vm4282_vm2, %v1388_v17, 0 }
 0x216   : > { %1333 = vst.msk [vmem:[#allocation3 + $0x28] sm:$0xff] %vm528_vm5, %v1324_v43  ;;  %v1327_v58 = vsel %vm4418_vm6, 0, %v1311_v18  ;;  %v2000_v34 = vsel %vm4418_vm6, 0, %v1978_v54  ;;  %v2001_v29 = vsel %vm4418_vm6, 0, %v1985_v47  ;;  %v1389_v53 = vrot.slane %v1302_v14, 1 }
 0x217   : > { %v2060_v51 = vor.u32 %v2059_v49, %v5481_v28  ;;  %1425 = vrot.lane.b32.xlu1 %v1405_v11, %s4098_s5  ;;  %v1326_v55 = vsel %vm4418_vm6, 0, %v1304_v37  ;;  %1336 = vst.msk [vmem:[#allocation3 + $0x40] sm:$0xff] %vm528_vm5, %v1327_v58  ;;  %2009 = vst.msk [vmem:[#allocation3 + $0x78] sm:$0xff] %vm528_vm5, %v2000_v34  ;;  %v2063_v46 = vrot.slane %v1976_v9, 1  ;;  %v1391_v20 = vrot.slane %v1309_v12, 1 }
 0x218   : > { %2010 = vst.msk [vmem:[#allocation3 + $0x80] sm:$0xff] %vm528_vm5, %v2001_v29  ;;  %1335 = vst.msk [vmem:[#allocation3 + $0x38] sm:$0xff] %vm528_vm5, %v1326_v55  ;;  %v1390_v23 = vor.u32 %v1389_v53, %v1299_v59  ;;  %v5482_v48 = vshrl.u32 %v4886_v27, 16  ;;  %v2065_v59 = vrot.slane %v1983_v16, 1  ;;  %v2304_v32 = vsel %vm824_vm7, %v4967_v35, 0 }
 0x219   : > { %1427 = vrot.lane.b32.xlu0 %v1406_v50, %s4098_s5  ;;  %v2079_v30 = vsel %vm4282_vm2, %v2060_v51, 0  ;;  %v1392_v9 = vor.u32 %v1391_v20, %v1306_v52  ;;  %v2825_v35 = vsel %vm824_vm7, %v4972_v8, 0  ;;  %v2965_v20 = vsel %vm824_vm7, %v5143_v40, 0 }
 0x21a   : > { %v1407_v14 = vsel %vm4282_vm2, %v1390_v23, 0  ;;  %v2064_v49 = vor.u32 %v2063_v46, %v5482_v48  ;;  %v2066_v33 = vor.u32 %v2065_v59, %v1980_v26  ;;  %v2445_v46 = vsel %vm824_vm7, %v5129_v5, 0  ;;  %v5254_v48 = vld [vmem:[%s5472_s2 + $0x1] ss:$0 sm:$0xff]  ;;  %v2583_v59 = vld [vmem:[%s4234_s30 + $0x10] sm:$0xff] }
 0x21b   : > { %2099 = vrot.lane.b32.xlu1 %v2079_v30, %s4098_s5  ;;  %v2123_v30 = vld [vmem:[#allocation3] sm:$0xff] }
 0x21c   : > { %v2081_v12 = vsel %vm4282_vm2, %v2064_v49, 0 }
 0x21d   : > { %1359 = vrot.lane.b32.xlu0 %v4877_v25, %s4097_s4  ;;  %v2082_v25 = vsel %vm4282_vm2, %v2066_v33, 0  ;;  %v2581_v33 = vld [vmem:[%s4234_s30] sm:$0xff] }
 0x21f   : > { %2031 = vrot.lane.b32.xlu1 %v4886_v27, %s4097_s4  ;;  %v1408_v27 = vsel %vm4282_vm2, %v1392_v9, 0 }
 0x221   : > { %2033 = vrot.lane.b32.xlu0 %v4879_v7, %s4097_s4 }
 0x223   : > { %1429 = vrot.lane.b32.xlu1 %v1407_v14, %s4098_s5  ;;  %v2932_v14 = vld [vmem:[#allocation3 + $0x88] sm:$0xff] }
 0x225   : > { %1357 = vrot.lane.b32.xlu0 %v4881_v10, %s4097_s4 }
 0x227   : > { %2103 = vrot.lane.b32.xlu1 %v2081_v12, %s4098_s5 }
 0x229   : > { %1431 = vrot.lane.b32.xlu0 %v1408_v27, %s4098_s5 }
 0x22b   : > { %2105 = vrot.lane.b32.xlu1 %v2082_v25, %s4098_s5 }
 0x25c   : > { %v1348_v16 = vpop.permute.xlu0 %1347 }
 0x25d   : > { %1370 = vst.msk [vmem:[#allocation3 + $0x10] sm:$0xff] %vm609_vm9, %v1348_v16  ;;  %v2584_v16 = vld [vmem:[%s4234_s30 + $0x18] sm:$0xff] }
 0x25e   : > { %v2020_v10 = vpop.permute.xlu1 %2019 }
 0x25f   : > { %2043 = vst.msk [vmem:[#allocation3 + $0x48] sm:$0xff] %vm609_vm9, %v2020_v10 }
 0x260   : > { %v2022_v7 = vpop.permute.xlu0 %2021 }
 0x261   : > { %2044 = vst.msk [vmem:[#allocation3 + $0x50] sm:$0xff] %vm609_vm9, %v2022_v7  ;;  %v3533_v7 = vld [vmem:[%s4234_s30 + $0x90] sm:$0xff] }
 0x264   : > { %v1346_v52 = vpop.permute.xlu0 %1345  ;;  %v2094_v26 = vpop.permute.xlu1 %2093 }
 0x265   : > { %1369 = vst.msk [vmem:[#allocation3 + $0x8] sm:$0xff] %vm609_vm9, %v1346_v52 }
 0x266   : > { %2116 = vst.msk [vmem:[#allocation3 + $0x50] sm:$0xff] %vm757_vm10, %v2094_v26 }
 0x268   : > { %v1418_v41 = vpop.permute.xlu1 %1417 }
 0x269   : > { %1441 = vst.msk [vmem:[#allocation3 + $0x8] sm:$0xff] %vm757_vm10, %v1418_v41 }
 0x26b   : > { %v1420_v62 = vpop.permute.xlu0 %1419 }
 0x26c   : > { %1442 = vst.msk [vmem:[#allocation3 + $0x10] sm:$0xff] %vm757_vm10, %v1420_v62  ;;  %v2582_v62 = vld [vmem:[%s4234_s30 + $0x8] sm:$0xff] }
 0x26d   : > { %v2092_v63 = vpop.permute.xlu1 %2091  ;;  %v5148_v1 = vld [vmem:[#allocation3 + $0x50] sm:$0xff] }
 0x26e   : > { %2115 = vst.msk [vmem:[#allocation3 + $0x48] sm:$0xff] %vm757_vm10, %v2092_v63 }
 0x26f   : > { %v1352_v36 = vpop.permute.xlu0 %1351 }
 0x270   : > { %v5118_v21 = vld [vmem:[#allocation3 + $0x8] sm:$0xff]  ;;  %1372 = vst.msk [vmem:[#allocation3 + $0x20] sm:$0xff] %vm609_vm9, %v1352_v36  ;;  %v3531_v36 = vld [vmem:[%s4234_s30 + $0x80] sm:$0xff] }
 0x271   : > { %3788 = vmatprep.mubr.msk.bf16.mxu0 %vm325_vm8, %v5118_v21  ;;  %v2024_v4 = vpop.permute.xlu1 %2023 }
 0x272   : > { %2045 = vst.msk [vmem:[#allocation3 + $0x58] sm:$0xff] %vm609_vm9, %v2024_v4 }
 0x273   : > { %v2026_v44 = vpop.permute.xlu0 %2025  ;;  %v5131_v15 = vld [vmem:[#allocation3 + $0x10] sm:$0xff] }
 0x274   : > { %2046 = vst.msk [vmem:[#allocation3 + $0x60] sm:$0xff] %vm609_vm9, %v2026_v44  ;;  %3789 = vmatmul.mubr.msk.bf16.vlgmr.msra.gmra.mrb[16].mxu0 %vm325_vm8, %v5131_v15 }
 0x275   : > { %v2098_v42 = vpop.permute.xlu1 %2097  ;;  %v5136_v22 = vld [vmem:[#allocation3 + $0x48] sm:$0xff]  ;;  %3805 = vmatpush3.bf16.msra.mxu0 %v2304_v32 }
 0x276   : > { %2118 = vst.msk [vmem:[#allocation3 + $0x60] sm:$0xff] %vm757_vm10, %v2098_v42  ;;  %3842 = vmatprep.mubr.msk.bf16.mxu1 %vm325_vm8, %v5136_v22  ;;  %4030 = vmatprep.subr.msk.bf16.mxu0 %vm824_vm7, %v5129_v5 }
 0x277   : > { %v1350_v61 = vpop.permute.xlu0 %1349  ;;  %3843 = vmatmul.mubr.msk.bf16.vlgmr.msra.gmra.mrb[16].mxu1 %vm325_vm8, %v5148_v1 }
 0x278   : > { %1371 = vst.msk [vmem:[#allocation3 + $0x18] sm:$0xff] %vm609_vm9, %v1350_v61  ;;  %3859 = vmatpush3.bf16.msra.mxu1 %v2825_v35  ;;  %v3532_v61 = vld [vmem:[%s4234_s30 + $0x88] sm:$0xff] }
 0x279   : > { %v1422_v8 = vpop.permute.xlu1 %1421  ;;  %4033 = vmatprep.subr.msk.bf16.mxu1 %vm824_vm7, %v5143_v40 }
 0x27a   : > { %1443 = vst.msk [vmem:[#allocation3 + $0x18] sm:$0xff] %vm757_vm10, %v1422_v8 }
 0x27b   : > { %v1424_v56 = vpop.permute.xlu0 %1423 }
 0x27c   : > { %1444 = vst.msk [vmem:[#allocation3 + $0x20] sm:$0xff] %vm757_vm10, %v1424_v56 }
 0x27d   : > { %v2096_v0 = vpop.permute.xlu1 %2095  ;;  %v5176_v31 = vld [vmem:[#allocation3 + $0x60] sm:$0xff] }
 0x27e   : > { %2117 = vst.msk [vmem:[#allocation3 + $0x58] sm:$0xff] %vm757_vm10, %v2096_v0 }
 0x27f   : > { %v1356_v39 = vpop.permute.xlu0 %1355 }
 0x280   : > { %1374 = vst.msk [vmem:[#allocation3 + $0x30] sm:$0xff] %vm609_vm9, %v1356_v39 }
 0x281   : > { %v2028_v3 = vpop.permute.xlu1 %2027  ;;  %v5161_v60 = vld [vmem:[#allocation3 + $0x18] sm:$0xff] }
 0x282   : > { %2047 = vst.msk [vmem:[#allocation3 + $0x68] sm:$0xff] %vm609_vm9, %v2028_v3  ;;  %3792 = vmatprep.mubr.msk.bf16.mxu0 %vm325_vm8, %v5161_v60 }
 0x283   : > { %v2030_v57 = vpop.permute.xlu0 %2029  ;;  %v5166_v24 = vld [vmem:[#allocation3 + $0x20] sm:$0xff] }
 0x284   : > { %2048 = vst.msk [vmem:[#allocation3 + $0x70] sm:$0xff] %vm609_vm9, %v2030_v57  ;;  %3793 = vmatmul.mubr.msk.bf16.gmra.mrb[20].mxu0 %vm325_vm8, %v5166_v24 }
 0x285   : > { %v2102_v13 = vpop.permute.xlu1 %2101  ;;  %v5171_v2 = vld [vmem:[#allocation3 + $0x58] sm:$0xff] }
 0x286   : > { %2120 = vst.msk [vmem:[#allocation3 + $0x70] sm:$0xff] %vm757_vm10, %v2102_v13  ;;  %3846 = vmatprep.mubr.msk.bf16.mxu1 %vm325_vm8, %v5171_v2 }
 0x287   : > { %v1354_v19 = vpop.permute.xlu0 %1353  ;;  %3847 = vmatmul.mubr.msk.bf16.gmra.mrb[20].mxu1 %vm325_vm8, %v5176_v31 }
 0x288   : > { %1373 = vst.msk [vmem:[#allocation3 + $0x28] sm:$0xff] %vm609_vm9, %v1354_v19  ;;  %v2587_v19 = vld [vmem:[%s4234_s30 + $0x30] sm:$0xff] }
 0x289   : > { %v1426_v38 = vpop.permute.xlu1 %1425 }
 0x28a   : > { %1445 = vst.msk [vmem:[#allocation3 + $0x28] sm:$0xff] %vm757_vm10, %v1426_v38 }
 0x28b   : > { %v1428_v45 = vpop.permute.xlu0 %1427 }
 0x28c   : > { %1446 = vst.msk [vmem:[#allocation3 + $0x30] sm:$0xff] %vm757_vm10, %v1428_v45 }
 0x28d   : > { %v2100_v17 = vpop.permute.xlu1 %2099  ;;  %v2661_v28 = vld [vmem:[#allocation3 + $0x70] sm:$0xff] }
 0x28e   : > { %2119 = vst.msk [vmem:[#allocation3 + $0x68] sm:$0xff] %vm757_vm10, %v2100_v17 }
 0x28f   : > { %v1360_v6 = vpop.permute.xlu0 %1359 }
 0x290   : > { %1376 = vst.msk [vmem:[#allocation3 + $0x40] sm:$0xff] %vm609_vm9, %v1360_v6  ;;  %v2585_v6 = vld [vmem:[%s4234_s30 + $0x20] sm:$0xff] }
 0x291   : > { %v2032_v43 = vpop.permute.xlu1 %2031  ;;  %v2138_v18 = vld [vmem:[#allocation3 + $0x28] sm:$0xff] }
 0x292   : > { %2049 = vst.msk [vmem:[#allocation3 + $0x78] sm:$0xff] %vm609_vm9, %v2032_v43  ;;  %3796 = vmatprep.mubr.msk.bf16.mxu0 %vm325_vm8, %v2138_v18 }
 0x293   : > { %v2034_v54 = vpop.permute.xlu0 %2033  ;;  %v2139_v47 = vld [vmem:[#allocation3 + $0x30] sm:$0xff] }
 0x294   : > { %2050 = vst.msk [vmem:[#allocation3 + $0x80] sm:$0xff] %vm609_vm9, %v2034_v54  ;;  %3797 = vmatmul.mubr.msk.bf16.gmra.mrb[24].mxu0 %vm325_vm8, %v2139_v47 }
 0x295   : > { %v1430_v37 = vpop.permute.xlu1 %1429  ;;  %v2660_v11 = vld [vmem:[#allocation3 + $0x68] sm:$0xff] }
 0x296   : > { %3850 = vmatprep.mubr.msk.bf16.mxu1 %vm325_vm8, %v2660_v11 }
 0x297   : > { %v1358_v51 = vpop.permute.xlu0 %1357  ;;  %3851 = vmatmul.mubr.msk.bf16.gmra.mrb[24].mxu1 %vm325_vm8, %v2661_v28 }
 0x298   : > { %1375 = vst.msk [vmem:[#allocation3 + $0x38] sm:$0xff] %vm609_vm9, %v1358_v51 }
 0x299   : > { %1447 = vst.msk [vmem:[#allocation3 + $0x38] sm:$0xff] %vm757_vm10, %v1430_v37  ;;  %v2104_v58 = vpop.permute.xlu1 %2103 }
 0x29a   : > { %2121 = vst.msk [vmem:[#allocation3 + $0x78] sm:$0xff] %vm757_vm10, %v2104_v58 }
 0x29b   : > { %v1432_v34 = vpop.permute.xlu0 %1431 }
 0x29c   : > { %1448 = vst.msk [vmem:[#allocation3 + $0x40] sm:$0xff] %vm757_vm10, %v1432_v34  ;;  %v2586_v34 = vld [vmem:[%s4234_s30 + $0x28] sm:$0xff] }
 0x29d   : > { %v2106_v29 = vpop.permute.xlu1 %2105 }
 0x29e   : > { %2122 = vst.msk [vmem:[#allocation3 + $0x80] sm:$0xff] %vm757_vm10, %v2106_v29 }
 0x2a0   : > { %v2140_v55 = vld [vmem:[#allocation3 + $0x38] sm:$0xff] }
 0x2a1   : > { %3800 = vmatprep.mubr.msk.bf16.mxu0 %vm325_vm8, %v2140_v55  ;;  %v2662_v50 = vld [vmem:[#allocation3 + $0x78] sm:$0xff] }
 0x2a2   : > { %3854 = vmatprep.mubr.msk.bf16.mxu1 %vm325_vm8, %v2662_v50 }
 0x2a3   : > { %v2141_v53 = vld [vmem:[#allocation3 + $0x40] sm:$0xff] }
 0x2a4   : > { %3801 = vmatmul.mubr.msk.bf16.gmra.mrb[28].mxu0 %vm325_vm8, %v2141_v53 }
 0x2a5   : > { %v2663_v23 = vld [vmem:[#allocation3 + $0x80] sm:$0xff]  ;;  %3806 = vmatprep.mubr.msk.bf16.mxu0 %vm325_vm8, %v2123_v30 }
 0x2a6   : > { %3855 = vmatmul.mubr.msk.bf16.gmra.mrb[28].mxu1 %vm325_vm8, %v2663_v23 }
 0x2a7   : > { %3860 = vmatprep.mubr.msk.bf16.mxu1 %vm325_vm8, %v2141_v53 }
 0x2ac   : > { %3807 = vmatmul.mubr.msk.bf16.vlgmr.msra.gmra.mrb[16].mxu0 %vm325_vm8, %v5118_v21 }
 0x2ad   : > { %3810 = vmatprep.mubr.msk.bf16.mxu0 %vm325_vm8, %v5131_v15  ;;  %3823 = vmatpush3.bf16.msra.mxu0 %v2445_v46 }
 0x2ae   : > { %3861 = vmatmul.mubr.msk.bf16.vlgmr.msra.gmra.mrb[16].mxu1 %vm325_vm8, %v5136_v22 }
 0x2af   : > { %3877 = vmatpush3.bf16.msra.mxu1 %v2965_v20  ;;  %3864 = vmatprep.mubr.msk.bf16.mxu1 %vm325_vm8, %v5148_v1  ;;  %v3538_v20 = vld [vmem:[%s4234_s30 + $0xb8] sm:$0xff] }
 0x2b4   : > { %3811 = vmatmul.mubr.msk.bf16.gmra.mrb[20].mxu0 %vm325_vm8, %v5161_v60 }
 0x2b5   : > { %3814 = vmatprep.mubr.msk.bf16.mxu0 %vm325_vm8, %v5166_v24 }
 0x2b6   : > { %3865 = vmatmul.mubr.msk.bf16.gmra.mrb[20].mxu1 %vm325_vm8, %v5171_v2 }
 0x2b7   : > { %3868 = vmatprep.mubr.msk.bf16.mxu1 %vm325_vm8, %v5176_v31 }
 0x2bc   : > { %3815 = vmatmul.mubr.msk.bf16.gmra.mrb[24].mxu0 %vm325_vm8, %v2138_v18 }
 0x2bd   : > { %3818 = vmatprep.mubr.msk.bf16.mxu0 %vm325_vm8, %v2139_v47 }
 0x2be   : > { %3869 = vmatmul.mubr.msk.bf16.gmra.mrb[24].mxu1 %vm325_vm8, %v2660_v11 }
 0x2bf   : > { %3872 = vmatprep.mubr.msk.bf16.mxu1 %vm325_vm8, %v2661_v28 }
 0x2c4   : > { %3819 = vmatmul.mubr.msk.bf16.gmra.mrb[28].mxu0 %vm325_vm8, %v2140_v55 }
 0x2c5   : > { %3824 = vmatprep.mubr.msk.bf16.mxu0 %vm325_vm8, %v5131_v15  ;;  %v3534_v15 = vld [vmem:[%s4234_s30 + $0x98] sm:$0xff] }
 0x2c6   : > { %3873 = vmatmul.mubr.msk.bf16.gmra.mrb[28].mxu1 %vm325_vm8, %v2662_v50 }
 0x2c7   : > { %3878 = vmatprep.mubr.msk.bf16.mxu1 %vm325_vm8, %v5148_v1 }
 0x2cc   : > { %3825 = vmatmul.mubr.msk.bf16.vlgmr.msra.gmra.mrb[16].mxu0 %vm325_vm8, %v5161_v60 }
 0x2cd   : > { %3828 = vmatprep.mubr.msk.bf16.mxu0 %vm325_vm8, %v5166_v24 }
 0x2ce   : > { %3879 = vmatmul.mubr.msk.bf16.vlgmr.msra.gmra.mrb[16].mxu1 %vm325_vm8, %v5171_v2 }
 0x2cf   : > { %3882 = vmatprep.mubr.msk.bf16.mxu1 %vm325_vm8, %v5176_v31 }
 0x2d4   : > { %3829 = vmatmul.mubr.msk.bf16.gmra.mrb[20].mxu0 %vm325_vm8, %v2138_v18 }
 0x2d5   : > { %3832 = vmatprep.mubr.msk.bf16.mxu0 %vm325_vm8, %v2139_v47  ;;  %v2588_v47 = vld [vmem:[%s4234_s30 + $0x38] sm:$0xff] }
 0x2d6   : > { %3883 = vmatmul.mubr.msk.bf16.gmra.mrb[20].mxu1 %vm325_vm8, %v2660_v11  ;;  %v3537_v11 = vld [vmem:[%s4234_s30 + $0xb0] sm:$0xff] }
 0x2d7   : > { %3886 = vmatprep.mubr.msk.bf16.mxu1 %vm325_vm8, %v2661_v28 }
 0x2dc   : > { %3833 = vmatmul.mubr.msk.bf16.gmra.mrb[24].mxu0 %vm325_vm8, %v2140_v55 }
 0x2dd   : > { %3836 = vmatprep.mubr.msk.bf16.mxu0 %vm325_vm8, %v2141_v53 }
 0x2de   : > { %3887 = vmatmul.mubr.msk.bf16.gmra.mrb[24].mxu1 %vm325_vm8, %v2662_v50  ;;  %v3535_v50 = vld [vmem:[%s4234_s30 + $0xa0] sm:$0xff] }
 0x2df   : > { %3890 = vmatprep.mubr.msk.bf16.mxu1 %vm325_vm8, %v2663_v23 }
 0x2e4   : > { %3837 = vmatmul.mubr.msk.bf16.gmra.mrb[28].mxu0 %vm325_vm8, %v5136_v22 }
 0x2e6   : > { %3891 = vmatmul.mubr.msk.bf16.gmra.mrb[28].mxu1 %vm325_vm8, %v2932_v14 }
 0x39f   : > { %v3826_v49 = vpop.f32.mrb[16].mxu0 }
 0x3a0   : > { %v2567_v9 = vadd.f32 %v3826_v49, %v5254_v48  ;;  %v2481_v12 = vpop.f32.mrb[17].mxu0 }
 0x3a1   : > { %v2565_v27 = vadd.f32 %v5254_v48, %v2481_v12  ;;  %v3827_v25 = vpop.f32.mrb[18].mxu0  ;;  %v3880_v10 = vpop.f32.mrb[16].mxu1 }
 0x3a2   : > { %v2599_v52 = vadd.f32 %v2583_v59, %v2567_v9  ;;  %v2568_v26 = vadd.f32 %v3827_v25, %v5254_v48  ;;  %v2484_v41 = vpop.f32.mrb[19].mxu0  ;;  %v3087_v63 = vadd.f32 %v3880_v10, %v5254_v48  ;;  %v3001_v21 = vpop.f32.mrb[17].mxu1 }
 0x3a3   : > { %v2597_v4 = vadd.f32 %v2581_v33, %v2565_v27  ;;  %v2566_v32 = vadd.f32 %v5254_v48, %v2484_v41  ;;  %v3085_v5 = vadd.f32 %v5254_v48, %v3001_v21  ;;  %v3881_v44 = vpop.f32.mrb[18].mxu1  ;;  %v3536_v33 = vld [vmem:[%s4234_s30 + $0xa8] sm:$0xff] }
 0x3a4   : > { %v2615_v42 = vmax.f32 %v2599_v52, 0.0  ;;  %v2600_v22 = vadd.f32 %v2584_v16, %v2568_v26  ;;  %v3120_v35 = vadd.f32 %v3533_v7, %v3087_v63  ;;  %v3088_v40 = vadd.f32 %v3881_v44, %v5254_v48  ;;  %v3004_v1 = vpop.f32.mrb[19].mxu1  ;;  %v2589_v44 = vld [vmem:[%s4234_s30 + $0x40] sm:$0xff] }
 0x3a5   : > { %v2613_v8 = vmax.f32 %v2597_v4, 0.0  ;;  %v2598_v56 = vadd.f32 %v2582_v62, %v2566_v32  ;;  %v3118_v0 = vadd.f32 %v3531_v36, %v3085_v5  ;;  %v3086_v39 = vadd.f32 %v5254_v48, %v3004_v1  ;;  %v2591_v36 = vld [vmem:[%s4234_s30 + $0x50] sm:$0xff] }
 0x3a6   : > { %2631 = vst.msk [vmem:[%s5273_s21 + $0x10] sm:$0xff] %vm528_vm5, %v2615_v42  ;;  %v2616_v3 = vmax.f32 %v2600_v22, 0.0  ;;  %v3136_v60 = vmax.f32 %v3120_v35, 0.0  ;;  %v3121_v57 = vadd.f32 %v3534_v15, %v3088_v40  ;;  %v2592_v35 = vld [vmem:[%s4234_s30 + $0x58] sm:$0xff]  ;;  %v3541_v1 = vld [vmem:[%s4234_s30 + $0xd0] sm:$0xff] }
 0x3a7   : > { %2629 = vst.msk [vmem:[%s5273_s21] sm:$0xff] %vm528_vm5, %v2613_v8  ;;  %v2614_v24 = vmax.f32 %v2598_v56, 0.0  ;;  %v3134_v13 = vmax.f32 %v3118_v0, 0.0  ;;  %v3119_v2 = vadd.f32 %v3532_v61, %v3086_v39  ;;  %v3830_v31 = vpop.f32.mrb[20].mxu0  ;;  %v2590_v0 = vld [vmem:[%s4234_s30 + $0x48] sm:$0xff] }
 0x3a8   : > { %2632 = vst.msk [vmem:[%s5273_s21 + $0x18] sm:$0xff] %vm528_vm5, %v2616_v3  ;;  %3549 = vst.msk [vmem:[%s5273_s21 + $0x90] sm:$0xff] %vm528_vm5, %v3136_v60  ;;  %v3137_v38 = vmax.f32 %v3121_v57, 0.0  ;;  %v2571_v45 = vadd.f32 %v3830_v31, %v5254_v48  ;;  %v2497_v17 = vpop.f32.mrb[21].mxu0  ;;  %v3539_v60 = vld [vmem:[%s4234_s30 + $0xc0] sm:$0xff]  ;;  %v3542_v31 = vld [vmem:[%s4234_s30 + $0xd8] sm:$0xff] }
 0x3a9   : > { %2630 = vst.msk [vmem:[%s5273_s21 + $0x8] sm:$0xff] %vm528_vm5, %v2614_v24  ;;  %3547 = vst.msk [vmem:[%s5273_s21 + $0x80] sm:$0xff] %vm528_vm5, %v3134_v13  ;;  %v3135_v43 = vmax.f32 %v3119_v2, 0.0  ;;  %v2569_v18 = vadd.f32 %v5254_v48, %v2497_v17  ;;  %v3831_v54 = vpop.f32.mrb[22].mxu0  ;;  %v3884_v37 = vpop.f32.mrb[20].mxu1 }
 0x3aa   : > { %3550 = vst.msk [vmem:[%s5273_s21 + $0x98] sm:$0xff] %vm528_vm5, %v3137_v38  ;;  %v2603_v28 = vadd.f32 %v2587_v19, %v2571_v45  ;;  %v2572_v51 = vadd.f32 %v3831_v54, %v5254_v48  ;;  %v2500_v58 = vpop.f32.mrb[23].mxu0  ;;  %v3091_v29 = vadd.f32 %v3884_v37, %v5254_v48  ;;  %v3017_v55 = vpop.f32.mrb[21].mxu1 }
 0x3ab   : > { %3548 = vst.msk [vmem:[%s5273_s21 + $0x88] sm:$0xff] %vm528_vm5, %v3135_v43  ;;  %v2601_v30 = vadd.f32 %v2585_v6, %v2569_v18  ;;  %v2570_v53 = vadd.f32 %v5254_v48, %v2500_v58  ;;  %v3089_v23 = vadd.f32 %v5254_v48, %v3017_v55  ;;  %v3885_v46 = vpop.f32.mrb[22].mxu1  ;;  %v3540_v43 = vld [vmem:[%s4234_s30 + $0xc8] sm:$0xff] }
 0x3ac   : > { %v2619_v14 = vmax.f32 %v2603_v28, 0.0  ;;  %v2604_v49 = vadd.f32 %v2588_v47, %v2572_v51  ;;  %v3124_v59 = vadd.f32 %v3537_v11, %v3091_v29  ;;  %v3092_v9 = vadd.f32 %v3885_v46, %v5254_v48  ;;  %v3020_v12 = vpop.f32.mrb[23].mxu1  ;;  %v2593_v46 = vld [vmem:[%s4234_s30 + $0x60] sm:$0xff] }
 0x3ad   : > { %v2617_v27 = vmax.f32 %v2601_v30, 0.0  ;;  %v2602_v25 = vadd.f32 %v2586_v34, %v2570_v53  ;;  %v3122_v16 = vadd.f32 %v3535_v50, %v3089_v23  ;;  %v3090_v10 = vadd.f32 %v5254_v48, %v3020_v12  ;;  %v2595_v50 = vld [vmem:[%s4234_s30 + $0x70] sm:$0xff] }
 0x3ae   : > { %2635 = vst.msk [vmem:[%s5273_s21 + $0x30] sm:$0xff] %vm528_vm5, %v2619_v14  ;;  %v2620_v7 = vmax.f32 %v2604_v49, 0.0  ;;  %v3140_v52 = vmax.f32 %v3124_v59, 0.0  ;;  %v3125_v26 = vadd.f32 %v3538_v20, %v3092_v9  ;;  %v2596_v59 = vld [vmem:[%s4234_s30 + $0x78] sm:$0xff]  ;;  %v3545_v12 = vld [vmem:[%s4234_s30 + $0xf0] sm:$0xff] }
 0x3af   : > { %2633 = vst.msk [vmem:[%s5273_s21 + $0x20] sm:$0xff] %vm528_vm5, %v2617_v27  ;;  %v2618_v41 = vmax.f32 %v2602_v25, 0.0  ;;  %v3138_v62 = vmax.f32 %v3122_v16, 0.0  ;;  %v3123_v63 = vadd.f32 %v3536_v33, %v3090_v10  ;;  %v3834_v21 = vpop.f32.mrb[24].mxu0  ;;  %v2594_v16 = vld [vmem:[%s4234_s30 + $0x68] sm:$0xff] }
 0x3b0   : > { %2636 = vst.msk [vmem:[%s5273_s21 + $0x38] sm:$0xff] %vm528_vm5, %v2620_v7  ;;  %3553 = vst.msk [vmem:[%s5273_s21 + $0xb0] sm:$0xff] %vm528_vm5, %v3140_v52  ;;  %v3141_v4 = vmax.f32 %v3125_v26, 0.0  ;;  %v2575_v32 = vadd.f32 %v3834_v21, %v5254_v48  ;;  %v2513_v5 = vpop.f32.mrb[25].mxu0  ;;  %v3543_v52 = vld [vmem:[%s4234_s30 + $0xe0] sm:$0xff]  ;;  %v3546_v21 = vld [vmem:[%s4234_s30 + $0xf8] sm:$0xff] }
 0x3b1   : > { %2634 = vst.msk [vmem:[%s5273_s21 + $0x28] sm:$0xff] %vm528_vm5, %v2618_v41  ;;  %3551 = vst.msk [vmem:[%s5273_s21 + $0xa0] sm:$0xff] %vm528_vm5, %v3138_v62  ;;  %v3139_v15 = vmax.f32 %v3123_v63, 0.0  ;;  %v2573_v42 = vadd.f32 %v5254_v48, %v2513_v5  ;;  %v3835_v22 = vpop.f32.mrb[26].mxu0  ;;  %v3888_v40 = vpop.f32.mrb[24].mxu1 }
 0x3b2   : > { %3554 = vst.msk [vmem:[%s5273_s21 + $0xb8] sm:$0xff] %vm528_vm5, %v3141_v4  ;;  %v2607_v61 = vadd.f32 %v2591_v36, %v2575_v32  ;;  %v2576_v8 = vadd.f32 %v3835_v22, %v5254_v48  ;;  %v2516_v56 = vpop.f32.mrb[27].mxu0  ;;  %v3095_v39 = vadd.f32 %v3888_v40, %v5254_v48  ;;  %v3033_v3 = vpop.f32.mrb[25].mxu1 }
 0x3b3   : > { %3552 = vst.msk [vmem:[%s5273_s21 + $0xa8] sm:$0xff] %vm528_vm5, %v3139_v15  ;;  %v2605_v57 = vadd.f32 %v2589_v44, %v2573_v42  ;;  %v2574_v24 = vadd.f32 %v5254_v48, %v2516_v56  ;;  %v3093_v13 = vadd.f32 %v5254_v48, %v3033_v3  ;;  %v3889_v2 = vpop.f32.mrb[26].mxu1  ;;  %v3544_v15 = vld [vmem:[%s4234_s30 + $0xe8] sm:$0xff] }
 0x3b4   : > { %v2623_v19 = vmax.f32 %v2607_v61, 0.0  ;;  %v2608_v38 = vadd.f32 %v2592_v35, %v2576_v8  ;;  %v3128_v45 = vadd.f32 %v3541_v1, %v3095_v39  ;;  %v3096_v17 = vadd.f32 %v3889_v2, %v5254_v48  ;;  %v3036_v6 = vpop.f32.mrb[27].mxu1 }
 0x3b5   : > { %v2621_v18 = vmax.f32 %v2605_v57, 0.0  ;;  %v2606_v54 = vadd.f32 %v2590_v0, %v2574_v24  ;;  %v3126_v47 = vadd.f32 %v3539_v60, %v3093_v13  ;;  %v3094_v37 = vadd.f32 %v5254_v48, %v3036_v6  ;;  %v3266_v60 = vld [vmem:[%s5273_s21] sm:$0xff] (%p4150_p5)  ;;  %v3268_v57 = vld [vmem:[%s5273_s21 + $0x8] sm:$0xff] (%p4150_p5)  ;;  %v3270_v24 = vld [vmem:[%s5273_s21 + $0x10] sm:$0xff] (%p4150_p5) }
 0x3b6   : > { %2639 = vst.msk [vmem:[%s5273_s21 + $0x50] sm:$0xff] %vm528_vm5, %v2623_v19  ;;  %v2624_v11 = vmax.f32 %v2608_v38, 0.0  ;;  %v3144_v28 = vmax.f32 %v3128_v45, 0.0  ;;  %v3129_v51 = vadd.f32 %v3542_v31, %v3096_v17  ;;  %v3272_v13 = vld [vmem:[%s5273_s21 + $0x18] sm:$0xff] (%p4150_p5)  ;;  %v3274_v2 = vld [vmem:[%s5273_s21 + $0x20] sm:$0xff] (%p4150_p5)  ;;  %3267 = vst [vmem:[%s5397_s20] sm:$0xff] (%p4150_p5), %v3266_v60 }
 0x3b7   : > { %2637 = vst.msk [vmem:[%s5273_s21 + $0x40] sm:$0xff] %vm528_vm5, %v2621_v18  ;;  %v2622_v58 = vmax.f32 %v2606_v54, 0.0  ;;  %v3142_v34 = vmax.f32 %v3126_v47, 0.0  ;;  %v3127_v29 = vadd.f32 %v3540_v43, %v3094_v37  ;;  %v3838_v55 = vpop.f32.mrb[28].mxu0  ;;  %3269 = vst [vmem:[%s5397_s20 + $0x8] sm:$0xff] (%p4150_p5), %v3268_v57  ;;  %v3278_v19 = vld [vmem:[%s5273_s21 + $0x30] sm:$0xff] (%p4150_p5) }
 0x3b8   : > { %2640 = vst.msk [vmem:[%s5273_s21 + $0x58] sm:$0xff] %vm528_vm5, %v2624_v11  ;;  %3557 = vst.msk [vmem:[%s5273_s21 + $0xd0] sm:$0xff] %vm528_vm5, %v3144_v28  ;;  %v3145_v30 = vmax.f32 %v3129_v51, 0.0  ;;  %v2579_v53 = vadd.f32 %v3838_v55, %v5254_v48  ;;  %v2529_v23 = vpop.f32.mrb[29].mxu0  ;;  %v3276_v31 = vld [vmem:[%s5273_s21 + $0x28] sm:$0xff] (%p4150_p5)  ;;  %v3280_v38 = vld [vmem:[%s5273_s21 + $0x38] sm:$0xff] (%p4150_p5) }
 0x3b9   : > { %2638 = vst.msk [vmem:[%s5273_s21 + $0x48] sm:$0xff] %vm528_vm5, %v2622_v58  ;;  %3555 = vst.msk [vmem:[%s5273_s21 + $0xc0] sm:$0xff] %vm528_vm5, %v3142_v34  ;;  %v3143_v20 = vmax.f32 %v3127_v29, 0.0  ;;  %v2577_v14 = vadd.f32 %v5254_v48, %v2529_v23  ;;  %v3839_v49 = vpop.f32.mrb[30].mxu0  ;;  %v3892_v9 = vpop.f32.mrb[28].mxu1  ;;  %v3298_v11 = vld [vmem:[%s5273_s21 + $0x80] sm:$0xff] (%p4150_p5) }
 0x3ba   : > { %3558 = vst.msk [vmem:[%s5273_s21 + $0xd8] sm:$0xff] %vm528_vm5, %v3145_v30  ;;  %v2611_v33 = vadd.f32 %v2595_v50, %v2579_v53  ;;  %v2580_v27 = vadd.f32 %v3839_v49, %v5254_v48  ;;  %v2532_v25 = vpop.f32.mrb[31].mxu0  ;;  %v3099_v10 = vadd.f32 %v3892_v9, %v5254_v48  ;;  %v3049_v7 = vpop.f32.mrb[29].mxu1  ;;  %3271 = vst [vmem:[%s5397_s20 + $0x20] sm:$0xff] (%p4150_p5), %v3270_v24  ;;  %v3300_v28 = vld [vmem:[%s5273_s21 + $0x88] sm:$0xff] (%p4150_p5)  ;;  %v3302_v51 = vld [vmem:[%s5273_s21 + $0x90] sm:$0xff] (%p4150_p5) }
 0x3bb   : > { %3556 = vst.msk [vmem:[%s5273_s21 + $0xc8] sm:$0xff] %vm528_vm5, %v3143_v20  ;;  %v2609_v26 = vadd.f32 %v2593_v46, %v2577_v14  ;;  %v2578_v41 = vadd.f32 %v5254_v48, %v2532_v25  ;;  %v3097_v62 = vadd.f32 %v5254_v48, %v3049_v7  ;;  %v3893_v63 = vpop.f32.mrb[30].mxu1  ;;  %3273 = vst [vmem:[%s5397_s20 + $0x28] sm:$0xff] (%p4150_p5), %v3272_v13  ;;  %v3304_v58 = vld [vmem:[%s5273_s21 + $0x98] sm:$0xff] (%p4150_p5)  ;;  %v3306_v34 = vld [vmem:[%s5273_s21 + $0xa0] sm:$0xff] (%p4150_p5) }
 0x3bc   : > { %v2627_v36 = vmax.f32 %v2611_v33, 0.0  ;;  %v2612_v4 = vadd.f32 %v2596_v59, %v2580_v27  ;;  %v3132_v32 = vadd.f32 %v3545_v12, %v3099_v10  ;;  %v3100_v5 = vadd.f32 %v3893_v63, %v5254_v48  ;;  %v3052_v44 = vpop.f32.mrb[31].mxu1  ;;  %3275 = vst [vmem:[%s5397_s20 + $0x40] sm:$0xff] (%p4150_p5), %v3274_v2  ;;  %3277 = vst [vmem:[%s5397_s20 + $0x48] sm:$0xff] (%p4150_p5), %v3276_v31  ;;  %v3308_v29 = vld [vmem:[%s5273_s21 + $0xa8] sm:$0xff] (%p4150_p5)  ;;  %v3310_v55 = vld [vmem:[%s5273_s21 + $0xb0] sm:$0xff] (%p4150_p5) }
 0x3bd   : > { %v2625_v42 = vmax.f32 %v2609_v26, 0.0  ;;  %v2610_v22 = vadd.f32 %v2594_v16, %v2578_v41  ;;  %v3130_v35 = vadd.f32 %v3543_v52, %v3097_v62  ;;  %v3098_v40 = vadd.f32 %v5254_v48, %v3052_v44  ;;  %3173 = sbr.rel (!%p4150_p5) target bundleno = 974 (0x3ce), region = 74  ;;  %3279 = vst [vmem:[%s5397_s20 + $0x60] sm:$0xff] (%p4150_p5), %v3278_v19  ;;  %3281 = vst [vmem:[%s5397_s20 + $0x68] sm:$0xff] (%p4150_p5), %v3280_v38  ;;  %v3286_v6 = vld [vmem:[%s5273_s21 + $0x50] sm:$0xff] (%p4150_p5)  ;;  %v3312_v50 = vld [vmem:[%s5273_s21 + $0xb8] sm:$0xff] (%p4150_p5) }
 0x3be   : > { %2643 = vst.msk [vmem:[%s5273_s21 + $0x70] sm:$0xff] %vm528_vm5, %v2627_v36  ;;  %v2628_v1 = vmax.f32 %v2612_v4, 0.0  ;;  %v3148_v61 = vmax.f32 %v3132_v32, 0.0  ;;  %v3133_v8 = vadd.f32 %v3546_v21, %v3100_v5  ;;  %v3282_v45 = vld [vmem:[%s5273_s21 + $0x40] sm:$0xff] (%p4150_p5)  ;;  %3287 = vst [vmem:[%s5397_s20 + $0xa0] sm:$0xff] (%p4150_p5), %v3286_v6 }
 0x3bf   : > { %2641 = vst.msk [vmem:[%s5273_s21 + $0x60] sm:$0xff] %vm528_vm5, %v2625_v42  ;;  %v2626_v56 = vmax.f32 %v2610_v22, 0.0  ;;  %v3146_v0 = vmax.f32 %v3130_v35, 0.0  ;;  %v3131_v39 = vadd.f32 %v3544_v15, %v3098_v40  ;;  %3283 = vst [vmem:[%s5397_s20 + $0x80] sm:$0xff] (%p4150_p5), %v3282_v45  ;;  %v3288_v43 = vld [vmem:[%s5273_s21 + $0x58] sm:$0xff] (%p4150_p5)  ;;  %v3318_v23 = vld [vmem:[%s5273_s21 + $0xd0] sm:$0xff] (%p4150_p5) }
 0x3c0   : > { %2644 = vst.msk [vmem:[%s5273_s21 + $0x78] sm:$0xff] %vm528_vm5, %v2628_v1  ;;  %3561 = vst.msk [vmem:[%s5273_s21 + $0xf0] sm:$0xff] %vm528_vm5, %v3148_v61  ;;  %v3149_v3 = vmax.f32 %v3133_v8, 0.0  ;;  %v3284_v17 = vld [vmem:[%s5273_s21 + $0x48] sm:$0xff] (%p4150_p5)  ;;  %v3314_v30 = vld [vmem:[%s5273_s21 + $0xc0] sm:$0xff] (%p4150_p5) }
 0x3c1   : > { %2642 = vst.msk [vmem:[%s5273_s21 + $0x68] sm:$0xff] %vm528_vm5, %v2626_v56  ;;  %3559 = vst.msk [vmem:[%s5273_s21 + $0xe0] sm:$0xff] %vm528_vm5, %v3146_v0  ;;  %v3147_v48 = vmax.f32 %v3131_v39, 0.0  ;;  %v3320_v46 = vld [vmem:[%s5273_s21 + $0xd8] sm:$0xff] (%p4150_p5) }
 0x3c2   : > { %3562 = vst.msk [vmem:[%s5273_s21 + $0xf8] sm:$0xff] %vm528_vm5, %v3149_v3  ;;  %3285 = vst [vmem:[%s5397_s20 + $0x88] sm:$0xff] (%p4150_p5), %v3284_v17  ;;  %v3316_v53 = vld [vmem:[%s5273_s21 + $0xc8] sm:$0xff] (%p4150_p5) }
 0x3c3   : > { %3560 = vst.msk [vmem:[%s5273_s21 + $0xe8] sm:$0xff] %vm528_vm5, %v3147_v48  ;;  %3289 = vst [vmem:[%s5397_s20 + $0xa8] sm:$0xff] (%p4150_p5), %v3288_v43 }
 0x3c4   : > { %3299 = vst [vmem:[%s5397_s20 + $0x100] sm:$0xff] %v3298_v11  ;;  %3301 = vst [vmem:[%s5397_s20 + $0x108] sm:$0xff] %v3300_v28 }
 0x3c5   : > { %v3294_v47 = vld [vmem:[%s5273_s21 + $0x70] sm:$0xff]  ;;  %3303 = vst [vmem:[%s5397_s20 + $0x120] sm:$0xff] %v3302_v51  ;;  %3305 = vst [vmem:[%s5397_s20 + $0x128] sm:$0xff] %v3304_v58 }
 0x3c6   : > { %v3290_v18 = vld [vmem:[%s5273_s21 + $0x60] sm:$0xff]  ;;  %3295 = vst [vmem:[%s5397_s20 + $0xe0] sm:$0xff] %v3294_v47  ;;  %3307 = vst [vmem:[%s5397_s20 + $0x140] sm:$0xff] %v3306_v34 }
 0x3c7   : > { %3291 = vst [vmem:[%s5397_s20 + $0xc0] sm:$0xff] %v3290_v18  ;;  %v3296_v37 = vld [vmem:[%s5273_s21 + $0x78] sm:$0xff]  ;;  %3309 = vst [vmem:[%s5397_s20 + $0x148] sm:$0xff] %v3308_v29  ;;  %v3326_v49 = vld [vmem:[%s5273_s21 + $0xf0] sm:$0xff] }
 0x3c8   : > { %v3292_v54 = vld [vmem:[%s5273_s21 + $0x68] sm:$0xff]  ;;  %3297 = vst [vmem:[%s5397_s20 + $0xe8] sm:$0xff] %v3296_v37  ;;  %3311 = vst [vmem:[%s5397_s20 + $0x160] sm:$0xff] %v3310_v55  ;;  %v3322_v20 = vld [vmem:[%s5273_s21 + $0xe0] sm:$0xff] }
 0x3c9   : > { %3293 = vst [vmem:[%s5397_s20 + $0xc8] sm:$0xff] %v3292_v54  ;;  %3313 = vst [vmem:[%s5397_s20 + $0x168] sm:$0xff] %v3312_v50  ;;  %v3328_v59 = vld [vmem:[%s5273_s21 + $0xf8] sm:$0xff] }
 0x3ca   : > { %3315 = vst [vmem:[%s5397_s20 + $0x180] sm:$0xff] %v3314_v30  ;;  %3317 = vst [vmem:[%s5397_s20 + $0x188] sm:$0xff] %v3316_v53  ;;  %v3324_v14 = vld [vmem:[%s5273_s21 + $0xe8] sm:$0xff] }
 0x3cb   : > { %3319 = vst [vmem:[%s5397_s20 + $0x1a0] sm:$0xff] %v3318_v23  ;;  %3321 = vst [vmem:[%s5397_s20 + $0x1a8] sm:$0xff] %v3320_v46 }
 0x3cc   : > { %3323 = vst [vmem:[%s5397_s20 + $0x1c0] sm:$0xff] %v3322_v20  ;;  %3325 = vst [vmem:[%s5397_s20 + $0x1c8] sm:$0xff] %v3324_v14 }
 0x3cd   : > { %3327 = vst [vmem:[%s5397_s20 + $0x1e0] sm:$0xff] %v3326_v49  ;;  %3329 = vst [vmem:[%s5397_s20 + $0x1e8] sm:$0xff] %v3328_v59 }
 0x3ce PF: > { %p10_p10 = scmp.ge.s32.totalorder %s4137_s16, 4   ;;  %s5483_s12 = smov %s4091_s13 }
 0x3cf   : > { %s5484_s13 = smov %s4148_s19  ;;  %s5485_s14 = smov %s4137_s16 }
 0x3d0   :  { %12 = sbr.rel (!%p10_p10) target bundleno = 2 (0x2), region = 162 }

</bundles_post_ra>
